<compile_context>
chip_gen: v6e
topology: v6e:2x2x1
jax: 0.10.0
libtpu: 0.0.40
codegen_flags: <defaults>
</compile_context>

<pallas_src>
import jax
import jax.numpy as jnp
from jax.experimental import pallas as pl
from jax.experimental.pallas import tpu as pltpu

NUM_HEADS = 8


def _round_up(x, m):
    return (x + m - 1) // m * m


def perceiver_kernel(x_ref, ws_ref, bs_ref, hm_ref, wo_ref, bo_ref,
                     w1_ref, b1_ref, w2_ref, b2_ref, out_ref):
    """Whole forward pass for one batch tile.

    x_ref  : (TB, N, Cp)   bf16   input tile (Cp = C padded to 16)
    ws_ref : (Cp, HL+D)    bf16   fused [scores | V] projection; the score
                                  columns already contain Wp@Wk folded with
                                  the scaled latent queries.
    bs_ref : (1, HL+D)     f32    matching fused bias row
    hm_ref : (HL, D)       bf16   mean-over-latents + head-expansion matrix
    wo_ref : (D, D) bf16 / bo_ref : (1, D) f32      attention out_proj
    w1_ref : (D, Hm) / b1_ref : (1, Hm)             MLP fc1
    w2_ref : (Hm, NCp) / b2_ref : (1, NCp)          MLP fc2 (classes padded)
    out_ref: (TB, NCp)     f32    logits tile
    """
    TB, N, Cp = x_ref.shape
    HL = hm_ref.shape[0]              # num_heads * num_latents
    D = wo_ref.shape[0]
    cdt = jnp.bfloat16

    # ---- one lane-dense matmul: scores for every (head, latent) + V rows ----
    x_flat = x_ref[...].reshape(TB * N, Cp)                          # bf16
    big = jnp.dot(x_flat, ws_ref[...],
                  preferred_element_type=jnp.float32) + bs_ref[...]  # [TB*N, HL+D]
    s = big[:, :HL].reshape(TB, N, HL)                               # f32 scores
    v = big[:, HL:HL + D]                                            # [TB*N, D] f32

    # ---- softmax over the N keys (axis=1) for every (b, head, latent) ----
    s = s - jnp.max(s, axis=1, keepdims=True)
    p = jnp.exp(s)
    p = p * pl.reciprocal(jnp.sum(p, axis=1, keepdims=True), approx=True)

    # ---- mean over latents hoisted before PV: one matmul spreads each
    #      head's mean attention weight across that head's D-lanes ----
    pm = jnp.dot(p.reshape(TB * N, HL).astype(cdt), hm_ref[...],
                 preferred_element_type=jnp.float32)                 # [TB*N, D]

    # attention-weighted V, already pooled over the latent axis
    o_pooled = jnp.sum((pm * v).reshape(TB, N, D), axis=1)           # [TB, D]

    pooled = jnp.dot(o_pooled.astype(cdt), wo_ref[...],
                     preferred_element_type=jnp.float32) + bo_ref[...]   # [TB, D]

    # ---- MLP head ----
    h1 = jnp.dot(pooled.astype(cdt), w1_ref[...],
                 preferred_element_type=jnp.float32) + b1_ref[...]
    h1 = jnp.maximum(h1, 0.0)
    out_ref[...] = jnp.dot(h1.astype(cdt), w2_ref[...],
                           preferred_element_type=jnp.float32) + b2_ref[...]


def perceiver_forward(x, params, *, batch_tile=64):
    B, N, C = x.shape
    L, D = params["latents"].shape
    H = NUM_HEADS
    hd = D // H
    HL = H * L
    Hm = params["w1"].shape[1]
    NC = params["w2"].shape[1]
    cdt = jnp.bfloat16
    f32 = lambda a: jnp.asarray(a, jnp.float32)

    # ---- batch tiling: TB multiple of 8; B padded to a multiple of TB ----
    TB = max(8, min(_round_up(batch_tile, 8), _round_up(B, 8)))
    B_pad = _round_up(B, TB)
    C_pad = _round_up(C, 16)          # bf16 sublane packing only, NOT 128
    NC_pad = _round_up(NC, 128)       # lane-dense logits writeback

    # ---- exact algebraic folds, all in f32 (cast to bf16 only at the end) ----
    Wp, bp = f32(params["wp"]), f32(params["bp"])
    Wk, bk = f32(params["wk"]), f32(params["bk"])
    Wv, bv = f32(params["wv"]), f32(params["bv"])
    Wq, bq = f32(params["wq"]), f32(params["bq"])
    Wo, bo = f32(params["wo"]), f32(params["bo"])
    W1, b1 = f32(params["w1"]), f32(params["b1"])
    W2, b2 = f32(params["w2"]), f32(params["b2"])

    # input projection folded into K / V
    Wk2 = Wp @ Wk                       # [C, D]
    bk2 = bp @ Wk + bk                  # [1, D]
    Wv2 = Wp @ Wv
    bv2 = bp @ Wv + bv
    # batch-shared, pre-scaled queries
    q = (f32(params["latents"]) @ Wq + bq) * (1.0 / (hd ** 0.5))       # [L, D]
    # fold q into the key projection -> per-(head, latent) score columns
    Ws = jnp.einsum("chd,lhd->chl",
                    Wk2.reshape(C, H, hd), q.reshape(L, H, hd)).reshape(C, HL)
    bs = jnp.einsum("hd,lhd->hl",
                    bk2.reshape(H, hd), q.reshape(L, H, hd)).reshape(1, HL)
    # fused [scores | V] projection, rows padded to C_pad with zeros
    W_all = jnp.concatenate([Ws, Wv2], axis=1)                          # [C, HL+D]
    b_all = jnp.concatenate([bs, bv2], axis=1)                          # [1, HL+D]
    W_all = jnp.zeros((C_pad, HL + D), jnp.float32).at[:C].set(W_all)
    # mean-over-latents + head-expansion matrix (1/L block diagonal, exact in bf16)
    HM = jnp.kron(jnp.eye(H, dtype=jnp.float32),
                  jnp.ones((L, hd), jnp.float32)) / L                   # [HL, D]
    # padded classifier
    W2p = jnp.zeros((Hm, NC_pad), jnp.float32).at[:, :NC].set(W2)
    b2p = jnp.zeros((1, NC_pad), jnp.float32).at[:, :NC].set(b2)

    # ---- operand layout / dtypes ----
    x_p = jnp.zeros((B_pad, N, C_pad), cdt).at[:B, :, :C].set(x.astype(cdt))

    def const(shape):
        # weights / biases: identical block every grid step
        return pl.BlockSpec(shape, lambda b: (0,) * len(shape))

    in_specs = [
        pl.BlockSpec((TB, N, C_pad), lambda b: (b, 0, 0)),   # streamed x tile
        const((C_pad, HL + D)), const((1, HL + D)),          # fused scores|V proj
        const((HL, D)),                                      # latent-mean matrix
        const((D, D)), const((1, D)),                        # out_proj
        const((D, Hm)), const((1, Hm)),                      # mlp fc1
        const((Hm, NC_pad)), const((1, NC_pad)),             # mlp fc2 (padded)
    ]

    out = pl.pallas_call(
        perceiver_kernel,
        out_shape=jax.ShapeDtypeStruct((B_pad, NC_pad), jnp.float32),
        grid=(B_pad // TB,),
        in_specs=in_specs,
        out_specs=pl.BlockSpec((TB, NC_pad), lambda b: (b, 0)),
        compiler_params=pltpu.CompilerParams(
            dimension_semantics=("parallel",),
            vmem_limit_bytes=48 * 1024 * 1024),
    )(x_p,
      W_all.astype(cdt), b_all,
      HM.astype(cdt),
      Wo.astype(cdt), bo,
      W1.astype(cdt), b1,
      W2p.astype(cdt), b2p)
    return out[:B, :NC]


def reference_forward(x, p):
    """Pure-JAX f32 reference mirroring the PyTorch module."""
    B, N, C = x.shape
    L, D = p["latents"].shape
    hd = D // NUM_HEADS
    xp = x @ p["wp"] + p["bp"][0]
    lat = jnp.broadcast_to(p["latents"], (B, L, D))
    q = lat @ p["wq"] + p["bq"][0]
    k = xp @ p["wk"] + p["bk"][0]
    v = xp @ p["wv"] + p["bv"][0]
    qh = q.reshape(B, L, NUM_HEADS, hd).transpose(0, 2, 1, 3)
    kh = k.reshape(B, N, NUM_HEADS, hd).transpose(0, 2, 1, 3)
    vh = v.reshape(B, N, NUM_HEADS, hd).transpose(0, 2, 1, 3)
    s = jnp.einsum("bhld,bhnd->bhln", qh, kh) / jnp.sqrt(jnp.float32(hd))
    a = jax.nn.softmax(s, axis=-1)
    o = jnp.einsum("bhln,bhnd->bhld", a, vh).transpose(0, 2, 1, 3).reshape(B, L, D)
    o = o @ p["wo"] + p["bo"][0]
    pooled = o.mean(axis=1)
    h1 = jax.nn.relu(pooled @ p["w1"] + p["b1"][0])
    return h1 @ p["w2"] + p["b2"][0]


def init_params(key, input_dim, latent_dim, num_latents, num_classes):
    D, C, L, NC = latent_dim, input_dim, num_latents, num_classes
    H = D // 2
    ks = jax.random.split(key, 16)
    n = lambda k, shape, s=0.1: (s * jax.random.normal(k, shape)).astype(jnp.float32)
    return {
        "latents": jax.random.normal(ks[0], (L, D)).astype(jnp.float32),
        "wp": n(ks[1], (C, D)), "bp": n(ks[2], (1, D)),
        "wq": n(ks[3], (D, D)), "bq": n(ks[4], (1, D)),
        "wk": n(ks[5], (D, D)), "bk": n(ks[6], (1, D)),
        "wv": n(ks[7], (D, D)), "bv": n(ks[8], (1, D)),
        "wo": n(ks[9], (D, D)), "bo": n(ks[10], (1, D)),
        "w1": n(ks[11], (D, H)), "b1": n(ks[12], (1, H)),
        "w2": n(ks[13], (H, NC)), "b2": n(ks[14], (1, NC)),
    }


if __name__ == "__main__":
    # Small shapes consistent with the module's forward:
    #   x: [B, N, C], latents: [L, D], D divisible by num_heads=8.
    # B=120 with batch_tile=64 -> grid of 2 (both v7x TensorCores busy) and
    # one partially padded batch tile (exercises the padding path).
    B, N, C = 120, 8, 10
    D, L, NC = 64, 16, 8

    key = jax.random.PRNGKey(0)
    kx, kp = jax.random.split(key)
    x = jax.random.normal(kx, (B, N, C), dtype=jnp.float32)
    params = init_params(kp, input_dim=C, latent_dim=D, num_latents=L, num_classes=NC)

    out = perceiver_forward(x, params, batch_tile=64)
    out = jax.block_until_ready(out)

    ref = reference_forward(x, params)
    assert out.shape == (B, NC)
    assert jnp.allclose(out, ref, rtol=2e-2, atol=2e-2), (
        f"mismatch: max abs err {jnp.max(jnp.abs(out - ref))}")

    print("KERNEL_OK")
</pallas_src>

<mosaic_0001>
module attributes {stable_mosaic.version = 11 : i64} {
  func.func @perceiver_kernel(%arg0: i32, %arg1: memref<64x8x16xbf16, #tpu.memory_space<vmem>>, %arg2: memref<16x192xbf16, #tpu.memory_space<vmem>>, %arg3: memref<1x192xf32, #tpu.memory_space<vmem>>, %arg4: memref<128x64xbf16, #tpu.memory_space<vmem>>, %arg5: memref<64x64xbf16, #tpu.memory_space<vmem>>, %arg6: memref<1x64xf32, #tpu.memory_space<vmem>>, %arg7: memref<64x32xbf16, #tpu.memory_space<vmem>>, %arg8: memref<1x32xf32, #tpu.memory_space<vmem>>, %arg9: memref<32x128xbf16, #tpu.memory_space<vmem>>, %arg10: memref<1x128xf32, #tpu.memory_space<vmem>>, %arg11: memref<64x128xf32, #tpu.memory_space<vmem>>) attributes {dimension_semantics = [#tpu.dimension_semantics<parallel>], iteration_bounds = array<i64: 2>, scalar_prefetch = 0 : i64, scratch_operands = 0 : i64, tpu.core_type = #tpu.core_type<tc>, window_params = [{transform_indices = @transform_0, window_bounds = array<i64: 64, 8, 16>}, {pipeline_mode = #tpu.pipeline_mode<synchronous>, transform_indices = @transform_1, window_bounds = array<i64: 16, 192>}, {pipeline_mode = #tpu.pipeline_mode<synchronous>, transform_indices = @transform_2, window_bounds = array<i64: 1, 192>}, {pipeline_mode = #tpu.pipeline_mode<synchronous>, transform_indices = @transform_3, window_bounds = array<i64: 128, 64>}, {pipeline_mode = #tpu.pipeline_mode<synchronous>, transform_indices = @transform_4, window_bounds = array<i64: 64, 64>}, {pipeline_mode = #tpu.pipeline_mode<synchronous>, transform_indices = @transform_5, window_bounds = array<i64: 1, 64>}, {pipeline_mode = #tpu.pipeline_mode<synchronous>, transform_indices = @transform_6, window_bounds = array<i64: 64, 32>}, {pipeline_mode = #tpu.pipeline_mode<synchronous>, transform_indices = @transform_7, window_bounds = array<i64: 1, 32>}, {pipeline_mode = #tpu.pipeline_mode<synchronous>, transform_indices = @transform_8, window_bounds = array<i64: 32, 128>}, {pipeline_mode = #tpu.pipeline_mode<synchronous>, transform_indices = @transform_9, window_bounds = array<i64: 1, 128>}, {transform_indices = @transform_10, window_bounds = array<i64: 64, 128>}]} {
    %c0 = arith.constant 0 : index
    %c0_0 = arith.constant 0 : index
    %c0_1 = arith.constant 0 : index
    %0 = vector.load %arg1[%c0, %c0_0, %c0_1] : memref<64x8x16xbf16, #tpu.memory_space<vmem>>, vector<64x8x16xbf16>
    %1 = vector.shape_cast %0 : vector<64x8x16xbf16> to vector<512x16xbf16>
    %c0_2 = arith.constant 0 : index
    %c0_3 = arith.constant 0 : index
    %2 = vector.load %arg2[%c0_2, %c0_3] : memref<16x192xbf16, #tpu.memory_space<vmem>>, vector<16x192xbf16>
    %cst = arith.constant dense<0.000000e+00> : vector<512x192xf32>
    %3 = tpu.matmul %1, %2, %cst {dimension_numbers = #tpu.dot_dimension_numbers<[1], [0], [0], [1], [0, 0, 1, 1], [], []>} : vector<512x16xbf16>, vector<16x192xbf16>, vector<512x192xf32> -> vector<512x192xf32>
    %c0_4 = arith.constant 0 : index
    %c0_5 = arith.constant 0 : index
    %4 = vector.load %arg3[%c0_4, %c0_5] : memref<1x192xf32, #tpu.memory_space<vmem>>, vector<1x192xf32>
    %5 = vector.broadcast %4 : vector<1x192xf32> to vector<512x192xf32>
    %6 = arith.addf %3, %5 : vector<512x192xf32>
    %7 = vector.extract_strided_slice %6 {offsets = [0, 0], sizes = [512, 128], strides = [1, 1]} : vector<512x192xf32> to vector<512x128xf32>
    %8 = vector.shape_cast %7 : vector<512x128xf32> to vector<64x8x128xf32>
    %9 = vector.extract_strided_slice %6 {offsets = [0, 128], sizes = [512, 64], strides = [1, 1]} : vector<512x192xf32> to vector<512x64xf32>
    %cst_6 = arith.constant dense<0xFF800000> : vector<64x128xf32>
    %10 = vector.multi_reduction <maximumf>, %8, %cst_6 [1] : vector<64x8x128xf32> to vector<64x128xf32>
    %11 = vector.shape_cast %10 : vector<64x128xf32> to vector<64x1x128xf32>
    %12 = vector.broadcast %11 : vector<64x1x128xf32> to vector<64x8x128xf32>
    %13 = arith.subf %8, %12 : vector<64x8x128xf32>
    %14 = math.exp %13 : vector<64x8x128xf32>
    %cst_7 = arith.constant dense<0.000000e+00> : vector<64x128xf32>
    %15 = vector.multi_reduction <add>, %14, %cst_7 [1] : vector<64x8x128xf32> to vector<64x128xf32>
    %16 = vector.shape_cast %15 : vector<64x128xf32> to vector<64x1x128xf32>
    %17 = tpu.reciprocal %16 {approx = true} : vector<64x1x128xf32> -> vector<64x1x128xf32>
    %18 = vector.broadcast %17 : vector<64x1x128xf32> to vector<64x8x128xf32>
    %19 = arith.mulf %14, %18 : vector<64x8x128xf32>
    %20 = vector.shape_cast %19 : vector<64x8x128xf32> to vector<512x128xf32>
    %21 = arith.truncf %20 : vector<512x128xf32> to vector<512x128xbf16>
    %c0_8 = arith.constant 0 : index
    %c0_9 = arith.constant 0 : index
    %22 = vector.load %arg4[%c0_8, %c0_9] : memref<128x64xbf16, #tpu.memory_space<vmem>>, vector<128x64xbf16>
    %cst_10 = arith.constant dense<0.000000e+00> : vector<512x64xf32>
    %23 = tpu.matmul %21, %22, %cst_10 {dimension_numbers = #tpu.dot_dimension_numbers<[1], [0], [0], [1], [0, 0, 1, 1], [], []>} : vector<512x128xbf16>, vector<128x64xbf16>, vector<512x64xf32> -> vector<512x64xf32>
    %24 = arith.mulf %23, %9 : vector<512x64xf32>
    %25 = vector.shape_cast %24 : vector<512x64xf32> to vector<64x8x64xf32>
    %cst_11 = arith.constant dense<0.000000e+00> : vector<64x64xf32>
    %26 = vector.multi_reduction <add>, %25, %cst_11 [1] : vector<64x8x64xf32> to vector<64x64xf32>
    %27 = arith.truncf %26 : vector<64x64xf32> to vector<64x64xbf16>
    %c0_12 = arith.constant 0 : index
    %c0_13 = arith.constant 0 : index
    %28 = vector.load %arg5[%c0_12, %c0_13] : memref<64x64xbf16, #tpu.memory_space<vmem>>, vector<64x64xbf16>
    %cst_14 = arith.constant dense<0.000000e+00> : vector<64x64xf32>
    %29 = tpu.matmul %27, %28, %cst_14 {dimension_numbers = #tpu.dot_dimension_numbers<[1], [0], [0], [1], [0, 0, 1, 1], [], []>} : vector<64x64xbf16>, vector<64x64xbf16>, vector<64x64xf32> -> vector<64x64xf32>
    %c0_15 = arith.constant 0 : index
    %c0_16 = arith.constant 0 : index
    %30 = vector.load %arg6[%c0_15, %c0_16] : memref<1x64xf32, #tpu.memory_space<vmem>>, vector<1x64xf32>
    %31 = vector.broadcast %30 : vector<1x64xf32> to vector<64x64xf32>
    %32 = arith.addf %29, %31 : vector<64x64xf32>
    %33 = arith.truncf %32 : vector<64x64xf32> to vector<64x64xbf16>
    %c0_17 = arith.constant 0 : index
    %c0_18 = arith.constant 0 : index
    %34 = vector.load %arg7[%c0_17, %c0_18] : memref<64x32xbf16, #tpu.memory_space<vmem>>, vector<64x32xbf16>
    %cst_19 = arith.constant dense<0.000000e+00> : vector<64x32xf32>
    %35 = tpu.matmul %33, %34, %cst_19 {dimension_numbers = #tpu.dot_dimension_numbers<[1], [0], [0], [1], [0, 0, 1, 1], [], []>} : vector<64x64xbf16>, vector<64x32xbf16>, vector<64x32xf32> -> vector<64x32xf32>
    %c0_20 = arith.constant 0 : index
    %c0_21 = arith.constant 0 : index
    %36 = vector.load %arg8[%c0_20, %c0_21] : memref<1x32xf32, #tpu.memory_space<vmem>>, vector<1x32xf32>
    %37 = vector.broadcast %36 : vector<1x32xf32> to vector<64x32xf32>
    %38 = arith.addf %35, %37 : vector<64x32xf32>
    %cst_22 = arith.constant 0.000000e+00 : f32
    %39 = vector.broadcast %cst_22 : f32 to vector<64x32xf32>
    %40 = arith.maximumf %38, %39 : vector<64x32xf32>
    %41 = arith.truncf %40 : vector<64x32xf32> to vector<64x32xbf16>
    %c0_23 = arith.constant 0 : index
    %c0_24 = arith.constant 0 : index
    %42 = vector.load %arg9[%c0_23, %c0_24] : memref<32x128xbf16, #tpu.memory_space<vmem>>, vector<32x128xbf16>
    %cst_25 = arith.constant dense<0.000000e+00> : vector<64x128xf32>
    %43 = tpu.matmul %41, %42, %cst_25 {dimension_numbers = #tpu.dot_dimension_numbers<[1], [0], [0], [1], [0, 0, 1, 1], [], []>} : vector<64x32xbf16>, vector<32x128xbf16>, vector<64x128xf32> -> vector<64x128xf32>
    %c0_26 = arith.constant 0 : index
    %c0_27 = arith.constant 0 : index
    %44 = vector.load %arg10[%c0_26, %c0_27] : memref<1x128xf32, #tpu.memory_space<vmem>>, vector<1x128xf32>
    %45 = vector.broadcast %44 : vector<1x128xf32> to vector<64x128xf32>
    %46 = arith.addf %43, %45 : vector<64x128xf32>
    %c0_28 = arith.constant 0 : index
    %c0_29 = arith.constant 0 : index
    %47 = vector.load %arg11[%c0_28, %c0_29] : memref<64x128xf32, #tpu.memory_space<vmem>>, vector<64x128xf32>
    tpu.vector_store %arg11[%c0_28, %c0_29], %46 {strides = array<i32>} : memref<64x128xf32, #tpu.memory_space<vmem>>, vector<64x128xf32>,
    return
  }
  func.func @transform_0(%arg0: i32) -> (i32, i32, i32) {
    %c0_i32 = arith.constant 0 : i32
    %c0_i32_0 = arith.constant 0 : i32
    %c0_i32_1 = arith.constant 0 : i32
    return %arg0, %c0_i32, %c0_i32_0 : i32, i32, i32
  }
  func.func @transform_1(%arg0: i32) -> (i32, i32) {
    %c0_i32 = arith.constant 0 : i32
    %c0_i32_0 = arith.constant 0 : i32
    %c0_i32_1 = arith.constant 0 : i32
    return %c0_i32, %c0_i32_0 : i32, i32
  }
  func.func @transform_2(%arg0: i32) -> (i32, i32) {
    %c0_i32 = arith.constant 0 : i32
    %c0_i32_0 = arith.constant 0 : i32
    %c0_i32_1 = arith.constant 0 : i32
    return %c0_i32, %c0_i32_0 : i32, i32
  }
  func.func @transform_3(%arg0: i32) -> (i32, i32) {
    %c0_i32 = arith.constant 0 : i32
    %c0_i32_0 = arith.constant 0 : i32
    %c0_i32_1 = arith.constant 0 : i32
    return %c0_i32, %c0_i32_0 : i32, i32
  }
  func.func @transform_4(%arg0: i32) -> (i32, i32) {
    %c0_i32 = arith.constant 0 : i32
    %c0_i32_0 = arith.constant 0 : i32
    %c0_i32_1 = arith.constant 0 : i32
    return %c0_i32, %c0_i32_0 : i32, i32
  }
  func.func @transform_5(%arg0: i32) -> (i32, i32) {
    %c0_i32 = arith.constant 0 : i32
    %c0_i32_0 = arith.constant 0 : i32
    %c0_i32_1 = arith.constant 0 : i32
    return %c0_i32, %c0_i32_0 : i32, i32
  }
  func.func @transform_6(%arg0: i32) -> (i32, i32) {
    %c0_i32 = arith.constant 0 : i32
    %c0_i32_0 = arith.constant 0 : i32
    %c0_i32_1 = arith.constant 0 : i32
    return %c0_i32, %c0_i32_0 : i32, i32
  }
  func.func @transform_7(%arg0: i32) -> (i32, i32) {
    %c0_i32 = arith.constant 0 : i32
    %c0_i32_0 = arith.constant 0 : i32
    %c0_i32_1 = arith.constant 0 : i32
    return %c0_i32, %c0_i32_0 : i32, i32
  }
  func.func @transform_8(%arg0: i32) -> (i32, i32) {
    %c0_i32 = arith.constant 0 : i32
    %c0_i32_0 = arith.constant 0 : i32
    %c0_i32_1 = arith.constant 0 : i32
    return %c0_i32, %c0_i32_0 : i32, i32
  }
  func.func @transform_9(%arg0: i32) -> (i32, i32) {
    %c0_i32 = arith.constant 0 : i32
    %c0_i32_0 = arith.constant 0 : i32
    %c0_i32_1 = arith.constant 0 : i32
    return %c0_i32, %c0_i32_0 : i32, i32
  }
  func.func @transform_10(%arg0: i32) -> (i32, i32) {
    %c0_i32 = arith.constant 0 : i32
    %c0_i32_0 = arith.constant 0 : i32
    return %arg0, %c0_i32 : i32, i32
  }
}

</mosaic_0001>

<bundles_post_ra>
// kernel: tpu_custom_call.1
= control target key start
LH: loop header
LB: loop body
LE: loop exit
PB: predicated region body
PF: predicated region fallthrough
CT: control target
= control target key end

     0   :  { %15 = vsyncpa [#allocation3], 0  ;;  %s5999_s0 = inlined_call_operand.vmem [shape: bf16[128,8,16], index: 0, kind: input, shape index: {}]   ;;  %s6000_s1 = inlined_call_operand.vmem [shape: bf16[16,192], index: 1, kind: input, shape index: {}]   ;;  %s6001_s2 = inlined_call_operand.vmem [shape: f32[1,192], index: 2, kind: input, shape index: {}]   ;;  %s6002_s3 = inlined_call_operand.vmem [shape: bf16[128,64], index: 3, kind: input, shape index: {}]   ;;  %s6003_s4 = inlined_call_operand.vmem [shape: bf16[64,64], index: 4, kind: input, shape index: {}]   ;;  %s6004_s5 = inlined_call_operand.vmem [shape: f32[1,64], index: 5, kind: input, shape index: {}]   ;;  %s6005_s6 = inlined_call_operand.vmem [shape: bf16[64,32], index: 6, kind: input, shape index: {}]   ;;  %s6006_s7 = inlined_call_operand.vmem [shape: f32[1,32], index: 7, kind: input, shape index: {}]   ;;  %s6007_s8 = inlined_call_operand.vmem [shape: bf16[32,128], index: 8, kind: input, shape index: {}]   ;;  %s6008_s9 = inlined_call_operand.vmem [shape: f32[1,128], index: 9, kind: input, shape index: {}]   ;;  %s6009_s10 = inlined_call_operand.hbm [shape: f32[128,128], index: 10, kind: output, shape index: {}]  }
   0x1   :  { %17 = vsyncpa [#allocation3 + $0x1], 0  ;;  %s4510_s13 = smov 0   ;;  %s4512_s14 = smov 0  }
   0x2   :  { %s4514_s15 = smov 0   ;;  %s4516_s16 = smov 0  }
   0x3 LB: > { %s4531_s17 = sadd.s32 4294967295, %s4449_s16   ;;  %s3738_s18 = sadd.s32 4294967294, %s4449_s16   ;;  %s4449_s16 = sphi %s4516_s16, %s6123_s16   ;;  %s4445_s15 = sphi %s4514_s15, %s6122_s15   ;;  %s4441_s14 = sphi %s4512_s14, %s6121_s14   ;;  %s4437_s13 = sphi %s4510_s13, %s6120_s13  }
   0x4   : > { %s4535_s19 = sadd.s32 1, %s4449_s16   ;;  %s245_s20 = sadd.s32 1, %s4445_s15 }
   0x5   : > { %s242_s21 = ssub.s32 %s4449_s16, %s4535_s19  ;;  %p255_p0 = scmp.ne.s32.totalorder %s4445_s15, %s4441_s14 }
   0x6   : > { %p243_p1 = scmp.eq.s32.totalorder %s242_s21, 0  ;;  %p256_p2 = scmp.eq.s32.totalorder %s4531_s17, 1 }
   0x7   : > { %p261_p3 = scmp.ne.s32.totalorder %s4441_s14, %s4437_s13  ;;  %p262_p4 = scmp.eq.s32.totalorder %s3738_s18, 1 }
   0x8   : > { %s4546_s22 = scalar_select %p243_p1, %s4445_s15, %s245_s20  }
   0x9   : > { %p4548_p5 = por %p256_p2, %p255_p0  ;;  %p4552_p6 = por %p262_p4, %p261_p3 }
   0xa   : > { %p3741_p7 = scmp.ge.s32.totalorder %s4449_s16, 1  ;;  %p316_p8 = scmp.lt.s32.totalorder %s4449_s16, 3 }
   0xc   : > { %p317_p9 = pnand %p3741_p7, %p316_p8 }
   0xe   : > { %320 = sbr.rel (%p317_p9) target bundleno = 1430 (0x596), region = 60 }
  0x13   : > { %v4080_v0 = vld [vmem:[%s6000_s1 + $0x4] ss:$8 sps:$4 sm:$0xff]   ;;  %s3743_s27 = sshll.u32 %s4531_s17, 6  ;;  %v4082_v1 = vld [vmem:[%s6000_s1] ss:$8 sps:$4 sm:$0xff]   ;;  %v4451_v2 = vmov 0   ;;  %v430_v16 = vlaneseq }
  0x14   : > { %739 = vmatprep.mubr.bf16.mxu0 %v4451_v2  ;;  %p355_p10 = scmp.lt.s32.totalorder %s3743_s27, 127  ;;  %1009 = vmatprep.mubr.bf16.mxu1 %v4451_v2  ;;  %vm610_vm0 = vcmask 130048   ;;  %v4618_v20 = vld [vmem:[%s6001_s2] sm:$0x3]  ;;  %v4115_v27 = vld [vmem:[%s6002_s3 + $0x38] sm:$0xff]   ;;  %v4116_v29 = vld [vmem:[%s6002_s3 + $0x30] sm:$0xff]  }
  0x15   : > { %721 = vmatprep.subr.bf16.mxu0 %v4080_v0  ;;  %4036 = vmatprep.subr.bf16.mxu1 %v4080_v0  ;;  %v4611_v18 = vshrl.u32 %v430_v16, 7  ;;  %v4117_v30 = vld [vmem:[%s6002_s3 + $0x28] sm:$0xff]   ;;  %v4118_v32 = vld [vmem:[%s6002_s3 + $0x20] sm:$0xff]   ;;  %v4119_v33 = vld [vmem:[%s6002_s3 + $0x18] sm:$0xff]   ;;  %vm2597_vm1 = vcmask 523264   ;;  %vm3253_vm2 = vcmask 1041409  }
  0x16   : > { %722 = vmatpush1.bf16.msra.mxu0 %v4082_v1  ;;  %s6125_s27 = smov (!%p355_p10, %s3743_s27), 127  ;;  %4037 = vmatpush1.bf16.msra.mxu1 %v4082_v1  ;;  %v4120_v35 = vld [vmem:[%s6002_s3 + $0x10] sm:$0xff]   ;;  %v4121_v36 = vld [vmem:[%s6002_s3 + $0x8] sm:$0xff]   ;;  %v4122_v38 = vld [vmem:[%s6002_s3] sm:$0xff]   ;;  %vm3255_vm3 = vcmask 1042434   ;;  %vm3257_vm4 = vcmask 1043459  }
  0x17   : > { %s3744_s30 = sshll.u32 %s6125_s27, 2  ;;  %v436_v19 = vsub.s32 1, %v4611_v18  ;;  %3912 = vmatprep.subr.bf16.mxu1 %v4115_v27  ;;  %v432_v45 = vsub.s32 0, %v4611_v18  ;;  %vm3259_vm5 = vcmask 1044484   ;;  %vm3261_vm6 = vcmask 1045509   ;;  %s351_s12 = sand.u32 1, %s4441_s14  }
  0x18   : > { %s4570_s18 = scalar_lea.vmem %s5999_s0, %s3744_s30  ;;  %vm3263_vm7 = vcmask 1046534   ;;  %vm3265_vm8 = vcmask 1047559   ;;  %vm3576_vm9 = vcmask 261120   ;;  %s3742_s20 = sshll.u32 %s351_s12, 6 }
  0x19   : > { %v4083_v3 = vld [vmem:[%s4570_s18] sm:$0xff]   ;;  %v4084_v4 = vld [vmem:[%s4570_s18 + $0x8] sm:$0xff]   ;;  %v4085_v5 = vld [vmem:[%s4570_s18 + $0x10] sm:$0xff]   ;;  %v4622_v21 = vrot.slane %v4618_v20, %v436_v19  ;;  %v4696_v47 = vrot.slane %v4618_v20, %v432_v45  ;;  %s353_s26 = scalar_lea.vmem [#allocation2], %s3742_s20  ;;  %s3849_s27 = sshll.u32 %s4531_s17, 10 }
  0x1a   : > { %3779 = vmatmul.mubr.msk.bf16.vlgmr.msra.gmra.mxu0 %vm610_vm0, %v4083_v3  ;;  %v4102_v6 = vld [vmem:[%s4570_s18 + $0xd8] sm:$0xff]   ;;  %v4104_v8 = vld [vmem:[%s4570_s18 + $0xe0] sm:$0xff]   ;;  %v4106_v10 = vld [vmem:[%s4570_s18 + $0xe8] sm:$0xff]   ;;  %s3676_s28 = sshll.u32 %s353_s26, 4  ;;  %s5959_s17 = scalar_lea.sflag [#allocation3], %s351_s12  ;;  %s5955_s28 = int_to_ptr.vmem [resolvable:$true] %s3676_s28 }
  0x1b   : > { %749 = vmatprep.mubr.bf16.mxu0 %v4451_v2  ;;  %v4086_v7 = vld [vmem:[%s4570_s18 + $0x18] sm:$0xff]   ;;  %3806 = vmatmul.mubr.msk.bf16.vlgmr.msra.gmra.mxu1 %vm610_vm0, %v4102_v6  ;;  %v4087_v9 = vld [vmem:[%s4570_s18 + $0x20] sm:$0xff]   ;;  %v4088_v11 = vld [vmem:[%s4570_s18 + $0x28] sm:$0xff]   ;;  %s4389_s11 = scalar_lea.vmem %s5955_s28, 1024  ;;  %s4452_s20 = smov [#allocation2]  }
  0x1c   : > { %1019 = vmatprep.mubr.bf16.mxu1 %v4451_v2  ;;  %v4108_v12 = vld [vmem:[%s4570_s18 + $0xf0] sm:$0xff]   ;;  %v4110_v14 = vld [vmem:[%s4570_s18 + $0xf8] sm:$0xff]   ;;  %v4091_v17 = vld [vmem:[%s4570_s18 + $0x40] sm:$0xff]   ;;  %3913 = vmatpush3.bf16.msra.mxu1 %v4115_v27  ;;  %p4390_p11 = scmp.ne.s32.totalorder %s5955_s28, %s4389_s11  ;;  %s4393_s21 = sshll.u32 %s4452_s20, 4  ;;  %s4394_s21 = int_to_ptr.vmem [resolvable:$false] %s4393_s21 }
  0x1d   : > { %v4089_v13 = vld [vmem:[%s4570_s18 + $0x30] sm:$0xff]   ;;  %v4090_v15 = vld [vmem:[%s4570_s18 + $0x38] sm:$0xff]   ;;  %v4092_v22 = vld [vmem:[%s4570_s18 + $0x48] sm:$0xff]   ;;  %3914 = vmatprep.subr.bf16.mxu1 %v4116_v29  ;;  %s4395_s25 = scalar_lea.vmem %s4394_s21, 2048  ;;  %p4396_p0 = scmp.lt.s32.totalorder %s5955_s28, %s4394_s21 }
  0x1e   : > { %v4093_v23 = vld [vmem:[%s4570_s18 + $0x50] sm:$0xff]   ;;  %v4094_v24 = vld [vmem:[%s4570_s18 + $0x58] sm:$0xff]   ;;  %v4095_v25 = vld [vmem:[%s4570_s18 + $0x60] sm:$0xff]   ;;  %p4391_p12 = pnand %p4390_p11, %p4548_p5  ;;  %p4397_p1 = scmp.lt.s32.totalorder %s4395_s25, %s4389_s11 }
  0x1f   : > { %v4096_v26 = vld [vmem:[%s4570_s18 + $0x68] sm:$0xff]   ;;  %v4097_v28 = vld [vmem:[%s4570_s18 + $0x70] sm:$0xff]   ;;  %v4098_v31 = vld [vmem:[%s4570_s18 + $0x78] sm:$0xff]  }
  0x20   : > { %3915 = vmatpush3.bf16.msra.mxu1 %v4116_v29  ;;  %v4099_v34 = vld [vmem:[%s4570_s18 + $0x80] sm:$0xff]   ;;  %v4100_v37 = vld [vmem:[%s4570_s18 + $0x88] sm:$0xff]   ;;  %v4101_v39 = vld [vmem:[%s4570_s18 + $0x90] sm:$0xff]   ;;  %p4392_p13 = pneg %p4391_p12  ;;  %p4398_p2 = por %p4397_p1, %p4396_p0 }
  0x21   : > { %3916 = vmatprep.subr.bf16.mxu1 %v4117_v30  ;;  %v4103_v40 = vld [vmem:[%s4570_s18 + $0x98] sm:$0xff]   ;;  %v4105_v41 = vld [vmem:[%s4570_s18 + $0xa0] sm:$0xff]   ;;  %v4107_v42 = vld [vmem:[%s4570_s18 + $0xa8] sm:$0xff]  }
  0x22   : > { %3780 = vmatmul.mubr.msk.bf16.gmra.mxu0 %vm610_vm0, %v4084_v4  ;;  %v4109_v43 = vld [vmem:[%s4570_s18 + $0xb0] sm:$0xff]   ;;  %v4111_v44 = vld [vmem:[%s4570_s18 + $0xb8] sm:$0xff]   ;;  %v4112_v46 = vld [vmem:[%s4570_s18 + $0xc0] sm:$0xff]   ;;  %p4399_p3 = pnand %p4398_p2, %p4392_p13 }
  0x23   : > { %759 = vmatprep.mubr.bf16.mxu0 %v4451_v2  ;;  %3807 = vmatmul.mubr.msk.bf16.gmra.mxu1 %vm610_vm0, %v4104_v8  ;;  %v4113_v53 = vld [vmem:[%s4570_s18 + $0xc8] sm:$0xff]  }
  0x24   : > { %1029 = vmatprep.mubr.bf16.mxu1 %v4451_v2  ;;  %3917 = vmatpush3.bf16.msra.mxu1 %v4117_v30 }
  0x25   : > { %3918 = vmatprep.subr.bf16.mxu1 %v4118_v32 }
  0x28   : > { %3919 = vmatpush3.bf16.msra.mxu1 %v4118_v32 }
  0x29   : > { %3920 = vmatprep.subr.bf16.mxu1 %v4119_v33 }
  0x2a   : > { %3781 = vmatmul.mubr.msk.bf16.gmra.mxu0 %vm610_vm0, %v4085_v5  ;;  %v4114_v5 = vld [vmem:[%s4570_s18 + $0xd0] sm:$0xff]   ;;  %s5953_s18 = scalar_lea.hbm %s6009_s10, %s3849_s27 }
  0x2b   : > { %769 = vmatprep.mubr.bf16.mxu0 %v4451_v2  ;;  %3808 = vmatmul.mubr.msk.bf16.gmra.mxu1 %vm610_vm0, %v4106_v10 }
  0x2c   : > { %1039 = vmatprep.mubr.bf16.mxu1 %v4451_v2  ;;  %3921 = vmatpush3.bf16.msra.mxu1 %v4119_v33 }
  0x2d   : > { %3922 = vmatprep.subr.bf16.mxu1 %v4120_v35 }
  0x30   : > { %3923 = vmatpush3.bf16.msra.mxu1 %v4120_v35 }
  0x31   : > { %3924 = vmatprep.subr.bf16.mxu1 %v4121_v36 }
  0x32   : > { %3782 = vmatmul.mubr.msk.bf16.gmra.mxu0 %vm610_vm0, %v4086_v7 }
  0x33   : > { %779 = vmatprep.mubr.bf16.mxu0 %v4451_v2  ;;  %3809 = vmatmul.mubr.msk.bf16.gmra.mxu1 %vm610_vm0, %v4108_v12 }
  0x34   : > { %1049 = vmatprep.mubr.bf16.mxu1 %v4451_v2  ;;  %3925 = vmatpush3.bf16.msra.mxu1 %v4121_v36 }
  0x35   : > { %3926 = vmatprep.subr.bf16.mxu1 %v4122_v38 }
  0x38   : > { %3927 = vmatpush3.bf16.msra.mxu1 %v4122_v38 }
  0x3a   : > { %3783 = vmatmul.mubr.msk.bf16.gmra.mxu0 %vm610_vm0, %v4087_v9 }
  0x3b   : > { %789 = vmatprep.mubr.bf16.mxu0 %v4451_v2  ;;  %3810 = vmatmul.mubr.msk.bf16.gmra.mxu1 %vm610_vm0, %v4110_v14 }
  0x42   : > { %3784 = vmatmul.mubr.msk.bf16.gmra.mxu0 %vm610_vm0, %v4088_v11 }
  0x43   : > { %799 = vmatprep.mubr.bf16.mxu0 %v4451_v2 }
  0x4a   : > { %3785 = vmatmul.mubr.msk.bf16.gmra.mxu0 %vm610_vm0, %v4089_v13 }
  0x4b   : > { %809 = vmatprep.mubr.bf16.mxu0 %v4451_v2 }
  0x52   : > { %3786 = vmatmul.mubr.msk.bf16.gmra.mxu0 %vm610_vm0, %v4090_v15 }
  0x53   : > { %819 = vmatprep.mubr.bf16.mxu0 %v4451_v2 }
  0x5a   : > { %3787 = vmatmul.mubr.msk.bf16.gmra.mxu0 %vm610_vm0, %v4091_v17 }
  0x5b   : > { %829 = vmatprep.mubr.bf16.mxu0 %v4451_v2 }
  0x62   : > { %3788 = vmatmul.mubr.msk.bf16.gmra.mxu0 %vm610_vm0, %v4092_v22 }
  0x63   : > { %839 = vmatprep.mubr.bf16.mxu0 %v4451_v2 }
  0x6a   : > { %3789 = vmatmul.mubr.msk.bf16.gmra.mxu0 %vm610_vm0, %v4093_v23 }
  0x6b   : > { %849 = vmatprep.mubr.bf16.mxu0 %v4451_v2 }
  0x72   : > { %3790 = vmatmul.mubr.msk.bf16.gmra.mxu0 %vm610_vm0, %v4094_v24 }
  0x73   : > { %859 = vmatprep.mubr.bf16.mxu0 %v4451_v2 }
  0x7a   : > { %3791 = vmatmul.mubr.msk.bf16.gmra.mxu0 %vm610_vm0, %v4095_v25 }
  0x7b   : > { %869 = vmatprep.mubr.bf16.mxu0 %v4451_v2 }
  0x82   : > { %3792 = vmatmul.mubr.msk.bf16.gmra.mxu0 %vm610_vm0, %v4096_v26 }
  0x83   : > { %879 = vmatprep.mubr.bf16.mxu0 %v4451_v2 }
  0x8a   : > { %3793 = vmatmul.mubr.msk.bf16.gmra.mxu0 %vm610_vm0, %v4097_v28 }
  0x8b   : > { %889 = vmatprep.mubr.bf16.mxu0 %v4451_v2 }
  0x92   : > { %3794 = vmatmul.mubr.msk.bf16.gmra.mxu0 %vm610_vm0, %v4098_v31 }
  0x93   : > { %899 = vmatprep.mubr.bf16.mxu0 %v4451_v2 }
  0x9a   : > { %3795 = vmatmul.mubr.msk.bf16.gmra.mxu0 %vm610_vm0, %v4099_v34 }
  0x9b   : > { %909 = vmatprep.mubr.bf16.mxu0 %v4451_v2 }
  0xa2   : > { %3796 = vmatmul.mubr.msk.bf16.gmra.mxu0 %vm610_vm0, %v4100_v37 }
  0xa3   : > { %919 = vmatprep.mubr.bf16.mxu0 %v4451_v2 }
  0xaa   : > { %3797 = vmatmul.mubr.msk.bf16.gmra.mxu0 %vm610_vm0, %v4101_v39 }
  0xab   : > { %929 = vmatprep.mubr.bf16.mxu0 %v4451_v2 }
  0xb2   : > { %3798 = vmatmul.mubr.msk.bf16.gmra.mxu0 %vm610_vm0, %v4103_v40 }
  0xb3   : > { %939 = vmatprep.mubr.bf16.mxu0 %v4451_v2 }
  0xba   : > { %3799 = vmatmul.mubr.msk.bf16.gmra.mxu0 %vm610_vm0, %v4105_v41 }
  0xbb   : > { %949 = vmatprep.mubr.bf16.mxu0 %v4451_v2 }
  0xc2   : > { %3800 = vmatmul.mubr.msk.bf16.gmra.mxu0 %vm610_vm0, %v4107_v42 }
  0xc3   : > { %959 = vmatprep.mubr.bf16.mxu0 %v4451_v2 }
  0xca   : > { %3801 = vmatmul.mubr.msk.bf16.gmra.mxu0 %vm610_vm0, %v4109_v43 }
  0xcb   : > { %969 = vmatprep.mubr.bf16.mxu0 %v4451_v2 }
  0xd2   : > { %3802 = vmatmul.mubr.msk.bf16.gmra.mxu0 %vm610_vm0, %v4111_v44 }
  0xd3   : > { %979 = vmatprep.mubr.bf16.mxu0 %v4451_v2 }
  0xda   : > { %v741_v48 = vpop.f32.mrf.mxu0  ;;  %3803 = vmatmul.mubr.msk.bf16.gmra.mxu0 %vm610_vm0, %v4112_v46 }
  0xdb   : > { %v742_v49 = vadd.f32 %v741_v48, %v4696_v47  ;;  %989 = vmatprep.mubr.bf16.mxu0 %v4451_v2 }
  0xdc   : > { %v4701_v50 = vpop.f32.mrf.mxu0 }
  0xdd   : > { %v1060_v51 = vrot.slane %v742_v49, 4 }
  0xde   : > { %v745_v52 = vpop.f32.mrf.mxu0 }
  0xdf   : > { %v1061_v54 = vmax.f32 %v742_v49, %v1060_v51  ;;  %v746_v55 = vadd.f32 %v745_v52, %v4696_v47 }
  0xe0   : > { %v4705_v56 = vpop.f32.mrf.mxu0 }
  0xe1   : > { %v1062_v57 = vrot.slane %v1061_v54, 2  ;;  %v1066_v58 = vrot.slane %v746_v55, 4 }
  0xe2   : > { %v751_v59 = vpop.f32.mrf.mxu0  ;;  %3804 = vmatmul.mubr.msk.bf16.gmra.mxu0 %vm610_vm0, %v4113_v53 }
  0xe3   : > { %v1063_v60 = vmax.f32 %v1061_v54, %v1062_v57  ;;  %v1067_v61 = vmax.f32 %v746_v55, %v1066_v58  ;;  %v752_v62 = vadd.f32 %v751_v59, %v4696_v47  ;;  %999 = vmatprep.mubr.bf16.mxu0 %v4451_v2 }
  0xe4   : > { %v4710_v63 = vpop.f32.mrf.mxu0 }
  0xe5   : > { %v1064_v0 = vrot.slane %v1063_v60, 1  ;;  %v1068_v1 = vrot.slane %v1067_v61, 2  ;;  %v1072_v3 = vrot.slane %v752_v62, 4 }
  0xe6   : > { %v755_v4 = vpop.f32.mrf.mxu0 }
  0xe7   : > { %v1065_v6 = vmax.f32 %v1063_v60, %v1064_v0  ;;  %v1069_v7 = vmax.f32 %v1067_v61, %v1068_v1  ;;  %v1073_v8 = vmax.f32 %v752_v62, %v1072_v3  ;;  %v756_v9 = vadd.f32 %v755_v4, %v4696_v47 }
  0xe8   : > { %v4714_v10 = vpop.f32.mrf.mxu0 }
  0xe9   : > { %v1444_v11 = vsub.f32 %v742_v49, %v1065_v6  ;;  %v1070_v12 = vrot.slane %v1069_v7, 1  ;;  %v1074_v13 = vrot.slane %v1073_v8, 2  ;;  %v1078_v14 = vrot.slane %v756_v9, 4 }
  0xea   : > { %v761_v15 = vpop.f32.mrf.mxu0  ;;  %3805 = vmatmul.mubr.msk.bf16.gmra.mxu0 %vm610_vm0, %v4114_v5 }
  0xeb   : > { %v1508_v2 = vmul.f32 1.442695, %v1444_v11  ;;  %v1071_v16 = vmax.f32 %v1069_v7, %v1070_v12  ;;  %v1075_v17 = vmax.f32 %v1073_v8, %v1074_v13  ;;  %v1079_v18 = vmax.f32 %v756_v9, %v1078_v14 }
  0xec   : > { %v762_v19 = vadd.f32 %v761_v15, %v4696_v47  ;;  %v4718_v20 = vpop.f32.mrf.mxu0 }
  0xed   : > { %4133 = vpow2.f32 %v1508_v2  ;;  %v1445_v22 = vsub.f32 %v746_v55, %v1071_v16  ;;  %v1076_v23 = vrot.slane %v1075_v17, 1  ;;  %v1080_v24 = vrot.slane %v1079_v18, 2 }
  0xee   : > { %v1084_v25 = vrot.slane %v762_v19, 4  ;;  %v765_v26 = vpop.f32.mrf.mxu0 }
  0xef   : > { %v1510_v27 = vmul.f32 1.442695, %v1445_v22  ;;  %v1077_v28 = vmax.f32 %v1075_v17, %v1076_v23  ;;  %v1081_v29 = vmax.f32 %v1079_v18, %v1080_v24  ;;  %v766_v30 = vadd.f32 %v765_v26, %v4696_v47 }
  0xf0   : > { %v1085_v31 = vmax.f32 %v762_v19, %v1084_v25  ;;  %v4721_v32 = vpop.f32.mrf.mxu0 }
  0xf1   : > { %4135 = vpow2.f32 %v1510_v27  ;;  %v1446_v33 = vsub.f32 %v752_v62, %v1077_v28  ;;  %v1082_v34 = vrot.slane %v1081_v29, 1  ;;  %v1090_v35 = vrot.slane %v766_v30, 4 }
  0xf2   : > { %v1086_v36 = vrot.slane %v1085_v31, 2  ;;  %v771_v37 = vpop.f32.mrf.mxu0 }
  0xf3   : > { %v1512_v38 = vmul.f32 1.442695, %v1446_v33  ;;  %v1083_v39 = vmax.f32 %v1081_v29, %v1082_v34  ;;  %v1091_v40 = vmax.f32 %v766_v30, %v1090_v35  ;;  %v4724_v41 = vadd.f32 %v771_v37, %v4696_v47 }
  0xf4   : > { %v1087_v42 = vmax.f32 %v1085_v31, %v1086_v36  ;;  %v4726_v43 = vpop.f32.mrf.mxu0 }
  0xf5   : > { %4137 = vpow2.f32 %v1512_v38  ;;  %v1447_v44 = vsub.f32 %v756_v9, %v1083_v39  ;;  %v1092_v45 = vrot.slane %v1091_v40, 2  ;;  %v1096_v46 = vrot.slane %v4724_v41, 4 }
  0xf6   : > { %v1088_v48 = vrot.slane %v1087_v42, 1  ;;  %v775_v49 = vpop.f32.mrf.mxu0 }
  0xf7   : > { %v1093_v51 = vmax.f32 %v1091_v40, %v1092_v45  ;;  %v1097_v52 = vmax.f32 %v4724_v41, %v1096_v46  ;;  %v4731_v53 = vadd.f32 %v775_v49, %v4696_v47  ;;  %v1514_v54 = vmul.f32 1.442695, %v1447_v44 }
  0xf8   : > { %v1089_v55 = vmax.f32 %v1087_v42, %v1088_v48  ;;  %v4733_v57 = vpop.f32.mrf.mxu0 }
  0xf9   : > { %v1094_v58 = vrot.slane %v1093_v51, 1  ;;  %v1098_v59 = vrot.slane %v1097_v52, 2  ;;  %v1102_v60 = vrot.slane %v4731_v53, 4  ;;  %4139 = vpow2.f32 %v1514_v54 }
  0xfa   : > { %v4736_v61 = vpop.eup %4133  ;;  %v1448_v62 = vsub.f32 %v762_v19, %v1089_v55  ;;  %v781_v0 = vpop.f32.mrf.mxu0 }
  0xfb   : > { %v1095_v1 = vmax.f32 %v1093_v51, %v1094_v58  ;;  %v1099_v3 = vmax.f32 %v1097_v52, %v1098_v59  ;;  %v1103_v4 = vmax.f32 %v4731_v53, %v1102_v60  ;;  %v4740_v5 = vadd.f32 %v781_v0, %v4696_v47 }
  0xfc   : > { %v1516_v6 = vmul.f32 1.442695, %v1448_v62  ;;  %v4742_v7 = vpop.f32.mrf.mxu0  ;;  %v1636_v8 = vrot.slane %v4736_v61, 4 }
  0xfd   : > { %v1104_v9 = vrot.slane %v1103_v4, 2  ;;  %v1108_v11 = vrot.slane %v4740_v5, 4  ;;  %v1449_v15 = vsub.f32 %v766_v30, %v1095_v1  ;;  %v1100_v2 = vrot.slane %v1099_v3, 1 }
  0xfe   : > { %v4746_v12 = vpop.eup %4135  ;;  %v785_v13 = vpop.f32.mrf.mxu0  ;;  %v1637_v14 = vadd.f32 %v4736_v61, %v1636_v8  ;;  %4141 = vpow2.f32 %v1516_v6 }
  0xff   : > { %v1105_v16 = vmax.f32 %v1103_v4, %v1104_v9  ;;  %v4750_v17 = vadd.f32 %v785_v13, %v4696_v47  ;;  %v1642_v22 = vrot.slane %v4746_v12, 4  ;;  %v1109_v24 = vmax.f32 %v4740_v5, %v1108_v11 }
 0x100   : > { %v4752_v18 = vpop.f32.mrf.mxu0  ;;  %v1638_v19 = vrot.slane %v1637_v14, 2  ;;  %v1518_v30 = vmul.f32 1.442695, %v1449_v15  ;;  %v1101_v31 = vmax.f32 %v1099_v3, %v1100_v2 }
 0x101   : > { %v1106_v23 = vrot.slane %v1105_v16, 1  ;;  %v1114_v26 = vrot.slane %v4750_v17, 4  ;;  %v1643_v29 = vadd.f32 %v4746_v12, %v1642_v22  ;;  %v1110_v40 = vrot.slane %v1109_v24, 2 }
 0x102   : > { %v4756_v25 = vpop.eup %4137  ;;  %v791_v27 = vpop.f32.mrf.mxu0  ;;  %v1639_v28 = vadd.f32 %v1638_v19, %v1637_v14  ;;  %v1450_v48 = vsub.f32 %v4724_v41, %v1101_v31  ;;  %4143 = vpow2.f32 %v1518_v30 }
 0x103   : > { %v4761_v33 = vadd.f32 %v791_v27, %v4696_v47  ;;  %v1115_v34 = vmax.f32 %v4750_v17, %v1114_v26  ;;  %v1644_v37 = vrot.slane %v1643_v29, 2  ;;  %v1648_v38 = vrot.slane %v4756_v25, 4 }
 0x104   : > { %v4764_v35 = vpop.f32.mrf.mxu0  ;;  %v1640_v36 = vrot.slane %v1639_v28, 1  ;;  %v1107_v39 = vmax.f32 %v1105_v16, %v1106_v23  ;;  %v1111_v60 = vmax.f32 %v1109_v24, %v1110_v40  ;;  %v1520_v3 = vmul.f32 1.442695, %v1450_v48 }
 0x105   : > { %v1120_v42 = vrot.slane %v4761_v33, 4  ;;  %v1645_v46 = vadd.f32 %v1644_v37, %v1643_v29  ;;  %v1116_v49 = vrot.slane %v1115_v34, 2  ;;  %v1649_v55 = vadd.f32 %v4756_v25, %v1648_v38 }
 0x106   : > { %v795_v44 = vpop.f32.mrf.mxu0  ;;  %v1641_v45 = vadd.f32 %v1640_v36, %v1639_v28  ;;  %v4775_v58 = vpop.eup %4139  ;;  %v1451_v59 = vsub.f32 %v4731_v53, %v1107_v39  ;;  %v1112_v15 = vrot.slane %v1111_v60, 1 }
 0x107   : > { %v4770_v51 = vadd.f32 %v795_v44, %v4696_v47  ;;  %v1646_v54 = vrot.slane %v1645_v46, 1  ;;  %v1121_v62 = vmax.f32 %v4761_v33, %v1120_v42  ;;  %v1650_v41 = vrot.slane %v1649_v55, 2 }
 0x108   : > { %v4772_v52 = vpop.f32.mrf.mxu0  ;;  %4145 = vrcp.f32 %v1641_v45  ;;  %v1117_v4 = vmax.f32 %v1115_v34, %v1116_v49  ;;  %v1654_v53 = vrot.slane %v4775_v58, 4  ;;  %v1522_v14 = vmul.f32 1.442695, %v1451_v59 }
 0x109   : > { %v1647_v1 = vadd.f32 %v1646_v54, %v1645_v46  ;;  %v1126_v6 = vrot.slane %v4770_v51, 4  ;;  %v1651_v11 = vadd.f32 %v1650_v41, %v1649_v55  ;;  %v1122_v2 = vrot.slane %v1121_v62, 2 }
 0x10a   : > { %v801_v0 = vpop.f32.mrf.mxu0  ;;  %v1655_v22 = vadd.f32 %v4775_v58, %v1654_v53  ;;  %v1118_v23 = vrot.slane %v1117_v4, 1  ;;  %v1113_v30 = vmax.f32 %v1111_v60, %v1112_v15 }
 0x10b   : > { %v4781_v8 = vadd.f32 %v801_v0, %v4696_v47  ;;  %4147 = vrcp.f32 %v1647_v1  ;;  %v4786_v13 = vpop.eup %4141  ;;  %v1652_v19 = vrot.slane %v1651_v11, 1  ;;  %v1127_v24 = vmax.f32 %v4770_v51, %v1126_v6 }
 0x10c   : > { %v4783_v9 = vpop.f32.mrf.mxu0  ;;  %4149 = vpow2.f32 %v1520_v3  ;;  %v1656_v28 = vrot.slane %v1655_v22, 2  ;;  %v1660_v29 = vrot.slane %v4786_v13, 4  ;;  %v1123_v31 = vmax.f32 %v1121_v62, %v1122_v2 }
 0x10d   : > { %v1132_v26 = vrot.slane %v4781_v8, 4  ;;  %4151 = vpow2.f32 %v1522_v14  ;;  %v1653_v36 = vadd.f32 %v1652_v19, %v1651_v11  ;;  %v1119_v39 = vmax.f32 %v1117_v4, %v1118_v23 }
 0x10e   : > { %v805_v16 = vpop.f32.mrf.mxu0  ;;  %v1657_v37 = vadd.f32 %v1656_v28, %v1655_v22  ;;  %v1661_v38 = vadd.f32 %v4786_v13, %v1660_v29  ;;  %v1128_v42 = vrot.slane %v1127_v24, 2  ;;  %v1452_v55 = vsub.f32 %v4740_v5, %v1113_v30 }
 0x10f   : > { %v4796_v40 = vadd.f32 %v805_v16, %v4696_v47  ;;  %v1133_v44 = vmax.f32 %v4781_v8, %v1132_v26  ;;  %v4801_v48 = vpop.eup %4143  ;;  %v1124_v59 = vrot.slane %v1123_v31, 1  ;;  %4153 = vrcp.f32 %v1653_v36 }
 0x110   : > { %v4791_v27 = vpop.f32.mrf.mxu0  ;;  %v1658_v46 = vrot.slane %v1657_v37, 1  ;;  %v1662_v54 = vrot.slane %v1661_v38, 2  ;;  %v1453_v1 = vsub.f32 %v4750_v17, %v1119_v39  ;;  %v1129_v3 = vmax.f32 %v1127_v24, %v1128_v42 }
 0x111   : > { %v1138_v41 = vrot.slane %v4796_v40, 4  ;;  %v1134_v4 = vrot.slane %v1133_v44, 2  ;;  %v1666_v11 = vrot.slane %v4801_v48, 4  ;;  %v1524_v15 = vmul.f32 1.442695, %v1452_v55 }
 0x112   : > { %v811_v34 = vpop.f32.mrf.mxu0  ;;  %v1659_v62 = vadd.f32 %v1658_v46, %v1657_v37  ;;  %v1663_v5 = vadd.f32 %v1662_v54, %v1661_v38  ;;  %v1125_v2 = vmax.f32 %v1123_v31, %v1124_v59  ;;  %v1526_v22 = vmul.f32 1.442695, %v1453_v1 }
 0x113   : > { %v4804_v49 = vadd.f32 %v811_v34, %v4696_v47  ;;  %v1139_v23 = vmax.f32 %v4796_v40, %v1138_v41  ;;  %v1130_v28 = vrot.slane %v1129_v3, 1  ;;  %v1135_v29 = vmax.f32 %v1133_v44, %v1134_v4 }
 0x114   : > { %v4799_v45 = vpop.f32.mrf.mxu0  ;;  %4155 = vrcp.f32 %v1659_v62  ;;  %v1667_v31 = vadd.f32 %v4801_v48, %v1666_v11 }
 0x115   : > { %6012 = vst [vmem:[#allocation5_spill] sm:$0xff] %v4799_v45  ;;  %v4146_v0 = vpop.eup %4145  ;;  %v1144_v14 = vrot.slane %v4804_v49, 4  ;;  %4157 = vpow2.f32 %v1524_v15  ;;  %v1140_v42 = vrot.slane %v1139_v23, 2  ;;  %v1131_v54 = vmax.f32 %v1129_v3, %v1130_v28 }
 0x116   : > { %v815_v60 = vpop.f32.mrf.mxu0  ;;  %v2084_v19 = vmul.f32 %v4146_v0, %v4736_v61  ;;  %v1664_v61 = vrot.slane %v1663_v5, 1  ;;  %v1668_v39 = vrot.slane %v1667_v31, 2  ;;  %4159 = vpow2.f32 %v1526_v22 }
 0x117   : > { %v4817_v24 = vadd.f32 %v815_v60, %v4696_v47  ;;  %v1145_v36 = vmax.f32 %v4804_v49, %v1144_v14  ;;  %v1136_v55 = vrot.slane %v1135_v29, 1  ;;  %v1141_v15 = vmax.f32 %v1139_v23, %v1140_v42 }
 0x118   : > { %v4809_v6 = vpop.f32.mrf.mxu0  ;;  %v4148_v53 = vpop.eup %4147  ;;  %v1669_v60 = vadd.f32 %v1668_v39, %v1667_v31  ;;  %v1665_v1 = vadd.f32 %v1664_v61, %v1663_v5 }
 0x119   : > { %6013 = vst [vmem:[#allocation6_spill] sm:$0xff] %v4809_v6  ;;  %v2085_v17 = vmul.f32 %v4148_v53, %v4746_v12  ;;  %v4819_v26 = vpop.eup %4149  ;;  %v1454_v12 = vsub.f32 %v4761_v33, %v1125_v2  ;;  %v1150_v44 = vrot.slane %v4817_v24, 4  ;;  %v1146_v0 = vrot.slane %v1145_v36, 2 }
 0x11a   : > { %v821_v16 = vpop.f32.mrf.mxu0  ;;  %v4825_v37 = vpop.eup %4151  ;;  %v1672_v62 = vrot.slane %v4819_v26, 4  ;;  %v1670_v4 = vrot.slane %v1669_v60, 1  ;;  %4161 = vrcp.f32 %v1665_v1  ;;  %v1142_v39 = vrot.slane %v1141_v15, 1 }
 0x11b   : > { %v2148_v34 = vpack.c.bf16 %v2085_v17, %v2084_v19  ;;  %v4830_v46 = vadd.f32 %v821_v16, %v4696_v47  ;;  %v1678_v11 = vrot.slane %v4825_v37, 4  ;;  %v1528_v14 = vmul.f32 1.442695, %v1454_v12 }
 0x11c   : > { %v4821_v30 = vpop.f32.mrf.mxu0  ;;  %v4154_v53 = vpop.eup %4153  ;;  %v1151_v3 = vmax.f32 %v4817_v24, %v1150_v44  ;;  %v1455_v16 = vsub.f32 %v4770_v51, %v1131_v54  ;;  %v1137_v19 = vmax.f32 %v1135_v29, %v1136_v55  ;;  %v1671_v22 = vadd.f32 %v1670_v4, %v1669_v60 }
 0x11d   : > { %6014 = vst [vmem:[#allocation7_spill] sm:$0xff] %v4821_v30  ;;  %3928 = vmatprep.mubr.bf16.mxu1 %v2148_v34  ;;  %v1156_v2 = vrot.slane %v4830_v46, 4  ;;  %v1673_v28 = vadd.f32 %v4819_v26, %v1672_v62  ;;  %v1147_v34 = vmax.f32 %v1145_v36, %v1146_v0  ;;  %v2086_v23 = vmul.f32 %v4154_v53, %v4756_v25 }
 0x11e   : > { %v825_v38 = vpop.f32.mrf.mxu0  ;;  %v1679_v29 = vadd.f32 %v4825_v37, %v1678_v11  ;;  %4163 = vpow2.f32 %v1528_v14  ;;  %v1152_v42 = vrot.slane %v1151_v3, 2  ;;  %v1530_v25 = vmul.f32 1.442695, %v1455_v16 }
 0x11f   : > { %v4836_v33 = vadd.f32 %v825_v38, %v4696_v47  ;;  %v1674_v51 = vrot.slane %v1673_v28, 2  ;;  %v1157_v44 = vmax.f32 %v4830_v46, %v1156_v2  ;;  %4165 = vrcp.f32 %v1671_v22 }
 0x120   : > { %v4832_v59 = vpop.f32.mrf.mxu0  ;;  %v1148_v62 = vrot.slane %v1147_v34, 1  ;;  %v1456_v1 = vsub.f32 %v4781_v8, %v1137_v19  ;;  %v1680_v53 = vrot.slane %v1679_v29, 2  ;;  %v1143_v2 = vmax.f32 %v1141_v15, %v1142_v39 }
 0x121   : > { %6015 = vst [vmem:[#allocation8_spill] sm:$0xff] %v4832_v59  ;;  %v4156_v5 = vpop.eup %4155  ;;  %v1162_v31 = vrot.slane %v4836_v33, 4  ;;  %v1675_v60 = vadd.f32 %v1674_v51, %v1673_v28  ;;  %v1158_v22 = vrot.slane %v1157_v44, 2  ;;  %4167 = vpow2.f32 %v1530_v25 }
 0x122   : > { %v831_v41 = vpop.f32.mrf.mxu0  ;;  %v2087_v12 = vmul.f32 %v4156_v5, %v4775_v58  ;;  %v4862_v14 = vpop.eup %4157  ;;  %v1153_v5 = vmax.f32 %v1151_v3, %v1152_v42  ;;  %v1532_v51 = vmul.f32 1.442695, %v1456_v1  ;;  %v1457_v39 = vsub.f32 %v4796_v40, %v1143_v2 }
 0x123   : > { %v4847_v61 = vadd.f32 %v831_v41, %v4696_v47  ;;  %v1163_v58 = vmax.f32 %v4836_v33, %v1162_v31  ;;  %v1676_v11 = vrot.slane %v1675_v60, 1  ;;  %v4864_v28 = vpop.eup %4159  ;;  %v1159_v59 = vmax.f32 %v1157_v44, %v1158_v22 }
 0x124   : > { %v4842_v17 = vpop.f32.mrf.mxu0  ;;  %v2149_v36 = vpack.c.bf16 %v2087_v12, %v2086_v23  ;;  %v1681_v23 = vadd.f32 %v1680_v53, %v1679_v29  ;;  %v1149_v12 = vmax.f32 %v1147_v34, %v1148_v62  ;;  %v1154_v42 = vrot.slane %v1153_v5, 1 }
 0x125   : > { %6016 = vst [vmem:[#allocation9_spill] sm:$0xff] %v4842_v17  ;;  %v1168_v0 = vrot.slane %v4847_v61, 4  ;;  %v1677_v31 = vadd.f32 %v1676_v11, %v1675_v60  ;;  %v1684_v62 = vrot.slane %v4862_v14, 4  ;;  %v1690_v25 = vrot.slane %v4864_v28, 4 }
 0x126   : > { %v835_v38 = vpop.f32.mrf.mxu0  ;;  %3929 = vmatmul.mubr.bf16.vlgmr.msra.gmra.mxu1 %v2149_v36  ;;  %v1682_v3 = vrot.slane %v1681_v23, 1  ;;  %v1155_v2 = vmax.f32 %v1153_v5, %v1154_v42 }
 0x127   : > { %v4854_v54 = vadd.f32 %v835_v38, %v4696_v47  ;;  %v1164_v38 = vrot.slane %v1163_v58, 2  ;;  %v1169_v8 = vmax.f32 %v4847_v61, %v1168_v0  ;;  %4169 = vrcp.f32 %v1677_v31  ;;  %v4162_v40 = vpop.eup %4161 }
 0x128   : > { %v4856_v55 = vpop.f32.mrf.mxu0  ;;  %v1683_v29 = vadd.f32 %v1682_v3, %v1681_v23  ;;  %v1458_v0 = vsub.f32 %v4804_v49, %v1149_v12  ;;  %v1685_v53 = vadd.f32 %v4862_v14, %v1684_v62  ;;  %v1534_v49 = vmul.f32 1.442695, %v1457_v39 }
 0x129   : > { %6017 = vst [vmem:[#allocation10_spill] sm:$0xff] %v4856_v55  ;;  %v1174_v41 = vrot.slane %v4854_v54, 4  ;;  %v1165_v1 = vmax.f32 %v1163_v58, %v1164_v38  ;;  %v1160_v58 = vrot.slane %v1159_v59, 1  ;;  %v2088_v42 = vmul.f32 %v4162_v40, %v4786_v13 }
 0x12a   : > { %v841_v4 = vpop.f32.mrf.mxu0  ;;  %4171 = vrcp.f32 %v1683_v29  ;;  %v1686_v38 = vrot.slane %v1685_v53, 2  ;;  %v1536_v29 = vmul.f32 1.442695, %v1458_v0  ;;  %v1459_v39 = vsub.f32 %v4817_v24, %v1155_v2 }
 0x12b   : > { %v4870_v19 = vadd.f32 %v841_v4, %v4696_v47  ;;  %v1175_v36 = vmax.f32 %v4854_v54, %v1174_v41  ;;  %v1170_v41 = vrot.slane %v1169_v8, 2  ;;  %4173 = vpow2.f32 %v1532_v51  ;;  %v4888_v23 = vpop.eup %4163 }
 0x12c   : > { %v4866_v16 = vpop.f32.mrf.mxu0  ;;  %v4166_v3 = vpop.eup %4165  ;;  %v1687_v55 = vadd.f32 %v1686_v38, %v1685_v53  ;;  %v1161_v0 = vmax.f32 %v1159_v59, %v1160_v58  ;;  %4175 = vpow2.f32 %v1534_v49 }
 0x12d   : > { %6018 = vst [vmem:[#allocation11_spill] sm:$0xff] %v4866_v16  ;;  %v1180_v4 = vrot.slane %v4870_v19, 4  ;;  %v1176_v11 = vrot.slane %v1175_v36, 2  ;;  %v1171_v62 = vmax.f32 %v1169_v8, %v1170_v41  ;;  %4177 = vpow2.f32 %v1536_v29 }
 0x12e   : > { %v845_v15 = vpop.f32.mrf.mxu0  ;;  %v4905_v38 = vpop.eup %4167 }
 0x12f   : > { %v4875_v60 = vadd.f32 %v845_v15, %v4696_v47  ;;  %v1691_v15 = vadd.f32 %v4864_v28, %v1690_v25  ;;  %v1181_v5 = vmax.f32 %v4870_v19, %v1180_v4  ;;  %v1177_v51 = vmax.f32 %v1175_v36, %v1176_v11 }
 0x130   : > { %v4877_v34 = vpop.f32.mrf.mxu0  ;;  %v1688_v36 = vrot.slane %v1687_v55, 1  ;;  %v1172_v40 = vrot.slane %v1171_v62, 1 }
 0x131   : > { %6019 = vst [vmem:[#allocation12_spill] sm:$0xff] %v4877_v34  ;;  %v1186_v22 = vrot.slane %v4875_v60, 4  ;;  %v1166_v34 = vrot.slane %v1165_v1, 1  ;;  %v1692_v4 = vrot.slane %v1691_v15, 2  ;;  %v1178_v11 = vrot.slane %v1177_v51, 1 }
 0x132   : > { %v851_v44 = vpop.f32.mrf.mxu0  ;;  %v1689_v24 = vadd.f32 %v1688_v36, %v1687_v55 }
 0x133   : > { %v4886_v31 = vadd.f32 %v851_v44, %v4696_v47  ;;  %v2089_v44 = vmul.f32 %v4166_v3, %v4801_v48  ;;  %v1167_v13 = vmax.f32 %v1165_v1, %v1166_v34  ;;  %v1182_v48 = vrot.slane %v1181_v5, 2 }
 0x134   : > { %v4890_v12 = vpop.f32.mrf.mxu0  ;;  %v1693_v2 = vadd.f32 %v1692_v4, %v1691_v15  ;;  %v1538_v3 = vmul.f32 1.442695, %v1459_v39  ;;  %v1460_v34 = vsub.f32 %v4830_v46, %v1161_v0  ;;  %v1173_v15 = vmax.f32 %v1171_v62, %v1172_v40 }
 0x135   : > { %6020 = vst [vmem:[#allocation13_spill] sm:$0xff] %v4890_v12  ;;  %v1187_v12 = vmax.f32 %v4875_v60, %v1186_v22  ;;  %v1192_v30 = vrot.slane %v4886_v31, 4  ;;  %v2150_v8 = vpack.c.bf16 %v2089_v44, %v2088_v42  ;;  %v1696_v22 = vrot.slane %v4888_v23, 4  ;;  %v4170_v44 = vpop.eup %4169 }
 0x136   : > { %v855_v16 = vpop.f32.mrf.mxu0  ;;  %v1694_v42 = vrot.slane %v1693_v2, 1  ;;  %v1461_v55 = vsub.f32 %v4836_v33, %v1167_v13  ;;  %v1179_v49 = vmax.f32 %v1177_v51, %v1178_v11  ;;  %4179 = vrcp.f32 %v1689_v24 }
 0x137   : > { %v4900_v25 = vadd.f32 %v855_v16, %v4696_v47  ;;  %3932 = vmatprep.mubr.bf16.mxu1 %v2150_v8  ;;  %v1188_v16 = vrot.slane %v1187_v12, 2  ;;  %v1193_v59 = vmax.f32 %v4886_v31, %v1192_v30  ;;  %v1183_v8 = vmax.f32 %v1181_v5, %v1182_v48  ;;  %v4172_v39 = vpop.eup %4171 }
 0x138   : > { %v4902_v41 = vpop.f32.mrf.mxu0  ;;  %v1695_v4 = vadd.f32 %v1694_v42, %v1693_v2  ;;  %v1697_v29 = vadd.f32 %v4888_v23, %v1696_v22  ;;  %v4921_v33 = vpop.eup %4173  ;;  %v2090_v62 = vmul.f32 %v4170_v44, %v4819_v26  ;;  %v2091_v5 = vmul.f32 %v4172_v39, %v4825_v37 }
 0x139   : > { %6021 = vst [vmem:[#allocation14_spill] sm:$0xff] %v4902_v41  ;;  %v1198_v58 = vrot.slane %v4900_v25, 4  ;;  %v1189_v41 = vmax.f32 %v1187_v12, %v1188_v16  ;;  %v1194_v46 = vrot.slane %v1193_v59, 2  ;;  %v1462_v40 = vsub.f32 %v4847_v61, %v1173_v15 }
 0x13a   : > { %v861_v53 = vpop.f32.mrf.mxu0  ;;  %4181 = vrcp.f32 %v1695_v4  ;;  %v1698_v13 = vrot.slane %v1697_v29, 2  ;;  %v1463_v11 = vsub.f32 %v4854_v54, %v1179_v49  ;;  %v2151_v24 = vpack.c.bf16 %v2091_v5, %v2090_v62 }
 0x13b   : > { %v4914_v36 = vadd.f32 %v861_v53, %v4696_v47  ;;  %v1199_v0 = vmax.f32 %v4900_v25, %v1198_v58  ;;  %4183 = vpow2.f32 %v1538_v3  ;;  %v1184_v53 = vrot.slane %v1183_v8, 1 }
 0x13c   : > { %v4910_v1 = vpop.f32.mrf.mxu0  ;;  %v1699_v22 = vadd.f32 %v1698_v13, %v1697_v29  ;;  %v1540_v26 = vmul.f32 1.442695, %v1460_v34  ;;  %v1190_v16 = vrot.slane %v1189_v41, 1  ;;  %v1542_v42 = vmul.f32 1.442695, %v1461_v55  ;;  %3933 = vmatmul.mubr.bf16.gmra.mxu1 %v2151_v24  ;;  %v4943_v13 = vpop.eup %4175 }
 0x13d   : > { %6022 = vst [vmem:[#allocation15_spill] sm:$0xff] %v4910_v1  ;;  %v1204_v12 = vrot.slane %v4914_v36, 4  ;;  %v1200_v37 = vrot.slane %v1199_v0, 2  ;;  %v1195_v3 = vmax.f32 %v1193_v59, %v1194_v46  ;;  %v1702_v44 = vrot.slane %v4905_v38, 4 }
 0x13e   : > { %v865_v30 = vpop.f32.mrf.mxu0  ;;  %v1708_v15 = vrot.slane %v4921_v33, 4  ;;  %v1544_v54 = vmul.f32 1.442695, %v1462_v40  ;;  %v1185_v29 = vmax.f32 %v1183_v8, %v1184_v53  ;;  %v1700_v39 = vrot.slane %v1699_v22, 1 }
 0x13f   : > { %v4919_v1 = vadd.f32 %v865_v30, %v4696_v47  ;;  %v1205_v49 = vmax.f32 %v4914_v36, %v1204_v12  ;;  %v1546_v30 = vmul.f32 1.442695, %v1463_v11  ;;  %v1703_v55 = vadd.f32 %v4905_v38, %v1702_v44  ;;  %v4948_v11 = vpop.eup %4177 }
 0x140   : > { %v4925_v51 = vpop.f32.mrf.mxu0  ;;  %4185 = vpow2.f32 %v1540_v26  ;;  %v1191_v46 = vmax.f32 %v1189_v41, %v1190_v16  ;;  %v1201_v62 = vmax.f32 %v1199_v0, %v1200_v37  ;;  %v1196_v40 = vrot.slane %v1195_v3, 1 }
 0x141   : > { %6023 = vst [vmem:[#allocation16_spill] sm:$0xff] %v4925_v51  ;;  %v1210_v48 = vrot.slane %v4919_v1, 4  ;;  %4187 = vpow2.f32 %v1542_v42  ;;  %v1704_v12 = vrot.slane %v1703_v55, 2  ;;  %v1206_v8 = vrot.slane %v1205_v49, 2 }
 0x142   : > { %v871_v2 = vpop.f32.mrf.mxu0  ;;  %4189 = vpow2.f32 %v1544_v54  ;;  %v1464_v41 = vsub.f32 %v4870_v19, %v1185_v29  ;;  %v1701_v0 = vadd.f32 %v1700_v39, %v1699_v22  ;;  %v1465_v42 = vsub.f32 %v4875_v60, %v1191_v46 }
 0x143   : > { %v4932_v58 = vadd.f32 %v871_v2, %v4696_v47  ;;  %v1211_v4 = vmax.f32 %v4919_v1, %v1210_v48  ;;  %v1709_v48 = vadd.f32 %v4921_v33, %v1708_v15  ;;  %4191 = vpow2.f32 %v1546_v30  ;;  %v4180_v37 = vpop.eup %4179 }
 0x144   : > { %v4934_v61 = vpop.f32.mrf.mxu0  ;;  %v1705_v26 = vadd.f32 %v1704_v12, %v1703_v55  ;;  %v1202_v44 = vrot.slane %v1201_v62, 1  ;;  %v1197_v54 = vmax.f32 %v1195_v3, %v1196_v40  ;;  %v1714_v30 = vrot.slane %v4943_v13, 4 }
 0x145   : > { %6024 = vst [vmem:[#allocation17_spill] sm:$0xff] %v4934_v61  ;;  %v1216_v34 = vrot.slane %v4932_v58, 4  ;;  %v1212_v53 = vrot.slane %v1211_v4, 2  ;;  %v1207_v19 = vmax.f32 %v1205_v49, %v1206_v8  ;;  %v2092_v55 = vmul.f32 %v4180_v37, %v4862_v14 }
 0x146   : > { %v875_v59 = vpop.f32.mrf.mxu0  ;;  %v1706_v51 = vrot.slane %v1705_v26, 1  ;;  %4193 = vrcp.f32 %v1701_v0  ;;  %v1548_v12 = vmul.f32 1.442695, %v1464_v41 }
 0x147   : > { %v1217_v5 = vmax.f32 %v4932_v58, %v1216_v34  ;;  %v4951_v2 = vadd.f32 %v875_v59, %v4696_v47  ;;  %v1710_v59 = vrot.slane %v1709_v48, 2  ;;  %v4182_v61 = vpop.eup %4181  ;;  %v1213_v22 = vmax.f32 %v1211_v4, %v1212_v53 }
 0x148   : > { %v4945_v24 = vpop.f32.mrf.mxu0  ;;  %v4963_v60 = vpop.eup %4183  ;;  %v2093_v46 = vmul.f32 %v4182_v61, %v4864_v28  ;;  %v1707_v3 = vadd.f32 %v1706_v51, %v1705_v26  ;;  %v1715_v4 = vadd.f32 %v4943_v13, %v1714_v30  ;;  %v1208_v53 = vrot.slane %v1207_v19, 1 }
 0x149   : > { %6025 = vst [vmem:[#allocation18_spill] sm:$0xff] %v4945_v24  ;;  %v1218_v34 = vrot.slane %v1217_v5, 2  ;;  %v1222_v29 = vrot.slane %v4951_v2, 4  ;;  %v1711_v49 = vadd.f32 %v1710_v59, %v1709_v48  ;;  %v1214_v45 = vrot.slane %v1213_v22, 1 }
 0x14a   : > { %v881_v16 = vpop.f32.mrf.mxu0  ;;  %v2152_v6 = vpack.c.bf16 %v2093_v46, %v2092_v55  ;;  %4195 = vrcp.f32 %v1707_v3  ;;  %v1466_v51 = vsub.f32 %v4886_v31, %v1197_v54  ;;  %v1716_v41 = vrot.slane %v1715_v4, 2 }
 0x14b   : > { %v4956_v15 = vadd.f32 %v881_v16, %v4696_v47  ;;  %v1550_v16 = vmul.f32 1.442695, %v1465_v42  ;;  %v1219_v17 = vmax.f32 %v1217_v5, %v1218_v34  ;;  %v1223_v14 = vmax.f32 %v4951_v2, %v1222_v29 }
 0x14c   : > { %v4958_v24 = vpop.f32.mrf.mxu0  ;;  %3936 = vmatprep.mubr.bf16.mxu1 %v2152_v6  ;;  %v1712_v61 = vrot.slane %v1711_v49, 1  ;;  %4197 = vpow2.f32 %v1548_v12  ;;  %v1720_v34 = vrot.slane %v4948_v11, 4  ;;  %v1209_v59 = vmax.f32 %v1207_v19, %v1208_v53 }
 0x14d   : > { %6026 = vst [vmem:[#allocation19_spill] sm:$0xff] %v4958_v24  ;;  %v1228_v39 = vrot.slane %v4956_v15, 4  ;;  %v1203_v24 = vmax.f32 %v1201_v62, %v1202_v44  ;;  %v1220_v0 = vrot.slane %v1219_v17, 1  ;;  %v4980_v37 = vpop.eup %4185  ;;  %v1717_v44 = vadd.f32 %v1716_v41, %v1715_v4 }
 0x14e   : > { %v885_v40 = vpop.f32.mrf.mxu0  ;;  %v1713_v42 = vadd.f32 %v1712_v61, %v1711_v49  ;;  %v4986_v54 = vpop.eup %4187  ;;  %v1215_v30 = vmax.f32 %v1213_v22, %v1214_v45  ;;  %v1224_v29 = vrot.slane %v1223_v14, 2  ;;  %4199 = vpow2.f32 %v1550_v16 }
 0x14f   : > { %v1229_v28 = vmax.f32 %v4956_v15, %v1228_v39  ;;  %v4974_v62 = vadd.f32 %v885_v40, %v4696_v47  ;;  %v1467_v48 = vsub.f32 %v4900_v25, %v1203_v24  ;;  %v4988_v24 = vpop.eup %4189  ;;  %v4992_v39 = vadd.f32 %v4701_v50, %v4622_v21 }
 0x150   : > { %v4968_v8 = vpop.f32.mrf.mxu0  ;;  %v1552_v55 = vmul.f32 1.442695, %v1466_v51  ;;  %v1718_v46 = vrot.slane %v1717_v44, 1  ;;  %v4994_v40 = vpop.eup %4191  ;;  %v1221_v49 = vmax.f32 %v1219_v17, %v1220_v0  ;;  %4201 = vrcp.f32 %v1713_v42 }
 0x151   : > { %6027 = vst [vmem:[#allocation20_spill] sm:$0xff] %v4968_v8  ;;  %v1234_v31 = vrot.slane %v4974_v62, 4  ;;  %v1230_v25 = vrot.slane %v1229_v28, 2  ;;  %6029 = vst [vmem:[#allocation22_spill] sm:$0xff] %v4992_v39  ;;  %v1554_v12 = vmul.f32 1.442695, %v1467_v48  ;;  %v1721_v4 = vadd.f32 %v4948_v11, %v1720_v34 }
 0x152   : > { %v891_v5 = vpop.f32.mrf.mxu0  ;;  %v1719_v45 = vadd.f32 %v1718_v46, %v1717_v44  ;;  %v1726_v53 = vrot.slane %v4963_v60, 4  ;;  %v1468_v16 = vsub.f32 %v4914_v36, %v1209_v59  ;;  %v1469_v51 = vsub.f32 %v4919_v1, %v1215_v30 }
 0x153   : > { %v4978_v26 = vadd.f32 %v891_v5, %v4696_v47  ;;  %v1235_v22 = vmax.f32 %v4974_v62, %v1234_v31  ;;  %v1225_v61 = vmax.f32 %v1223_v14, %v1224_v29  ;;  %v1231_v41 = vmax.f32 %v1229_v28, %v1230_v25  ;;  %v4194_v42 = vpop.eup %4193 }
 0x154   : > { %v4983_v6 = vpop.f32.mrf.mxu0  ;;  %v5006_v17 = vadd.f32 %v4705_v56, %v4622_v21  ;;  %4203 = vrcp.f32 %v1719_v45  ;;  %v1722_v5 = vrot.slane %v1721_v4, 2  ;;  %v1727_v48 = vadd.f32 %v4963_v60, %v1726_v53 }
 0x155   : > { %6028 = vst [vmem:[#allocation21_spill] sm:$0xff] %v4983_v6  ;;  %v1240_v19 = vrot.slane %v4978_v26, 4  ;;  %v5011_v44 = vadd.f32 %v4710_v63, %v4622_v21  ;;  %4205 = vpow2.f32 %v1552_v55  ;;  %v1470_v36 = vsub.f32 %v4932_v58, %v1221_v49 }
 0x156   : > { %v895_v3 = vpop.f32.mrf.mxu0  ;;  %6031 = vst [vmem:[#allocation24_spill] sm:$0xff] %v5006_v17  ;;  %4207 = vpow2.f32 %v1554_v12  ;;  %v1236_v14 = vrot.slane %v1235_v22, 2  ;;  %v1723_v28 = vadd.f32 %v1722_v5, %v1721_v4  ;;  %v1728_v56 = vrot.slane %v1727_v48, 2 }
 0x157   : > { %v1241_v1 = vmax.f32 %v4978_v26, %v1240_v19  ;;  %v4196_v34 = vpop.eup %4195  ;;  %v1556_v59 = vmul.f32 1.442695, %v1468_v16  ;;  %v1558_v30 = vmul.f32 1.442695, %v1469_v51  ;;  %v1226_v29 = vrot.slane %v1225_v61, 1 }
 0x158   : > { %v5000_v50 = vpop.f32.mrf.mxu0  ;;  %v1232_v25 = vrot.slane %v1231_v41, 1  ;;  %v2094_v46 = vmul.f32 %v4194_v42, %v4888_v23  ;;  %v2095_v63 = vmul.f32 %v4196_v34, %v4905_v38  ;;  %v1724_v55 = vrot.slane %v1723_v28, 1 }
 0x159   : > { %6030 = vst [vmem:[#allocation23_spill] sm:$0xff] %v5000_v50  ;;  %v1729_v45 = vadd.f32 %v1728_v56, %v1727_v48  ;;  %v1560_v49 = vmul.f32 1.442695, %v1470_v36  ;;  %v1242_v19 = vrot.slane %v1241_v1, 2  ;;  %v5020_v12 = vadd.f32 %v895_v3, %v4696_v47  ;;  %v5023_v53 = vpop.eup %4197 }
 0x15a   : > { %v901_v0 = vpop.f32.mrf.mxu0  ;;  %v1732_v4 = vrot.slane %v4980_v37, 4  ;;  %v2153_v16 = vpack.c.bf16 %v2095_v63, %v2094_v46  ;;  %v1237_v51 = vmax.f32 %v1235_v22, %v1236_v14  ;;  %v1725_v5 = vadd.f32 %v1724_v55, %v1723_v28 }
 0x15b   : > { %4209 = vpow2.f32 %v1556_v59  ;;  %v1227_v23 = vmax.f32 %v1225_v61, %v1226_v29  ;;  %v5028_v38 = vadd.f32 %v901_v0, %v4696_v47  ;;  %v1233_v3 = vmax.f32 %v1231_v41, %v1232_v25  ;;  %v5032_v34 = vpop.eup %4199 }
 0x15c   : > { %v5015_v31 = vpop.f32.mrf.mxu0  ;;  %v1733_v48 = vadd.f32 %v4980_v37, %v1732_v4  ;;  %4211 = vpow2.f32 %v1558_v30  ;;  %3937 = vmatmul.mubr.bf16.gmra.mxu1 %v2153_v16  ;;  %v1738_v36 = vrot.slane %v4986_v54, 4  ;;  %v1243_v22 = vmax.f32 %v1241_v1, %v1242_v19 }
 0x15d   : > { %6032 = vst [vmem:[#allocation25_spill] sm:$0xff] %v5015_v31  ;;  %v1730_v31 = vrot.slane %v1729_v45, 1  ;;  %4213 = vpow2.f32 %v1560_v49  ;;  %v1246_v14 = vrot.slane %v5020_v12, 4  ;;  %v4202_v61 = vpop.eup %4201  ;;  %v5037_v0 = vadd.f32 %v4714_v10, %v4622_v21 }
 0x15e   : > { %v905_v58 = vpop.f32.mrf.mxu0  ;;  %v1734_v28 = vrot.slane %v1733_v48, 2  ;;  %v1238_v59 = vrot.slane %v1237_v51, 1  ;;  %4215 = vrcp.f32 %v1725_v5  ;;  %v1739_v41 = vadd.f32 %v4986_v54, %v1738_v36 }
 0x15f   : > { %v1731_v42 = vadd.f32 %v1730_v31, %v1729_v45  ;;  %6034 = vst [vmem:[#allocation27_spill] sm:$0xff] %v5037_v0  ;;  %v1471_v30 = vsub.f32 %v4951_v2, %v1227_v23  ;;  %v1252_v29 = vrot.slane %v5028_v38, 4  ;;  %v5045_v1 = vadd.f32 %v905_v58, %v4696_v47 }
 0x160   : > { %v5025_v8 = vpop.f32.mrf.mxu0  ;;  %v1735_v25 = vadd.f32 %v1734_v28, %v1733_v48  ;;  %v5049_v46 = vadd.f32 %v4718_v20, %v4622_v21  ;;  %v1472_v10 = vsub.f32 %v4956_v15, %v1233_v3  ;;  %v1740_v63 = vrot.slane %v1739_v41, 2 }
 0x161   : > { %6033 = vst [vmem:[#allocation26_spill] sm:$0xff] %v5025_v8  ;;  %4217 = vrcp.f32 %v1731_v42  ;;  %v4204_v45 = vpop.eup %4203  ;;  %v1244_v49 = vrot.slane %v1243_v22, 1  ;;  %v1247_v19 = vmax.f32 %v5020_v12, %v1246_v14  ;;  %v2096_v58 = vmul.f32 %v4202_v61, %v4921_v33 }
 0x162   : > { %v911_v56 = vpop.f32.mrf.mxu0  ;;  %6036 = vst [vmem:[#allocation29_spill] sm:$0xff] %v5049_v46  ;;  %v1736_v2 = vrot.slane %v1735_v25, 1  ;;  %v5056_v16 = vpop.eup %4205  ;;  %v2097_v20 = vmul.f32 %v4204_v45, %v4943_v13  ;;  %v1239_v5 = vmax.f32 %v1237_v51, %v1238_v59  ;;  %v1741_v23 = vadd.f32 %v1740_v63, %v1739_v41 }
 0x163   : > { %v5054_v4 = vadd.f32 %v911_v56, %v4696_v47  ;;  %v5062_v48 = vpop.eup %4207  ;;  %v1562_v3 = vmul.f32 1.442695, %v1471_v30  ;;  %v1253_v42 = vmax.f32 %v5028_v38, %v1252_v29  ;;  %v1258_v14 = vrot.slane %v5045_v1, 4 }
 0x164   : > { %v5040_v31 = vpop.f32.mrf.mxu0  ;;  %v1737_v36 = vadd.f32 %v1736_v2, %v1735_v25  ;;  %v2154_v56 = vpack.c.bf16 %v2097_v20, %v2096_v58  ;;  %v1742_v28 = vrot.slane %v1741_v23, 1  ;;  %v1744_v33 = vrot.slane %v4988_v24, 4 }
 0x165   : > { %6035 = vst [vmem:[#allocation28_spill] sm:$0xff] %v5040_v31  ;;  %v1264_v8 = vrot.slane %v5054_v4, 4  ;;  %v1564_v13 = vmul.f32 1.442695, %v1472_v10  ;;  %v5068_v51 = vmax.f32 %v1243_v22, %v1244_v49  ;;  %v1248_v59 = vrot.slane %v1247_v19, 2 }
 0x166   : > { %v915_v55 = vpop.f32.mrf.mxu0  ;;  %v1750_v41 = vrot.slane %v4994_v40, 4  ;;  %3940 = vmatprep.mubr.bf16.mxu1 %v2154_v56  ;;  %v1473_v30 = vsub.f32 %v4974_v62, %v1239_v5  ;;  %v1743_v29 = vadd.f32 %v1742_v28, %v1741_v23  ;;  %4219 = vrcp.f32 %v1737_v36 }
 0x167   : > { %v1745_v25 = vadd.f32 %v4988_v24, %v1744_v33  ;;  %v1254_v45 = vrot.slane %v1253_v42, 2  ;;  %v1259_v2 = vmax.f32 %v5045_v1, %v1258_v14  ;;  %v5078_v22 = vadd.f32 %v915_v55, %v4696_v47 }
 0x168   : > { %v5060_v15 = vpop.f32.mrf.mxu0  ;;  %v1751_v58 = vadd.f32 %v4994_v40, %v1750_v41  ;;  %v5080_v10 = vpop.eup %4209  ;;  %v5084_v49 = vadd.f32 %v4721_v32, %v4622_v21  ;;  %4221 = vrcp.f32 %v1743_v29  ;;  %v1265_v62 = vmax.f32 %v5054_v4, %v1264_v8 }
 0x169   : > { %6037 = vst [vmem:[#allocation30_spill] sm:$0xff] %v5060_v15  ;;  %v1746_v20 = vrot.slane %v1745_v25, 2  ;;  %v5087_v23 = vpop.eup %4211  ;;  %4223 = vpow2.f32 %v1562_v3  ;;  %v1249_v36 = vmax.f32 %v1247_v19, %v1248_v59  ;;  %v1270_v56 = vrot.slane %v5078_v22, 4 }
 0x16a   : > { %v921_v61 = vpop.f32.mrf.mxu0  ;;  %6039 = vst [vmem:[#allocation32_spill] sm:$0xff] %v5084_v49  ;;  %v1752_v14 = vrot.slane %v1751_v58, 2  ;;  %v5090_v55 = vpop.eup %4213  ;;  %4225 = vpow2.f32 %v1564_v13  ;;  %v1566_v28 = vmul.f32 1.442695, %v1473_v30  ;;  %v1474_v29 = vsub.f32 %v4978_v26, %v5068_v51 }
 0x16b   : > { %v1747_v33 = vadd.f32 %v1746_v20, %v1745_v25  ;;  %v5093_v32 = vadd.f32 %v921_v61, %v4696_v47  ;;  %v4216_v8 = vpop.eup %4215  ;;  %v1260_v3 = vrot.slane %v1259_v2, 2  ;;  %v1266_v59 = vrot.slane %v1265_v62, 2 }
 0x16c   : > { %v5073_v63 = vpop.f32.mrf.mxu0  ;;  %v1753_v19 = vadd.f32 %v1752_v14, %v1751_v58  ;;  %v1756_v13 = vrot.slane %v5023_v53, 4  ;;  %v1250_v20 = vrot.slane %v1249_v36, 1  ;;  %v1271_v50 = vmax.f32 %v5078_v22, %v1270_v56 }
 0x16d   : > { %6038 = vst [vmem:[#allocation31_spill] sm:$0xff] %v5073_v63  ;;  %v1255_v63 = vmax.f32 %v1253_v42, %v1254_v45  ;;  %v1748_v15 = vrot.slane %v1747_v33, 1  ;;  %v1276_v31 = vrot.slane %v5093_v32, 4  ;;  %4227 = vpow2.f32 %v1566_v28  ;;  %v1011_v45 = vpop.f32.mrf.mxu1 }
 0x16e   : > { %v925_v5 = vpop.f32.mrf.mxu0  ;;  %v4218_v25 = vpop.eup %4217  ;;  %v1754_v61 = vrot.slane %v1753_v19, 1  ;;  %v2098_v26 = vmul.f32 %v4216_v8, %v4948_v11  ;;  %v1757_v46 = vadd.f32 %v5023_v53, %v1756_v13  ;;  %v1261_v0 = vmax.f32 %v1259_v2, %v1260_v3 }
 0x16f   : > { %v2099_v42 = vmul.f32 %v4218_v25, %v4963_v60  ;;  %v1749_v51 = vadd.f32 %v1748_v15, %v1747_v33  ;;  %v1256_v14 = vrot.slane %v1255_v63, 1  ;;  %v1277_v49 = vmax.f32 %v5093_v32, %v1276_v31  ;;  %v5119_v2 = vpop.f32.mrf.mxu1 }
 0x170   : > { %v5095_v41 = vpop.f32.mrf.mxu0  ;;  %v1755_v6 = vadd.f32 %v1754_v61, %v1753_v19  ;;  %v1267_v56 = vmax.f32 %v1265_v62, %v1266_v59  ;;  %v5114_v11 = vadd.f32 %v4726_v43, %v4622_v21  ;;  %v1272_v60 = vrot.slane %v1271_v50, 2  ;;  %6042 = vst [vmem:[#allocation35_spill] sm:$0xff] %v5119_v2 }
 0x171   : > { %6040 = vst [vmem:[#allocation33_spill] sm:$0xff] %v5095_v41  ;;  %v1762_v41 = vrot.slane %v5032_v34, 4  ;;  %v2155_v17 = vpack.c.bf16 %v2099_v42, %v2098_v26  ;;  %4229 = vrcp.f32 %v1749_v51  ;;  %v1758_v15 = vrot.slane %v1757_v46, 2 }
 0x172   : > { %v931_v30 = vpop.f32.mrf.mxu0  ;;  %v1568_v33 = vmul.f32 1.442695, %v1474_v29  ;;  %4231 = vrcp.f32 %v1755_v6  ;;  %v5117_v8 = vadd.f32 %v925_v5, %v4696_v47  ;;  %v1251_v3 = vmax.f32 %v1249_v36, %v1250_v20 }
 0x173   : > { %v1763_v39 = vadd.f32 %v5032_v34, %v1762_v41  ;;  %3941 = vmatmul.mubr.bf16.gmra.mxu1 %v2155_v17  ;;  %v4220_v41 = vpop.eup %4219  ;;  %v1257_v19 = vmax.f32 %v1255_v63, %v1256_v14  ;;  %v1278_v59 = vrot.slane %v1277_v49, 2  ;;  %v1759_v43 = vadd.f32 %v1758_v15, %v1757_v46  ;;  %v1015_v14 = vpop.f32.mrf.mxu1 }
 0x174   : > { %v5105_v58 = vpop.f32.mrf.mxu0  ;;  %v1262_v13 = vrot.slane %v1261_v0, 1  ;;  %v1268_v25 = vrot.slane %v1267_v56, 1  ;;  %v1282_v29 = vrot.slane %v5117_v8, 4  ;;  %v1273_v26 = vmax.f32 %v1271_v50, %v1272_v60 }
 0x175   : > { %6041 = vst [vmem:[#allocation34_spill] sm:$0xff] %v5105_v58  ;;  %v1764_v31 = vrot.slane %v1763_v39, 2  ;;  %v4222_v6 = vpop.eup %4221  ;;  %v1760_v5 = vrot.slane %v1759_v43, 1  ;;  %v5127_v42 = vadd.f32 %v1011_v45, %v4696_v47  ;;  %v5130_v51 = vadd.f32 %v931_v30, %v4696_v47 }
 0x176   : > { %v5110_v28 = vpop.f32.mrf.mxu0  ;;  %v5132_v36 = vpop.eup %4223  ;;  %v2100_v46 = vmul.f32 %v4220_v41, %v4980_v37  ;;  %v2101_v63 = vmul.f32 %v4222_v6, %v4986_v54  ;;  %v1283_v20 = vmax.f32 %v5117_v8, %v1282_v29  ;;  %v1279_v60 = vmax.f32 %v1277_v49, %v1278_v59 }
 0x177   : > { %v1765_v61 = vadd.f32 %v1764_v31, %v1763_v39  ;;  %v5139_v50 = vpop.eup %4225  ;;  %v1761_v45 = vadd.f32 %v1760_v5, %v1759_v43  ;;  %v1384_v31 = vrot.slane %v5127_v42, 4  ;;  %v1288_v30 = vrot.slane %v5130_v51, 4 }
 0x178   : > { %v5121_v62 = vpop.f32.mrf.mxu0  ;;  %v1475_v2 = vsub.f32 %v5020_v12, %v1251_v3  ;;  %v1476_v37 = vsub.f32 %v5028_v38, %v1257_v19  ;;  %v2156_v41 = vpack.c.bf16 %v2101_v63, %v2100_v46  ;;  %4233 = vpow2.f32 %v1568_v33  ;;  %v5152_v12 = vpop.f32.mrf.mxu1 }
 0x179   : > { %6043 = vst [vmem:[#allocation36_spill] sm:$0xff] %v5121_v62  ;;  %v1766_v39 = vrot.slane %v1765_v61, 1  ;;  %v1263_v29 = vmax.f32 %v1261_v0, %v1262_v13  ;;  %v1284_v62 = vrot.slane %v1283_v20, 2  ;;  %v5150_v49 = vadd.f32 %v4733_v57, %v4622_v21  ;;  %6045 = vst [vmem:[#allocation38_spill] sm:$0xff] %v5152_v12 }
 0x17a   : > { %v5124_v17 = vpop.f32.mrf.mxu0  ;;  %3944 = vmatprep.mubr.bf16.mxu1 %v2156_v41  ;;  %v1269_v59 = vmax.f32 %v1267_v56, %v1268_v25  ;;  %v1274_v43 = vrot.slane %v1273_v26, 1  ;;  %4235 = vrcp.f32 %v1761_v45  ;;  %v5156_v3 = vpop.eup %4227  ;;  %v1280_v19 = vrot.slane %v1279_v60, 1 }
 0x17b   : > { %v1767_v54 = vadd.f32 %v1766_v39, %v1765_v61  ;;  %v1289_v0 = vmax.f32 %v5130_v51, %v1288_v30  ;;  %v5160_v33 = vadd.f32 %v1015_v14, %v4696_v47  ;;  %v1570_v13 = vmul.f32 1.442695, %v1475_v2  ;;  %v1021_v2 = vpop.f32.mrf.mxu1 }
 0x17c   : > { %v5137_v15 = vpop.f32.mrf.mxu0  ;;  %v1572_v57 = vmul.f32 1.442695, %v1476_v37  ;;  %v1768_v61 = vrot.slane %v5056_v16, 4  ;;  %v1774_v56 = vrot.slane %v5062_v48, 4  ;;  %v1477_v25 = vsub.f32 %v5045_v1, %v1263_v29 }
 0x17d   : > { %6044 = vst [vmem:[#allocation37_spill] sm:$0xff] %v5137_v15  ;;  %v1385_v15 = vmax.f32 %v5127_v42, %v1384_v31  ;;  %4237 = vrcp.f32 %v1767_v54  ;;  %v1285_v5 = vmax.f32 %v1283_v20, %v1284_v62  ;;  %v1390_v63 = vrot.slane %v5160_v33, 4 }
 0x17e   : > { %v5145_v6 = vpop.f32.mrf.mxu0  ;;  %v4230_v39 = vpop.eup %4229  ;;  %v1478_v45 = vsub.f32 %v5054_v4, %v1269_v59  ;;  %v1275_v31 = vmax.f32 %v1273_v26, %v1274_v43  ;;  %v1769_v30 = vadd.f32 %v5056_v16, %v1768_v61  ;;  %v1775_v14 = vadd.f32 %v5062_v48, %v1774_v56 }
 0x17f   : > { %v1386_v46 = vrot.slane %v1385_v15, 2  ;;  %v4232_v41 = vpop.eup %4231  ;;  %v2102_v54 = vmul.f32 %v4230_v39, %v4988_v24  ;;  %v1281_v12 = vmax.f32 %v1279_v60, %v1280_v19  ;;  %v1290_v1 = vrot.slane %v1289_v0, 2  ;;  %v5178_v60 = vpop.f32.mrf.mxu1 }
 0x180   : > { %v5154_v38 = vpop.f32.mrf.mxu0  ;;  %v5174_v62 = vadd.f32 %v5110_v28, %v4696_v47  ;;  %v2103_v20 = vmul.f32 %v4232_v41, %v4994_v40  ;;  %v1391_v4 = vmax.f32 %v5160_v33, %v1390_v63  ;;  %v1770_v26 = vrot.slane %v1769_v30, 2  ;;  %6047 = vst [vmem:[#allocation40_spill] sm:$0xff] %v5178_v60 }
 0x181   : > { %6046 = vst [vmem:[#allocation39_spill] sm:$0xff] %v5154_v38  ;;  %v1776_v29 = vrot.slane %v1775_v14, 2  ;;  %4239 = vpow2.f32 %v1570_v13  ;;  %v1574_v59 = vmul.f32 1.442695, %v1477_v25  ;;  %v1286_v43 = vrot.slane %v1285_v5, 1 }
 0x182   : > { %v5169_v37 = vpop.f32.mrf.mxu0  ;;  %v1387_v61 = vmax.f32 %v1385_v15, %v1386_v46  ;;  %4241 = vpow2.f32 %v1572_v57  ;;  %v2157_v56 = vpack.c.bf16 %v2103_v20, %v2102_v54  ;;  %v1771_v38 = vadd.f32 %v1770_v26, %v1769_v30 }
 0x183   : > { %v1777_v24 = vadd.f32 %v1776_v29, %v1775_v14  ;;  %v1576_v28 = vmul.f32 1.442695, %v1478_v45  ;;  %v1479_v39 = vsub.f32 %v5078_v22, %v1275_v31  ;;  %v1291_v40 = vmax.f32 %v1289_v0, %v1290_v1 }
 0x184   : > { %v5180_v19 = vpop.f32.mrf.mxu0  ;;  %v1294_v63 = vrot.slane %v5174_v62, 4  ;;  %3945 = vmatmul.mubr.bf16.gmra.mxu1 %v2157_v56  ;;  %v1480_v13 = vsub.f32 %v5093_v32, %v1281_v12  ;;  %v1392_v25 = vrot.slane %v1391_v4, 2  ;;  %v1772_v41 = vrot.slane %v1771_v38, 1  ;;  %v1025_v12 = vpop.f32.mrf.mxu1 }
 0x185   : > { %6048 = vst [vmem:[#allocation41_spill] sm:$0xff] %v5180_v19  ;;  %v1778_v15 = vrot.slane %v1777_v24, 1  ;;  %v5187_v57 = vadd.f32 %v4742_v7, %v4622_v21  ;;  %4243 = vpow2.f32 %v1574_v59  ;;  %v1287_v46 = vmax.f32 %v1285_v5, %v1286_v43  ;;  %v5189_v14 = vpop.eup %4233 }
 0x186   : > { %v1388_v30 = vrot.slane %v1387_v61, 1  ;;  %v1773_v45 = vadd.f32 %v1772_v41, %v1771_v38  ;;  %v5192_v0 = vadd.f32 %v1021_v2, %v4696_v47  ;;  %v5196_v32 = vadd.f32 %v5124_v17, %v4696_v47  ;;  %v5198_v31 = vpop.f32.mrf.mxu0 }
 0x187   : > { %6049 = vst [vmem:[#allocation42_spill] sm:$0xff] %v5187_v57  ;;  %v1779_v22 = vadd.f32 %v1778_v15, %v1777_v24  ;;  %v4236_v54 = vpop.eup %4235  ;;  %4245 = vpow2.f32 %v1576_v28  ;;  %v1578_v7 = vmul.f32 1.442695, %v1479_v39  ;;  %v1292_v1 = vrot.slane %v1291_v40, 1  ;;  %v5208_v39 = vpop.f32.mrf.mxu1 }
 0x188   : > { %v1295_v5 = vmax.f32 %v5174_v62, %v1294_v63  ;;  %v1580_v26 = vmul.f32 1.442695, %v1480_v13  ;;  %v1393_v38 = vmax.f32 %v1391_v4, %v1392_v25  ;;  %v1396_v29 = vrot.slane %v5192_v0, 4  ;;  %6050 = vst [vmem:[#allocation43_spill] sm:$0xff] %v5208_v39  ;;  %v5210_v4 = vpop.f32.mrf.mxu0 }
 0x189   : > { %v1300_v2 = vrot.slane %v5196_v32, 4  ;;  %v2104_v59 = vmul.f32 %v4236_v54, %v5023_v53  ;;  %v1481_v43 = vsub.f32 %v5117_v8, %v1287_v46  ;;  %4247 = vrcp.f32 %v1773_v45  ;;  %6051 = vst [vmem:[#allocation44_spill] sm:$0xff] %v5210_v4 }
 0x18a   : > { %v4238_v20 = vpop.eup %4237  ;;  %v1389_v56 = vmax.f32 %v1387_v61, %v1388_v30  ;;  %4249 = vrcp.f32 %v1779_v22  ;;  %v1397_v24 = vmax.f32 %v5192_v0, %v1396_v29  ;;  %v1293_v13 = vmax.f32 %v1291_v40, %v1292_v1  ;;  %v1031_v1 = vpop.f32.mrf.mxu1 }
 0x18b   : > { %v2105_v17 = vmul.f32 %v4238_v20, %v5032_v34  ;;  %v1301_v28 = vmax.f32 %v5196_v32, %v1300_v2  ;;  %v1296_v25 = vrot.slane %v1295_v5, 2  ;;  %v5213_v53 = vadd.f32 %v1025_v12, %v4696_v47  ;;  %v5227_v20 = vpop.f32.mrf.mxu0 }
 0x18c   : > { %v1394_v34 = vrot.slane %v1393_v38, 1  ;;  %v1398_v41 = vrot.slane %v1397_v24, 2  ;;  %v1780_v8 = vrot.slane %v5080_v10, 4  ;;  %v1786_v61 = vrot.slane %v5087_v23, 4 }
 0x18d   : > { %v2158_v63 = vpack.c.bf16 %v2105_v17, %v2104_v59  ;;  %v1582_v15 = vmul.f32 1.442695, %v1481_v43  ;;  %v1302_v46 = vrot.slane %v1301_v28, 2  ;;  %v1402_v30 = vrot.slane %v5213_v53, 4 }
 0x18e   : > { %v5220_v45 = vadd.f32 %v5145_v6, %v4696_v47  ;;  %v5222_v40 = vpop.eup %4239  ;;  %4251 = vpow2.f32 %v1578_v7  ;;  %v1498_v22 = vsub.f32 %v5127_v42, %v1389_v56  ;;  %v1781_v12 = vadd.f32 %v5080_v10, %v1780_v8 }
 0x18f   : > { %3948 = vmatprep.mubr.bf16.mxu1 %v2158_v63  ;;  %v1787_v54 = vadd.f32 %v5087_v23, %v1786_v61  ;;  %v5229_v29 = vpop.eup %4241  ;;  %4253 = vpow2.f32 %v1580_v26  ;;  %v1297_v2 = vmax.f32 %v1295_v5, %v1296_v25  ;;  %v1399_v59 = vmax.f32 %v1397_v24, %v1398_v41  ;;  %v5241_v41 = vpop.f32.mrf.mxu1 }
 0x190   : > { %v1306_v6 = vrot.slane %v5220_v45, 4  ;;  %v1482_v17 = vsub.f32 %v5130_v51, %v1293_v13  ;;  %v1395_v43 = vmax.f32 %v1393_v38, %v1394_v34  ;;  %v1782_v7 = vrot.slane %v1781_v12, 2  ;;  %6053 = vst [vmem:[#allocation46_spill] sm:$0xff] %v5241_v41  ;;  %v5243_v51 = vpop.f32.mrf.mxu0 }
 0x191   : > { %v1788_v63 = vrot.slane %v1787_v54, 2  ;;  %v5235_v42 = vadd.f32 %v4752_v18, %v4622_v21  ;;  %4255 = vpow2.f32 %v1582_v15  ;;  %v1303_v56 = vmax.f32 %v1301_v28, %v1302_v46  ;;  %6054 = vst [vmem:[#allocation47_spill] sm:$0xff] %v5243_v51  ;;  %v1035_v60 = vpop.f32.mrf.mxu1 }
 0x192   : > { %v1403_v8 = vmax.f32 %v5213_v53, %v1402_v30  ;;  %v5238_v61 = vpop.eup %4243  ;;  %v1616_v26 = vmul.f32 1.442695, %v1498_v22  ;;  %v1783_v5 = vadd.f32 %v1782_v7, %v1781_v12  ;;  %v1307_v25 = vmax.f32 %v5220_v45, %v1306_v6 }
 0x193   : > { %6052 = vst [vmem:[#allocation45_spill] sm:$0xff] %v5235_v42  ;;  %v1789_v24 = vadd.f32 %v1788_v63, %v1787_v54  ;;  %v1298_v38 = vrot.slane %v1297_v2, 1  ;;  %v1400_v13 = vrot.slane %v1399_v59, 1  ;;  %v5246_v18 = vadd.f32 %v1031_v1, %v4696_v47 }
 0x194   : > { %v5250_v28 = vadd.f32 %v5169_v37, %v4696_v47  ;;  %v5252_v34 = vpop.eup %4245  ;;  %v1584_v15 = vmul.f32 1.442695, %v1482_v17  ;;  %v1499_v46 = vsub.f32 %v5160_v33, %v1395_v43  ;;  %v1784_v30 = vrot.slane %v1783_v5, 1  ;;  %v5261_v17 = vpop.f32.mrf.mxu0 }
 0x195   : > { %v1790_v22 = vrot.slane %v1789_v24, 1  ;;  %v1304_v12 = vrot.slane %v1303_v56, 1  ;;  %v1404_v54 = vrot.slane %v1403_v8, 2  ;;  %v1408_v6 = vrot.slane %v5246_v18, 4 }
 0x196   : > { %v1312_v7 = vrot.slane %v5250_v28, 4  ;;  %v4248_v63 = vpop.eup %4247  ;;  %v5259_v1 = vadd.f32 %v4764_v35, %v4622_v21  ;;  %4257 = vpow2.f32 %v1616_v26  ;;  %v1785_v37 = vadd.f32 %v1784_v30, %v1783_v5 }
 0x197   : > { %v1308_v39 = vrot.slane %v1307_v25, 2  ;;  %v4250_v33 = vpop.eup %4249  ;;  %v1299_v43 = vmax.f32 %v1297_v2, %v1298_v38  ;;  %v1401_v41 = vmax.f32 %v1399_v59, %v1400_v13  ;;  %v1791_v51 = vadd.f32 %v1790_v22, %v1789_v24  ;;  %v5271_v24 = vpop.f32.mrf.mxu1 }
 0x198   : > { %v1409_v4 = vmax.f32 %v5246_v18, %v1408_v6  ;;  %4259 = vpow2.f32 %v1584_v15  ;;  %v2106_v19 = vmul.f32 %v4248_v63, %v5056_v16  ;;  %v2107_v58 = vmul.f32 %v4250_v33, %v5062_v48  ;;  %6055 = vst [vmem:[#allocation48_spill] sm:$0xff] %v5271_v24  ;;  %v5273_v38 = vpop.f32.mrf.mxu0 }
 0x199   : > { %v1313_v35 = vmax.f32 %v5250_v28, %v1312_v7  ;;  %v1618_v42 = vmul.f32 1.442695, %v1499_v46  ;;  %v1305_v26 = vmax.f32 %v1303_v56, %v1304_v12  ;;  %v1405_v5 = vmax.f32 %v1403_v8, %v1404_v54  ;;  %6056 = vst [vmem:[#allocation49_spill] sm:$0xff] %v5273_v38  ;;  %v1041_v46 = vpop.f32.mrf.mxu1 }
 0x19a   : > { %v1410_v30 = vrot.slane %v1409_v4, 2  ;;  %v5269_v57 = vadd.f32 %v4772_v52, %v4622_v21  ;;  %v2159_v2 = vpack.c.bf16 %v2107_v58, %v2106_v19  ;;  %4261 = vrcp.f32 %v1785_v37  ;;  %v5296_v22 = vpop.f32.mrf.mxu0 }
 0x19b   : > { %v1309_v59 = vmax.f32 %v1307_v25, %v1308_v39  ;;  %v5275_v16 = vpop.eup %4251  ;;  %v1483_v48 = vsub.f32 %v5174_v62, %v1299_v43  ;;  %v1500_v13 = vsub.f32 %v5192_v0, %v1401_v41  ;;  %4263 = vrcp.f32 %v1791_v51 }
 0x19c   : > { %v1314_v56 = vrot.slane %v1313_v35, 2  ;;  %v5279_v8 = vpop.eup %4253  ;;  %3949 = vmatmul.mubr.bf16.gmra.mxu1 %v2159_v2  ;;  %v1411_v52 = vmax.f32 %v1409_v4, %v1410_v30  ;;  %v5282_v58 = vadd.f32 %v1035_v60, %v4696_v47  ;;  %v1792_v19 = vrot.slane %v5090_v55, 4 }
 0x19d   : > { %v1798_v39 = vrot.slane %v5132_v36, 4  ;;  %4265 = vpow2.f32 %v1618_v42  ;;  %v1484_v25 = vsub.f32 %v5196_v32, %v1305_v26  ;;  %v1406_v15 = vrot.slane %v1405_v5, 1 }
 0x19e   : > { %v5289_v62 = vadd.f32 %v5198_v31, %v4696_v47  ;;  %v5291_v0 = vpop.eup %4255  ;;  %v1310_v41 = vrot.slane %v1309_v59, 1  ;;  %v1414_v4 = vrot.slane %v5282_v58, 4  ;;  %v1793_v60 = vadd.f32 %v5090_v55, %v1792_v19 }
 0x19f   : > { %v1799_v51 = vadd.f32 %v5132_v36, %v1798_v39  ;;  %v1586_v42 = vmul.f32 1.442695, %v1483_v48  ;;  %v1620_v12 = vmul.f32 1.442695, %v1500_v13  ;;  %v1315_v32 = vmax.f32 %v1313_v35, %v1314_v56  ;;  %v5304_v13 = vpop.f32.mrf.mxu1  ;;  %v5306_v35 = vpop.f32.mrf.mxu0 }
 0x1a0   : > { %v1318_v54 = vrot.slane %v5289_v62, 4  ;;  %v1412_v6 = vrot.slane %v1411_v52, 1  ;;  %v1415_v31 = vmax.f32 %v5282_v58, %v1414_v4  ;;  %v1794_v7 = vrot.slane %v1793_v60, 2  ;;  %6057 = vst [vmem:[#allocation50_spill] sm:$0xff] %v5304_v13  ;;  %6058 = vst [vmem:[#allocation51_spill] sm:$0xff] %v5306_v35 }
 0x1a1   : > { %v1800_v63 = vrot.slane %v1799_v51, 2  ;;  %v1588_v37 = vmul.f32 1.442695, %v1484_v25  ;;  %v1407_v33 = vmax.f32 %v1405_v5, %v1406_v15  ;;  %v5302_v26 = vadd.f32 %v1041_v46, %v4696_v47  ;;  %v1045_v35 = vpop.f32.mrf.mxu1 }
 0x1a2   : > { %v1319_v43 = vmax.f32 %v5289_v62, %v1318_v54  ;;  %v1311_v30 = vmax.f32 %v1309_v59, %v1310_v41  ;;  %v1416_v2 = vrot.slane %v1415_v31, 2  ;;  %v1795_v19 = vadd.f32 %v1794_v7, %v1793_v60 }
 0x1a3   : > { %v1801_v48 = vadd.f32 %v1800_v63, %v1799_v51  ;;  %v5308_v56 = vpop.eup %4257  ;;  %v1316_v39 = vrot.slane %v1315_v32, 1  ;;  %v1420_v25 = vrot.slane %v5302_v26, 4  ;;  %v5313_v5 = vadd.f32 %v5227_v20, %v4696_v47  ;;  %v5320_v20 = vpop.f32.mrf.mxu0 }
 0x1a4   : > { %v1320_v4 = vrot.slane %v1319_v43, 2  ;;  %v1413_v15 = vmax.f32 %v1411_v52, %v1412_v6  ;;  %v1417_v46 = vmax.f32 %v1415_v31, %v1416_v2  ;;  %v1796_v59 = vrot.slane %v1795_v19, 1 }
 0x1a5   : > { %v1802_v41 = vrot.slane %v1801_v48, 1  ;;  %v5315_v60 = vpop.eup %4259  ;;  %4267 = vpow2.f32 %v1586_v42  ;;  %v1421_v54 = vmax.f32 %v5302_v26, %v1420_v25  ;;  %v1324_v7 = vrot.slane %v5313_v5, 4 }
 0x1a6   : > { %v1321_v51 = vmax.f32 %v1319_v43, %v1320_v4  ;;  %4269 = vpow2.f32 %v1620_v12  ;;  %v1501_v63 = vsub.f32 %v5213_v53, %v1407_v33  ;;  %v1797_v13 = vadd.f32 %v1796_v59, %v1795_v19 }
 0x1a7   : > { %v1803_v24 = vadd.f32 %v1802_v41, %v1801_v48  ;;  %v4262_v52 = vpop.eup %4261  ;;  %4271 = vpow2.f32 %v1588_v37  ;;  %v1485_v6 = vsub.f32 %v5220_v45, %v1311_v30  ;;  %v1317_v31 = vmax.f32 %v1315_v32, %v1316_v39  ;;  %v5333_v30 = vpop.f32.mrf.mxu1 }
 0x1a8   : > { %v1325_v42 = vmax.f32 %v5313_v5, %v1324_v7  ;;  %v4264_v43 = vpop.eup %4263  ;;  %v1502_v2 = vsub.f32 %v5246_v18, %v1413_v15  ;;  %v1418_v4 = vrot.slane %v1417_v46, 1  ;;  %4273 = vrcp.f32 %v1797_v13  ;;  %6059 = vst [vmem:[#allocation52_spill] sm:$0xff] %v5333_v30  ;;  %v5335_v18 = vpop.f32.mrf.mxu0 }
 0x1a9   : > { %v1422_v12 = vrot.slane %v1421_v54, 2  ;;  %v2108_v53 = vmul.f32 %v4262_v52, %v5080_v10  ;;  %v2109_v33 = vmul.f32 %v4264_v43, %v5087_v23  ;;  %4275 = vrcp.f32 %v1803_v24  ;;  %6060 = vst [vmem:[#allocation53_spill] sm:$0xff] %v5335_v18  ;;  %v1051_v43 = vpop.f32.mrf.mxu1 }
 0x1aa   : > { %v1322_v19 = vrot.slane %v1321_v51, 1  ;;  %v5327_v48 = vpop.eup %4265  ;;  %v1622_v37 = vmul.f32 1.442695, %v1501_v63  ;;  %v1326_v25 = vrot.slane %v1325_v42, 2  ;;  %v5330_v45 = vadd.f32 %v1045_v35, %v4696_v47 }
 0x1ab   : > { %v1804_v32 = vrot.slane %v5139_v50, 4  ;;  %v2160_v13 = vpack.c.bf16 %v2109_v33, %v2108_v53  ;;  %v1590_v39 = vmul.f32 1.442695, %v1485_v6  ;;  %v1486_v10 = vsub.f32 %v5250_v28, %v1317_v31 }
 0x1ac   : > { %v1810_v23 = vrot.slane %v5156_v3, 4  ;;  %v1624_v24 = vmul.f32 1.442695, %v1502_v2  ;;  %v1423_v15 = vmax.f32 %v1421_v54, %v1422_v12  ;;  %v1426_v59 = vrot.slane %v5330_v45, 4  ;;  %v5347_v54 = vpop.f32.mrf.mxu0 }
 0x1ad   : > { %v1805_v41 = vadd.f32 %v5139_v50, %v1804_v32  ;;  %3952 = vmatprep.mubr.bf16.mxu1 %v2160_v13  ;;  %v1419_v35 = vmax.f32 %v1417_v46, %v1418_v4  ;;  %v1323_v7 = vmax.f32 %v1321_v51, %v1322_v19  ;;  %v5344_v52 = vadd.f32 %v5261_v17, %v4696_v47 }
 0x1ae   : > { %v1811_v63 = vadd.f32 %v5156_v3, %v1810_v23  ;;  %4277 = vpow2.f32 %v1622_v37  ;;  %v1327_v6 = vmax.f32 %v1325_v42, %v1326_v25  ;;  %v1427_v28 = vmax.f32 %v5330_v45, %v1426_v59  ;;  %v5360_v23 = vpop.f32.mrf.mxu0 }
 0x1af   : > { %v1806_v31 = vrot.slane %v1805_v41, 2  ;;  %4279 = vpow2.f32 %v1590_v39  ;;  %v1592_v2 = vmul.f32 1.442695, %v1486_v10  ;;  %v1330_v46 = vrot.slane %v5344_v52, 4  ;;  %v5358_v10 = vpop.f32.mrf.mxu1  ;;  %6062 = vst [vmem:[#allocation55_spill] sm:$0xff] %v5360_v23 }
 0x1b0   : > { %v1812_v12 = vrot.slane %v1811_v63, 2  ;;  %4281 = vpow2.f32 %v1624_v24  ;;  %v1424_v51 = vrot.slane %v1423_v15, 1  ;;  %v1428_v4 = vrot.slane %v1427_v28, 2  ;;  %6061 = vst [vmem:[#allocation54_spill] sm:$0xff] %v5358_v10  ;;  %v5374_v38 = vpop.f32.mrf.mxu0 }
 0x1b1   : > { %v1807_v53 = vadd.f32 %v1806_v31, %v1805_v41  ;;  %v1503_v17 = vsub.f32 %v5282_v58, %v1419_v35  ;;  %v1487_v33 = vsub.f32 %v5289_v62, %v1323_v7  ;;  %v1331_v19 = vmax.f32 %v5344_v52, %v1330_v46  ;;  %v1055_v18 = vpop.f32.mrf.mxu1 }
 0x1b2   : > { %v1813_v42 = vadd.f32 %v1812_v12, %v1811_v63  ;;  %v5353_v37 = vpop.eup %4267  ;;  %v1328_v25 = vrot.slane %v1327_v6, 1  ;;  %v1429_v32 = vmax.f32 %v1427_v28, %v1428_v4  ;;  %v5356_v39 = vadd.f32 %v1051_v43, %v4696_v47 }
 0x1b3   : > { %v1808_v13 = vrot.slane %v1807_v53, 1  ;;  %v5362_v24 = vpop.eup %4269  ;;  %4283 = vpow2.f32 %v1592_v2  ;;  %v1332_v62 = vrot.slane %v1331_v19, 2  ;;  %v5366_v59 = vadd.f32 %v5296_v22, %v4696_v47 }
 0x1b4   : > { %v1814_v58 = vrot.slane %v1813_v42, 1  ;;  %v5368_v41 = vpop.eup %4271  ;;  %v1425_v35 = vmax.f32 %v1423_v15, %v1424_v51  ;;  %v1430_v7 = vrot.slane %v1429_v32, 1  ;;  %v1432_v28 = vrot.slane %v5356_v39, 4 }
 0x1b5   : > { %v1809_v63 = vadd.f32 %v1808_v13, %v1807_v53  ;;  %v4274_v31 = vpop.eup %4273  ;;  %v1626_v43 = vmul.f32 1.442695, %v1503_v17  ;;  %v1333_v46 = vmax.f32 %v1331_v19, %v1332_v62  ;;  %v1336_v4 = vrot.slane %v5366_v59, 4 }
 0x1b6   : > { %v1815_v12 = vadd.f32 %v1814_v58, %v1813_v42  ;;  %v4276_v2 = vpop.eup %4275  ;;  %v2110_v30 = vmul.f32 %v4274_v31, %v5090_v55  ;;  %v1594_v10 = vmul.f32 1.442695, %v1487_v33  ;;  %v1329_v23 = vmax.f32 %v1327_v6, %v1328_v25  ;;  %v5385_v58 = vpop.f32.mrf.mxu0 }
 0x1b7   : > { %v1433_v22 = vmax.f32 %v5356_v39, %v1432_v28  ;;  %v2111_v15 = vmul.f32 %v4276_v2, %v5132_v36  ;;  %v1431_v51 = vmax.f32 %v1429_v32, %v1430_v7  ;;  %4285 = vrcp.f32 %v1809_v63  ;;  %6063 = vst [vmem:[#allocation56_spill] sm:$0xff] %v5385_v58 }
 0x1b8   : > { %v1337_v53 = vmax.f32 %v5366_v59, %v1336_v4  ;;  %v1504_v17 = vsub.f32 %v5302_v26, %v1425_v35  ;;  %4287 = vrcp.f32 %v1815_v12  ;;  %v1334_v42 = vrot.slane %v1333_v46, 1 }
 0x1b9   : > { %v1434_v19 = vrot.slane %v1433_v22, 2  ;;  %4289 = vpow2.f32 %v1626_v43  ;;  %v2161_v55 = vpack.c.bf16 %v2111_v15, %v2110_v30  ;;  %v5380_v6 = vadd.f32 %v1055_v18, %v4696_v47  ;;  %v991_v15 = vpop.f32.mrf.mxu0 }
 0x1ba   : > { %v1338_v33 = vrot.slane %v1337_v53, 2  ;;  %v1488_v25 = vsub.f32 %v5313_v5, %v1329_v23  ;;  %v1816_v36 = vrot.slane %v5189_v14, 4  ;;  %v1822_v32 = vrot.slane %v5222_v40, 4 }
 0x1bb   : > { %v1435_v13 = vmax.f32 %v1433_v22, %v1434_v19  ;;  %v5387_v62 = vpop.eup %4277  ;;  %3953 = vmatmul.mubr.bf16.gmra.mxu1 %v2161_v55  ;;  %v1505_v26 = vsub.f32 %v5330_v45, %v1431_v51  ;;  %v1438_v30 = vrot.slane %v5380_v6, 4  ;;  %v5393_v18 = vadd.f32 %v5320_v20, %v4696_v47 }
 0x1bc   : > { %v1339_v35 = vmax.f32 %v1337_v53, %v1338_v33  ;;  %v5395_v5 = vpop.eup %4279  ;;  %v1628_v23 = vmul.f32 1.442695, %v1504_v17  ;;  %v1335_v7 = vmax.f32 %v1333_v46, %v1334_v42  ;;  %v1817_v63 = vadd.f32 %v5189_v14, %v1816_v36 }
 0x1bd   : > { %v1823_v28 = vadd.f32 %v5222_v40, %v1822_v32  ;;  %v5399_v31 = vpop.eup %4281  ;;  %v1436_v43 = vrot.slane %v1435_v13, 1  ;;  %v1439_v45 = vmax.f32 %v5380_v6, %v1438_v30  ;;  %v1342_v4 = vrot.slane %v5393_v18, 4 }
 0x1be   : > { %v1340_v12 = vrot.slane %v1339_v35, 1  ;;  %4291 = vpow2.f32 %v1594_v10  ;;  %v1596_v2 = vmul.f32 1.442695, %v1488_v25  ;;  %v1818_v20 = vrot.slane %v1817_v63, 2 }
 0x1bf   : > { %v1824_v22 = vrot.slane %v1823_v28, 2  ;;  %v1630_v51 = vmul.f32 1.442695, %v1505_v26  ;;  %v1440_v46 = vrot.slane %v1439_v45, 2  ;;  %v1343_v17 = vmax.f32 %v5393_v18, %v1342_v4 }
 0x1c0   : > { %v1341_v53 = vmax.f32 %v1339_v35, %v1340_v12  ;;  %v5404_v42 = vpop.eup %4283  ;;  %v1489_v19 = vsub.f32 %v5344_v52, %v1335_v7  ;;  %v1819_v55 = vadd.f32 %v1818_v20, %v1817_v63  ;;  %v5409_v36 = vadd.f32 %v5347_v54, %v4696_v47  ;;  %v5413_v12 = vpop.f32.mrf.mxu0 }
 0x1c1   : > { %v1825_v33 = vadd.f32 %v1824_v22, %v1823_v28  ;;  %4293 = vpow2.f32 %v1628_v23  ;;  %v1437_v10 = vmax.f32 %v1435_v13, %v1436_v43  ;;  %v1344_v32 = vrot.slane %v1343_v17, 2  ;;  %6064 = vst [vmem:[#allocation57_spill] sm:$0xff] %v5413_v12 }
 0x1c2   : > { %v1490_v25 = vsub.f32 %v5366_v59, %v1341_v53  ;;  %4295 = vpow2.f32 %v1596_v2  ;;  %v1820_v26 = vrot.slane %v1819_v55, 1  ;;  %v1348_v30 = vrot.slane %v5409_v36, 4 }
 0x1c3   : > { %v1826_v35 = vrot.slane %v1825_v33, 1  ;;  %4297 = vpow2.f32 %v1630_v51  ;;  %v1441_v52 = vmax.f32 %v1439_v45, %v1440_v46  ;;  %v1345_v7 = vmax.f32 %v1343_v17, %v1344_v32  ;;  %v995_v17 = vpop.f32.mrf.mxu0 }
 0x1c4   : > { %v1828_v63 = vrot.slane %v5229_v29, 4  ;;  %v4286_v28 = vpop.eup %4285  ;;  %v1598_v54 = vmul.f32 1.442695, %v1489_v19  ;;  %v1821_v4 = vadd.f32 %v1820_v26, %v1819_v55  ;;  %v1349_v13 = vmax.f32 %v5409_v36, %v1348_v30 }
 0x1c5   : > { %v1827_v23 = vadd.f32 %v1826_v35, %v1825_v33  ;;  %v4288_v59 = vpop.eup %4287  ;;  %v2112_v43 = vmul.f32 %v4286_v28, %v5139_v50  ;;  %v1506_v2 = vsub.f32 %v5356_v39, %v1437_v10  ;;  %v1600_v20 = vmul.f32 1.442695, %v1490_v25  ;;  %v5438_v28 = vpop.f32.mrf.mxu0 }
 0x1c6   : > { %v1346_v22 = vrot.slane %v1345_v7, 1  ;;  %v5419_v53 = vpop.eup %4289  ;;  %v2113_v45 = vmul.f32 %v4288_v59, %v5156_v3  ;;  %4299 = vrcp.f32 %v1821_v4  ;;  %v1350_v51 = vrot.slane %v1349_v13, 2  ;;  %6065 = vst [vmem:[#allocation58_spill] sm:$0xff] %v5438_v28 }
 0x1c7   : > { %v1829_v46 = vadd.f32 %v5229_v29, %v1828_v63  ;;  %v1442_v19 = vrot.slane %v1441_v52, 1  ;;  %4301 = vrcp.f32 %v1827_v23  ;;  %v1834_v33 = vrot.slane %v5238_v61, 4 }
 0x1c8   : > { %v1347_v55 = vmax.f32 %v1345_v7, %v1346_v22  ;;  %v2162_v32 = vpack.c.bf16 %v2113_v45, %v2112_v43  ;;  %v1351_v50 = vmax.f32 %v1349_v13, %v1350_v51  ;;  %v5426_v39 = vadd.f32 %v5374_v38, %v4696_v47 }
 0x1c9   : > { %v1830_v26 = vrot.slane %v1829_v46, 2  ;;  %v5430_v3 = vadd.f32 %v4783_v9, %v4622_v21  ;;  %4303 = vpow2.f32 %v1598_v54  ;;  %v1835_v25 = vadd.f32 %v5238_v61, %v1834_v33 }
 0x1ca   : > { %v1491_v10 = vsub.f32 %v5393_v18, %v1347_v55  ;;  %3956 = vmatprep.mubr.bf16.mxu1 %v2162_v32  ;;  %v1352_v35 = vrot.slane %v1351_v50, 1  ;;  %v1354_v7 = vrot.slane %v5426_v39, 4  ;;  %v5436_v63 = vadd.f32 %v991_v15, %v4696_v47 }
 0x1cb   : > { %v1831_v30 = vadd.f32 %v1830_v26, %v1829_v46  ;;  %v5440_v38 = vpop.eup %4291  ;;  %v5444_v9 = vadd.f32 %v4791_v27, %v4622_v21  ;;  %v5446_v54 = vmul.f32 1.442695, %v1506_v2  ;;  %4305 = vpow2.f32 %v1600_v20 }
 0x1cc   : > { %v1836_v18 = vrot.slane %v1835_v25, 2  ;;  %v5448_v4 = vmax.f32 %v1441_v52, %v1442_v19  ;;  %v1355_v13 = vmax.f32 %v5426_v39, %v1354_v7  ;;  %v1360_v15 = vrot.slane %v5436_v63, 4  ;;  %v1001_v52 = vpop.f32.mrf.mxu0 }
 0x1cd   : > { %v1832_v23 = vrot.slane %v1831_v30, 1  ;;  %v1602_v59 = vmul.f32 1.442695, %v1491_v10  ;;  %v1840_v22 = vrot.slane %v5252_v34, 4  ;;  %v1846_v45 = vrot.slane %v5275_v16, 4 }
 0x1ce   : > { %v1837_v43 = vadd.f32 %v1836_v18, %v1835_v25  ;;  %v5454_v51 = vpop.eup %4293  ;;  %v1353_v27 = vmax.f32 %v1351_v50, %v1352_v35  ;;  %v1356_v46 = vrot.slane %v1355_v13, 2  ;;  %v1361_v20 = vmax.f32 %v5436_v63, %v1360_v15 }
 0x1cf   : > { %v1833_v2 = vadd.f32 %v1832_v23, %v1831_v30  ;;  %v5457_v19 = vpop.eup %4295  ;;  %v1841_v33 = vadd.f32 %v5252_v34, %v1840_v22  ;;  %v1847_v32 = vadd.f32 %v5275_v16, %v1846_v45  ;;  %v5462_v26 = vadd.f32 %v995_v17, %v4696_v47  ;;  %v5470_v17 = vpop.f32.mrf.mxu0 }
 0x1d0   : > { %v1838_v55 = vrot.slane %v1837_v43, 1  ;;  %v5464_v10 = vpop.eup %4297  ;;  %v1507_v50 = vsub.f32 %v5380_v6, %v5448_v4  ;;  %v1357_v25 = vmax.f32 %v1355_v13, %v1356_v46  ;;  %v1362_v35 = vrot.slane %v1361_v20, 2 }
 0x1d1   : > { %4307 = vrcp.f32 %v1833_v2  ;;  %v1842_v7 = vrot.slane %v1841_v33, 2  ;;  %v1848_v18 = vrot.slane %v1847_v32, 2  ;;  %v1366_v23 = vrot.slane %v5462_v26, 4 }
 0x1d2   : > { %v1839_v30 = vadd.f32 %v1838_v55, %v1837_v43  ;;  %4309 = vpow2.f32 %v1602_v59  ;;  %v1492_v15 = vsub.f32 %v5409_v36, %v1353_v27  ;;  %v1358_v22 = vrot.slane %v1357_v25, 1 }
 0x1d3   : > { %v1363_v45 = vmax.f32 %v1361_v20, %v1362_v35  ;;  %v4300_v28 = vpop.eup %4299  ;;  %v1843_v12 = vadd.f32 %v1842_v7, %v1841_v33  ;;  %v1849_v58 = vadd.f32 %v1848_v18, %v1847_v32  ;;  %v1367_v6 = vmax.f32 %v5462_v26, %v1366_v23  ;;  %v1005_v7 = vpop.f32.mrf.mxu0 }
 0x1d4   : > { %4311 = vrcp.f32 %v1839_v30  ;;  %v4302_v4 = vpop.eup %4301  ;;  %v2114_v13 = vmul.f32 %v4300_v28, %v5189_v14  ;;  %v1359_v43 = vmax.f32 %v1357_v25, %v1358_v22  ;;  %v5475_v46 = vadd.f32 %v1001_v52, %v4696_v47 }
 0x1d5   : > { %v1364_v2 = vrot.slane %v1363_v45, 1  ;;  %v2115_v36 = vmul.f32 %v4302_v4, %v5222_v40  ;;  %v1844_v59 = vrot.slane %v1843_v12, 1  ;;  %v1850_v27 = vrot.slane %v1849_v58, 1 }
 0x1d6   : > { %v1368_v20 = vrot.slane %v1367_v6, 2  ;;  %v5478_v55 = vpop.eup %4303  ;;  %v1604_v35 = vmul.f32 1.442695, %v1492_v15  ;;  %v1493_v33 = vsub.f32 %v5426_v39, %v1359_v43  ;;  %v1372_v30 = vrot.slane %v5475_v46, 4 }
 0x1d7   : > { %v1365_v32 = vmax.f32 %v1363_v45, %v1364_v2  ;;  %v2163_v14 = vpack.c.bf16 %v2115_v36, %v2114_v13  ;;  %v1845_v28 = vadd.f32 %v1844_v59, %v1843_v12  ;;  %v1851_v25 = vadd.f32 %v1850_v27, %v1849_v58 }
 0x1d8   : > { %v1369_v18 = vmax.f32 %v1367_v6, %v1368_v20  ;;  %v5482_v52 = vpop.eup %4305  ;;  %v1606_v23 = vmul.f32 1.442695, %v1493_v33  ;;  %v1373_v22 = vmax.f32 %v5475_v46, %v1372_v30  ;;  %v1852_v4 = vrot.slane %v5279_v8, 4 }
 0x1d9   : > { %v1494_v40 = vsub.f32 %v5436_v63, %v1365_v32  ;;  %3957 = vmatmul.mubr.bf16.gmra.mxu1 %v2163_v14  ;;  %4313 = vrcp.f32 %v1845_v28  ;;  %v1858_v15 = vrot.slane %v5291_v0, 4  ;;  %v5489_v45 = vadd.f32 %v1005_v7, %v4696_v47 }
 0x1da   : > { %v1370_v39 = vrot.slane %v1369_v18, 1  ;;  %4315 = vpow2.f32 %v1604_v35  ;;  %v1374_v12 = vrot.slane %v1373_v22, 2  ;;  %v1853_v6 = vadd.f32 %v5279_v8, %v1852_v4 }
 0x1db   : > { %v1608_v58 = vmul.f32 1.442695, %v1494_v40  ;;  %4317 = vrcp.f32 %v1851_v25  ;;  %v1859_v63 = vadd.f32 %v5291_v0, %v1858_v15  ;;  %v1378_v43 = vrot.slane %v5489_v45, 4 }
 0x1dc   : > { %v1371_v13 = vmax.f32 %v1369_v18, %v1370_v39  ;;  %v5494_v2 = vmul.f32 1.442695, %v1507_v50  ;;  %4319 = vpow2.f32 %v1606_v23  ;;  %v1375_v36 = vmax.f32 %v1373_v22, %v1374_v12 }
 0x1dd   : > { %v1854_v59 = vrot.slane %v1853_v6, 2  ;;  %v1860_v20 = vrot.slane %v1859_v63, 2  ;;  %v1379_v35 = vmax.f32 %v5489_v45, %v1378_v43  ;;  %v1864_v33 = vrot.slane %v5315_v60, 4 }
 0x1de   : > { %v4308_v27 = vpop.eup %4307  ;;  %v1495_v47 = vsub.f32 %v5462_v26, %v1371_v13  ;;  %4321 = vpow2.f32 %v1608_v58  ;;  %v1376_v32 = vrot.slane %v1375_v36, 1  ;;  %v1870_v7 = vrot.slane %v5353_v37, 4 }
 0x1df   : > { %v1855_v30 = vadd.f32 %v1854_v59, %v1853_v6  ;;  %v5500_v14 = vpop.eup %4309  ;;  %v1861_v28 = vadd.f32 %v1860_v20, %v1859_v63  ;;  %v1380_v25 = vrot.slane %v1379_v35, 2  ;;  %v1865_v18 = vadd.f32 %v5315_v60, %v1864_v33 }
 0x1e0   : > { %v1610_v50 = vmul.f32 1.442695, %v1495_v47  ;;  %v2116_v26 = vmul.f32 %v4308_v27, %v5229_v29  ;;  %v1377_v40 = vmax.f32 %v1375_v36, %v1376_v32  ;;  %v1871_v4 = vadd.f32 %v5353_v37, %v1870_v7 }
 0x1e1   : > { %v4312_v23 = vpop.eup %4311  ;;  %v1856_v22 = vrot.slane %v1855_v30, 1  ;;  %v1862_v15 = vrot.slane %v1861_v28, 1  ;;  %v1381_v58 = vmax.f32 %v1379_v35, %v1380_v25  ;;  %v1866_v13 = vrot.slane %v1865_v18, 2 }
 0x1e2   : > { %v2117_v39 = vmul.f32 %v4312_v23, %v5238_v61  ;;  %4323 = vpow2.f32 %v1610_v50  ;;  %v1496_v12 = vsub.f32 %v5475_v46, %v1377_v40  ;;  %v1872_v63 = vrot.slane %v1871_v4, 2 }
 0x1e3   : > { %v1857_v6 = vadd.f32 %v1856_v22, %v1855_v30  ;;  %v1863_v59 = vadd.f32 %v1862_v15, %v1861_v28  ;;  %v1382_v47 = vrot.slane %v1381_v58, 1  ;;  %v1876_v20 = vrot.slane %v5368_v41, 4 }
 0x1e4   : > { %v2164_v43 = vpack.c.bf16 %v2117_v39, %v2116_v26  ;;  %v1612_v29 = vmul.f32 1.442695, %v1496_v12  ;;  %v1867_v36 = vadd.f32 %v1866_v13, %v1865_v18  ;;  %v1873_v27 = vadd.f32 %v1872_v63, %v1871_v4 }
 0x1e5   : > { %4325 = vrcp.f32 %v1857_v6  ;;  %v1383_v61 = vmax.f32 %v1381_v58, %v1382_v47  ;;  %v1877_v33 = vadd.f32 %v5368_v41, %v1876_v20  ;;  %v1882_v35 = vrot.slane %v5395_v5, 4 }
 0x1e6   : > { %3960 = vmatprep.mubr.bf16.mxu1 %v2164_v43  ;;  %4327 = vrcp.f32 %v1863_v59  ;;  %v4314_v46 = vpop.eup %4313  ;;  %v1868_v32 = vrot.slane %v1867_v36, 1  ;;  %v1874_v30 = vrot.slane %v1873_v27, 1  ;;  %v1888_v7 = vrot.slane %v5404_v42, 4 }
 0x1e7   : > { %4329 = vpow2.f32 %v1612_v29  ;;  %v5511_v50 = vpop.eup %4315  ;;  %v2118_v28 = vmul.f32 %v4314_v46, %v5252_v34  ;;  %v1497_v25 = vsub.f32 %v5489_v45, %v1383_v61  ;;  %v1878_v18 = vrot.slane %v1877_v33, 2 }
 0x1e8   : > { %v1883_v23 = vadd.f32 %v5395_v5, %v1882_v35  ;;  %v4318_v26 = vpop.eup %4317  ;;  %v1869_v40 = vadd.f32 %v1868_v32, %v1867_v36  ;;  %v1875_v22 = vadd.f32 %v1874_v30, %v1873_v27  ;;  %v1889_v4 = vadd.f32 %v5404_v42, %v1888_v7 }
 0x1e9   : > { %v1894_v39 = vrot.slane %v5440_v38, 4  ;;  %v5518_v15 = vpop.eup %4319  ;;  %v2119_v58 = vmul.f32 %v4318_v26, %v5275_v16  ;;  %v1614_v12 = vmul.f32 1.442695, %v1497_v25  ;;  %v1879_v6 = vadd.f32 %v1878_v18, %v1877_v33 }
 0x1ea   : > { %v1884_v13 = vrot.slane %v1883_v23, 2  ;;  %4331 = vrcp.f32 %v1869_v40  ;;  %v1890_v34 = vrot.slane %v1889_v4, 2  ;;  %v1900_v63 = vrot.slane %v5457_v19, 4 }
 0x1eb   : > { %v1895_v45 = vadd.f32 %v5440_v38, %v1894_v39  ;;  %v5523_v43 = vpop.eup %4321  ;;  %v2165_v59 = vpack.c.bf16 %v2119_v58, %v2118_v28  ;;  %4333 = vpow2.f32 %v1614_v12  ;;  %v1880_v47 = vrot.slane %v1879_v6, 1  ;;  %v5534_v58 = vpop.f32.mrf.mxu1 }
 0x1ec   : > { %v1885_v20 = vadd.f32 %v1884_v13, %v1883_v23  ;;  %4335 = vrcp.f32 %v1875_v22  ;;  %v1891_v29 = vadd.f32 %v1890_v34, %v1889_v4  ;;  %v1901_v16 = vadd.f32 %v5457_v19, %v1900_v63 }
 0x1ed   : > { %v1896_v36 = vrot.slane %v1895_v45, 2  ;;  %3961 = vmatmul.mubr.bf16.gmra.mxu1 %v2165_v59  ;;  %v1881_v27 = vadd.f32 %v1880_v47, %v1879_v6  ;;  %v1906_v33 = vrot.slane %v5478_v55, 4  ;;  %v1912_v35 = vrot.slane %v5482_v52, 4 }
 0x1ee   : > { %v1886_v61 = vrot.slane %v1885_v20, 1  ;;  %v1892_v32 = vrot.slane %v1891_v29, 1  ;;  %v1902_v7 = vrot.slane %v1901_v16, 2  ;;  %v1918_v28 = vrot.slane %v5500_v14, 4 }
 0x1ef   : > { %v5528_v46 = vpop.eup %4323  ;;  %v1897_v30 = vadd.f32 %v1896_v36, %v1895_v45  ;;  %4337 = vrcp.f32 %v1881_v27  ;;  %v1907_v18 = vadd.f32 %v5478_v55, %v1906_v33  ;;  %v1913_v23 = vadd.f32 %v5482_v52, %v1912_v35  ;;  %v3930_v27 = vpop.f32.mrf.mxu1 }
 0x1f0   : > { %v1887_v25 = vadd.f32 %v1886_v61, %v1885_v20  ;;  %v1893_v26 = vadd.f32 %v1892_v32, %v1891_v29  ;;  %v1903_v22 = vadd.f32 %v1902_v7, %v1901_v16  ;;  %v1919_v4 = vadd.f32 %v5500_v14, %v1918_v28 }
 0x1f1   : > { %v1898_v40 = vrot.slane %v1897_v30, 1  ;;  %v1908_v12 = vrot.slane %v1907_v18, 2  ;;  %v1914_v6 = vrot.slane %v1913_v23, 2  ;;  %v1924_v13 = vrot.slane %v5511_v50, 4 }
 0x1f2   : > { %v4326_v39 = vpop.eup %4325  ;;  %4339 = vrcp.f32 %v1887_v25  ;;  %v1904_v59 = vrot.slane %v1903_v22, 1  ;;  %v1920_v16 = vrot.slane %v1919_v4, 2  ;;  %v1930_v35 = vrot.slane %v5518_v15, 4 }
 0x1f3   : > { %v4328_v34 = vpop.eup %4327  ;;  %v2120_v45 = vmul.f32 %v4326_v39, %v5279_v8  ;;  %v1899_v63 = vadd.f32 %v1898_v40, %v1897_v30  ;;  %4341 = vrcp.f32 %v1893_v26  ;;  %v1909_v29 = vadd.f32 %v1908_v12, %v1907_v18 }
 0x1f4   : > { %v5538_v47 = vpop.eup %4329  ;;  %v2121_v20 = vmul.f32 %v4328_v34, %v5291_v0  ;;  %v1915_v36 = vadd.f32 %v1914_v6, %v1913_v23  ;;  %v1905_v61 = vadd.f32 %v1904_v59, %v1903_v22  ;;  %v1925_v33 = vadd.f32 %v5511_v50, %v1924_v13  ;;  %v2278_v22 = vpop.f32.mrf.mxu1 }
 0x1f5   : > { %4343 = vrcp.f32 %v1899_v63  ;;  %v1910_v7 = vrot.slane %v1909_v29, 1  ;;  %v1921_v30 = vadd.f32 %v1920_v16, %v1919_v4  ;;  %v1931_v25 = vadd.f32 %v5518_v15, %v1930_v35 }
 0x1f6   : > { %v2166_v32 = vpack.c.bf16 %v2121_v20, %v2120_v45  ;;  %v1916_v8 = vrot.slane %v1915_v36, 1  ;;  %4345 = vrcp.f32 %v1905_v61  ;;  %v1926_v28 = vrot.slane %v1925_v33, 2 }
 0x1f7   : > { %v2535_v0 = vmul.f32 %v3930_v27, %v5011_v44  ;;  %v4332_v18 = vpop.eup %4331  ;;  %v1911_v23 = vadd.f32 %v1910_v7, %v1909_v29  ;;  %v1922_v40 = vrot.slane %v1921_v30, 1  ;;  %v1932_v13 = vrot.slane %v1931_v25, 2  ;;  %v3931_v27 = vpop.f32.mrf.mxu1  ;;  %v6066_v7 = vld [vmem:[#allocation22_spill] sm:$0xff] }
 0x1f8   : > { %3964 = vmatprep.mubr.bf16.mxu1 %v2166_v32  ;;  %v1917_v26 = vadd.f32 %v1916_v8, %v1915_v36  ;;  %v5545_v39 = vpop.eup %4333  ;;  %v2122_v12 = vmul.f32 %v4332_v18, %v5315_v60  ;;  %v1927_v6 = vadd.f32 %v1926_v28, %v1925_v33  ;;  %v1936_v44 = vrot.slane %v5523_v43, 4 }
 0x1f9   : > { %v2612_v4 = vsel %vm2597_vm1, %v2535_v0, 0.0  ;;  %v4336_v34 = vpop.eup %4335  ;;  %4347 = vrcp.f32 %v1911_v23  ;;  %v1923_v45 = vadd.f32 %v1922_v40, %v1921_v30  ;;  %v1933_v29 = vadd.f32 %v1932_v13, %v1931_v25 }
 0x1fa   : > { %v2613_v63 = vrot.slane %v2612_v4, 4  ;;  %v2123_v59 = vmul.f32 %v4336_v34, %v5353_v37  ;;  %4349 = vrcp.f32 %v1917_v26  ;;  %v1928_v20 = vrot.slane %v1927_v6, 1  ;;  %v6067_v26 = vld [vmem:[#allocation27_spill] sm:$0xff]  ;;  %v2281_v34 = vpop.f32.mrf.mxu1 }
 0x1fb   : > { %4351 = vrcp.f32 %v1923_v45  ;;  %v1937_v16 = vadd.f32 %v5523_v43, %v1936_v44  ;;  %v1942_v60 = vrot.slane %v5528_v46, 4  ;;  %v1934_v32 = vrot.slane %v1933_v29, 1 }
 0x1fc   : > { %v2614_v36 = vadd.f32 %v2613_v63, %v2612_v4  ;;  %v4338_v61 = vpop.eup %4337  ;;  %v2167_v33 = vpack.c.bf16 %v2123_v59, %v2122_v12  ;;  %v1929_v35 = vadd.f32 %v1928_v20, %v1927_v6  ;;  %v2533_v8 = vmul.f32 %v2278_v22, %v6066_v7 }
 0x1fd   : > { %v2124_v30 = vmul.f32 %v4338_v61, %v5368_v41  ;;  %v1938_v37 = vrot.slane %v1937_v16, 2  ;;  %v1943_v0 = vadd.f32 %v5528_v46, %v1942_v60  ;;  %v1935_v18 = vadd.f32 %v1934_v32, %v1933_v29 }
 0x1fe   : > { %v2615_v28 = vrot.slane %v2614_v36, 2  ;;  %3965 = vmatmul.mubr.bf16.gmra.mxu1 %v2167_v33  ;;  %4353 = vrcp.f32 %v1929_v35  ;;  %v2598_v23 = vsel %vm2597_vm1, %v2533_v8, 0.0  ;;  %v2536_v40 = vmul.f32 %v3931_v27, %v6067_v26 }
 0x1ff   : > { %v4340_v25 = vpop.eup %4339  ;;  %v1939_v4 = vadd.f32 %v1938_v37, %v1937_v16  ;;  %v1944_v22 = vrot.slane %v1943_v0, 2  ;;  %4355 = vrcp.f32 %v1935_v18  ;;  %v2599_v45 = vrot.slane %v2598_v23, 4 }
 0x200   : > { %v4342_v13 = vpop.eup %4341  ;;  %v2125_v12 = vmul.f32 %v4340_v25, %v5395_v5  ;;  %v2616_v6 = vadd.f32 %v2615_v28, %v2614_v36  ;;  %v2619_v63 = vsel %vm2597_vm1, %v2536_v40, 0.0  ;;  %v6068_v5 = vld [vmem:[#allocation24_spill] sm:$0xff]  ;;  %4357 = vpow2.f32 %v5446_v54 }
 0x201   : > { %v2126_v41 = vmul.f32 %v4342_v13, %v5404_v42  ;;  %v1940_v29 = vrot.slane %v1939_v4, 1  ;;  %v1945_v60 = vadd.f32 %v1944_v22, %v1943_v0  ;;  %v2600_v61 = vadd.f32 %v2599_v45, %v2598_v23 }
 0x202   : > { %v4344_v44 = vpop.eup %4343  ;;  %v2168_v59 = vpack.c.bf16 %v2125_v12, %v2124_v30  ;;  %v2617_v20 = vrot.slane %v2616_v6, 1  ;;  %v2620_v33 = vrot.slane %v2619_v63, 4  ;;  %v2534_v36 = vmul.f32 %v2281_v34, %v6068_v5 }
 0x203   : > { %v2127_v27 = vmul.f32 %v4344_v44, %v5440_v38  ;;  %v4346_v16 = vpop.eup %4345  ;;  %v1941_v35 = vadd.f32 %v1940_v29, %v1939_v4  ;;  %v1946_v32 = vrot.slane %v1945_v60, 1  ;;  %4359 = vpow2.f32 %v5494_v2 }
 0x204   : > { %3968 = vmatprep.mubr.bf16.mxu1 %v2168_v59  ;;  %v2618_v42 = vadd.f32 %v2617_v20, %v2616_v6  ;;  %v2601_v8 = vrot.slane %v2600_v61, 2  ;;  %v2621_v30 = vadd.f32 %v2620_v33, %v2619_v63  ;;  %v2605_v38 = vsel %vm2597_vm1, %v2534_v36, 0.0 }
 0x205   : > { %v2169_v7 = vpack.c.bf16 %v2127_v27, %v2126_v41  ;;  %v1947_v37 = vadd.f32 %v1946_v32, %v1945_v60  ;;  %4361 = vrcp.f32 %v1941_v35  ;;  %v2128_v25 = vmul.f32 %v4346_v16, %v5457_v19 }
 0x206   : > { %v3048_v28 = vpack.c.bf16 %v2618_v42, %v2618_v42  ;;  %v4348_v0 = vpop.eup %4347  ;;  %v2602_v18 = vadd.f32 %v2601_v8, %v2600_v61  ;;  %v2622_v54 = vrot.slane %v2621_v30, 2  ;;  %v2606_v23 = vrot.slane %v2605_v38, 4 }
 0x207   : > { %3969 = vmatmul.mubr.bf16.gmra.mxu1 %v2169_v7  ;;  %v4350_v26 = vpop.eup %4349  ;;  %v2129_v40 = vmul.f32 %v4348_v0, %v5478_v55  ;;  %4363 = vrcp.f32 %v1947_v37  ;;  %v1948_v2 = vrot.slane %v5538_v47, 4  ;;  %v1954_v63 = vrot.slane %v5545_v39, 4 }
 0x208   : > { %v5568_v13 = vunpack.c.l.b16 %v3048_v28  ;;  %v4352_v12 = vpop.eup %4351  ;;  %v2130_v6 = vmul.f32 %v4350_v26, %v5482_v52  ;;  %v2603_v4 = vrot.slane %v2602_v18, 1  ;;  %v2623_v22 = vadd.f32 %v2622_v54, %v2621_v30 }
 0x209   : > { %v2607_v34 = vadd.f32 %v2606_v23, %v2605_v38  ;;  %v2170_v41 = vpack.c.bf16 %v2129_v40, %v2128_v25  ;;  %v2131_v19 = vmul.f32 %v4352_v12, %v5500_v14  ;;  %v1949_v45 = vadd.f32 %v5538_v47, %v1948_v2 }
 0x20a   : > { %v2604_v44 = vadd.f32 %v2603_v4, %v2602_v18  ;;  %v2624_v55 = vrot.slane %v2623_v22, 1  ;;  %v1960_v20 = vrot.slane %v5308_v56, 4  ;;  %v1955_v27 = vadd.f32 %v5545_v39, %v1954_v63  ;;  %v3934_v18 = vpop.f32.mrf.mxu1 }
 0x20b   : > { %v2608_v59 = vrot.slane %v2607_v34, 2  ;;  %v4354_v29 = vpop.eup %4353  ;;  %3972 = vmatprep.mubr.bf16.mxu1 %v2170_v41  ;;  %v2171_v60 = vpack.c.bf16 %v2131_v19, %v2130_v6  ;;  %v1950_v52 = vrot.slane %v1949_v45, 2  ;;  %v1966_v61 = vrot.slane %v5327_v48, 4 }
 0x20c   : > { %v2132_v14 = vmul.f32 %v4354_v29, %v5511_v50  ;;  %v3046_v33 = vpack.c.bf16 %v2604_v44, %v2604_v44  ;;  %v2625_v5 = vadd.f32 %v2624_v55, %v2623_v22  ;;  %v4356_v16 = vpop.eup %4355  ;;  %v1956_v35 = vrot.slane %v1955_v27, 2 }
 0x20d   : > { %v2609_v36 = vadd.f32 %v2608_v59, %v2607_v34  ;;  %v1951_v42 = vadd.f32 %v1950_v52, %v1949_v45  ;;  %v1961_v32 = vadd.f32 %v5308_v56, %v1960_v20  ;;  %v1967_v7 = vadd.f32 %v5327_v48, %v1966_v61  ;;  %v5582_v54 = vpop.eup %4357 }
 0x20e   : > { %v2133_v8 = vmul.f32 %v4356_v16, %v5518_v15  ;;  %v3189_v30 = vunpack.c.l.b16 %v3046_v33  ;;  %v3049_v28 = vpack.c.bf16 %v2625_v5, %v2625_v5  ;;  %v1957_v0 = vadd.f32 %v1956_v35, %v1955_v27  ;;  %v2294_v16 = vpop.f32.mrf.mxu1 }
 0x20f   : > { %3973 = vmatmul.mubr.bf16.gmra.mxu1 %v2171_v60  ;;  %v2610_v37 = vrot.slane %v2609_v36, 1  ;;  %v1952_v38 = vrot.slane %v1951_v42, 1  ;;  %v1962_v50 = vrot.slane %v1961_v32, 2  ;;  %v1968_v25 = vrot.slane %v1967_v7, 2 }
 0x210   : > { %v2172_v23 = vpack.c.bf16 %v2133_v8, %v2132_v14  ;;  %v3192_v26 = vunpack.c.l.b16 %v3049_v28  ;;  %v1972_v2 = vrot.slane %v5362_v24, 4  ;;  %v5585_v12 = vpop.eup %4359  ;;  %v1958_v4 = vrot.slane %v1957_v0, 1 }
 0x211   : > { %v2611_v40 = vadd.f32 %v2610_v37, %v2609_v36  ;;  %v1953_v6 = vadd.f32 %v1952_v38, %v1951_v42  ;;  %v1963_v15 = vadd.f32 %v1962_v50, %v1961_v32  ;;  %v1969_v22 = vadd.f32 %v1968_v25, %v1967_v7  ;;  %v4123_v42 = vld [vmem:[%s6003_s4 + $0x18] sm:$0xff]   ;;  %v6069_v38 = vld [vmem:[#allocation29_spill] sm:$0xff] }
 0x212   : > { %v4362_v34 = vpop.eup %4361  ;;  %3976 = vmatprep.mubr.bf16.mxu1 %v2172_v23  ;;  %v1973_v19 = vadd.f32 %v5362_v24, %v1972_v2  ;;  %v1978_v45 = vrot.slane %v5387_v62, 4  ;;  %v2539_v63 = vmul.f32 %v3934_v18, %v5114_v11  ;;  %v1959_v55 = vadd.f32 %v1958_v4, %v1957_v0  ;;  %3992 = vmatprep.subr.bf16.mxu1 %v4123_v42  ;;  %v3935_v23 = vpop.f32.mrf.mxu1 }
 0x213   : > { %v3047_v41 = vpack.c.bf16 %v2611_v40, %v2611_v40  ;;  %v2134_v44 = vmul.f32 %v4362_v34, %v5523_v43  ;;  %4365 = vrcp.f32 %v1953_v6  ;;  %v1964_v59 = vrot.slane %v1963_v15, 1  ;;  %3993 = vmatpush3.bf16.msra.mxu1 %v4123_v42  ;;  %v6070_v40 = vld [vmem:[#allocation5_spill] sm:$0xff] }
 0x214   : > { %v4364_v20 = vpop.eup %4363  ;;  %v1970_v60 = vrot.slane %v1969_v22, 1  ;;  %v1974_v52 = vrot.slane %v1973_v19, 2  ;;  %v1979_v27 = vadd.f32 %v5387_v62, %v1978_v45  ;;  %4367 = vrcp.f32 %v1959_v55 }
 0x215   : > { %v3190_v29 = vunpack.c.l.b16 %v3047_v41  ;;  %v2135_v61 = vmul.f32 %v4364_v20, %v5528_v46  ;;  %v1965_v14 = vadd.f32 %v1964_v59, %v1963_v15  ;;  %v2640_v33 = vsel %vm2597_vm1, %v2539_v63, 0.0  ;;  %v2297_v20 = vpop.f32.mrf.mxu1 }
 0x216   : > { %v1971_v11 = vadd.f32 %v1970_v60, %v1969_v22  ;;  %v1975_v36 = vadd.f32 %v1974_v52, %v1973_v19  ;;  %v1980_v43 = vrot.slane %v1979_v27, 2  ;;  %v2641_v46 = vrot.slane %v2640_v33, 4 }
 0x217   : > { %v3254_v5 = vsel %vm3253_vm2, %v3190_v29, %v3189_v30  ;;  %v2173_v35 = vpack.c.bf16 %v2135_v61, %v2134_v44  ;;  %4369 = vrcp.f32 %v1965_v14  ;;  %v1984_v28 = vrot.slane %v5399_v31, 4  ;;  %v6071_v29 = vld [vmem:[#allocation6_spill] sm:$0xff] }
 0x218   : > { %v3256_v32 = vsel %vm3255_vm3, %v5568_v13, %v3254_v5  ;;  %4371 = vrcp.f32 %v1971_v11  ;;  %v1976_v7 = vrot.slane %v1975_v36, 1  ;;  %v1981_v8 = vadd.f32 %v1980_v43, %v1979_v27 }
 0x219   : > { %3977 = vmatmul.mubr.bf16.gmra.mxu1 %v2173_v35  ;;  %v2642_v30 = vadd.f32 %v2641_v46, %v2640_v33  ;;  %v1990_v37 = vrot.slane %v5419_v53, 4  ;;  %v2537_v0 = vmul.f32 %v2294_v16, %v6069_v38  ;;  %v1985_v18 = vadd.f32 %v5399_v31, %v1984_v28  ;;  %v6072_v33 = vld [vmem:[#allocation9_spill] sm:$0xff]  ;;  %v6073_v35 = vld [vmem:[#allocation32_spill] sm:$0xff] }
 0x21a   : > { %v1977_v50 = vadd.f32 %v1976_v7, %v1975_v36  ;;  %v1982_v25 = vrot.slane %v1981_v8, 1  ;;  %v5605_v13 = vsel %vm3257_vm4, %v3192_v26, %v3256_v32  ;;  %v5609_v2 = vadd.f32 %v6070_v40, %v4622_v21 }
 0x21b   : > { %v2643_v6 = vrot.slane %v2642_v30, 2  ;;  %v1991_v4 = vadd.f32 %v5419_v53, %v1990_v37  ;;  %v2626_v15 = vsel %vm2597_vm1, %v2537_v0, 0.0  ;;  %v1986_v34 = vrot.slane %v1985_v18, 2 }
 0x21c   : > { %v1983_v22 = vadd.f32 %v1982_v25, %v1981_v8  ;;  %4373 = vrcp.f32 %v1977_v50  ;;  %v2627_v41 = vrot.slane %v2626_v15, 4  ;;  %v1996_v26 = vrot.slane %v5454_v51, 4  ;;  %v3938_v46 = vpop.f32.mrf.mxu1 }
 0x21d   : > { %v2644_v19 = vadd.f32 %v2643_v6, %v2642_v30  ;;  %v1992_v45 = vrot.slane %v1991_v4, 2  ;;  %v2002_v63 = vrot.slane %v5464_v10, 4  ;;  %v1987_v44 = vadd.f32 %v1986_v34, %v1985_v18 }
 0x21e   : > { %4375 = vrcp.f32 %v1983_v22  ;;  %v2628_v55 = vadd.f32 %v2627_v41, %v2626_v15  ;;  %v2540_v59 = vmul.f32 %v3935_v23, %v5150_v49  ;;  %v5618_v60 = vadd.f32 %v6071_v29, %v4622_v21  ;;  %v2310_v41 = vpop.f32.mrf.mxu1 }
 0x21f   : > { %v1993_v52 = vadd.f32 %v1992_v45, %v1991_v4  ;;  %v1997_v27 = vadd.f32 %v5454_v51, %v1996_v26  ;;  %v2003_v61 = vadd.f32 %v5464_v10, %v2002_v63  ;;  %v5624_v5 = vadd.f32 %v6072_v33, %v4622_v21 }
 0x220   : > { %v4366_v14 = vpop.eup %4365  ;;  %v1988_v11 = vrot.slane %v1987_v44, 1  ;;  %v2629_v36 = vrot.slane %v2628_v55, 2  ;;  %v2647_v43 = vsel %vm2597_vm1, %v2540_v59, 0.0  ;;  %v2645_v49 = vrot.slane %v2644_v19, 1  ;;  %v3939_v33 = vpop.f32.mrf.mxu1 }
 0x221   : > { %v1994_v16 = vrot.slane %v1993_v52, 1  ;;  %v1998_v42 = vrot.slane %v1997_v27, 2  ;;  %v2538_v32 = vmul.f32 %v2297_v20, %v6073_v35  ;;  %v4368_v7 = vpop.eup %4367  ;;  %v2004_v30 = vrot.slane %v2003_v61, 2 }
 0x222   : > { %v1989_v8 = vadd.f32 %v1988_v11, %v1987_v44  ;;  %v2630_v28 = vadd.f32 %v2629_v36, %v2628_v55  ;;  %v2648_v37 = vrot.slane %v2647_v43, 4  ;;  %v2136_v38 = vmul.f32 %v4366_v14, %v5538_v47 }
 0x223   : > { %v2137_v0 = vmul.f32 %v4368_v7, %v5545_v39  ;;  %v1995_v50 = vadd.f32 %v1994_v16, %v1993_v52  ;;  %v1999_v25 = vadd.f32 %v1998_v42, %v1997_v27  ;;  %v2005_v40 = vadd.f32 %v2004_v30, %v2003_v61 }
 0x224   : > { %v4370_v18 = vpop.eup %4369  ;;  %4377 = vrcp.f32 %v1989_v8  ;;  %v2631_v23 = vrot.slane %v2630_v28, 1  ;;  %v2649_v6 = vadd.f32 %v2648_v37, %v2647_v43  ;;  %v2646_v34 = vadd.f32 %v2645_v49, %v2644_v19 }
 0x225   : > { %v4372_v4 = vpop.eup %4371  ;;  %v2174_v15 = vpack.c.bf16 %v2137_v0, %v2136_v38  ;;  %v2138_v22 = vmul.f32 %v4370_v18, %v5308_v56  ;;  %4379 = vrcp.f32 %v1995_v50  ;;  %v2000_v47 = vrot.slane %v1999_v25, 1  ;;  %v2313_v0 = vpop.f32.mrf.mxu1  ;;  %v6074_v50 = vld [vmem:[#allocation42_spill] sm:$0xff] }
 0x226   : > { %v2139_v45 = vmul.f32 %v4372_v4, %v5327_v48  ;;  %v2632_v26 = vadd.f32 %v2631_v23, %v2630_v28  ;;  %v2006_v63 = vrot.slane %v2005_v40, 1  ;;  %v2650_v39 = vrot.slane %v2649_v6, 2 }
 0x227   : > { %3980 = vmatprep.mubr.bf16.mxu1 %v2174_v15  ;;  %v2633_v44 = vsel %vm2597_vm1, %v2538_v32, 0.0  ;;  %v2008_v55 = vrot.slane %v5582_v54, 4  ;;  %v2014_v59 = vrot.slane %v5585_v12, 4  ;;  %v2001_v52 = vadd.f32 %v2000_v47, %v1999_v25 }
 0x228   : > { %v2175_v20 = vpack.c.bf16 %v2139_v45, %v2138_v22  ;;  %v3050_v29 = vpack.c.bf16 %v2632_v26, %v2632_v26  ;;  %v2007_v56 = vadd.f32 %v2006_v63, %v2005_v40  ;;  %v2651_v27 = vadd.f32 %v2650_v39, %v2649_v6  ;;  %v6075_v22 = vld [vmem:[#allocation45_spill] sm:$0xff] }
 0x229   : > { %v4374_v19 = vpop.eup %4373  ;;  %v2634_v61 = vrot.slane %v2633_v44, 4  ;;  %v2009_v48 = vadd.f32 %v5582_v54, %v2008_v55  ;;  %v2015_v14 = vadd.f32 %v5585_v12, %v2014_v59  ;;  %4381 = vrcp.f32 %v2001_v52 }
 0x22a   : > { %3981 = vmatmul.mubr.bf16.gmra.mxu1 %v2175_v20  ;;  %v2140_v11 = vmul.f32 %v4374_v19, %v5362_v24  ;;  %v3193_v36 = vunpack.c.l.b16 %v3050_v29  ;;  %v2543_v43 = vmul.f32 %v3938_v46, %v5259_v1  ;;  %v3052_v16 = vpack.c.bf16 %v2646_v34, %v2646_v34 }
 0x22b   : > { %v4376_v49 = vpop.eup %4375  ;;  %4383 = vrcp.f32 %v2007_v56  ;;  %v2635_v42 = vadd.f32 %v2634_v61, %v2633_v44  ;;  %v2010_v35 = vrot.slane %v2009_v48, 2  ;;  %v2016_v8 = vrot.slane %v2015_v14, 2 }
 0x22c   : > { %v2141_v32 = vmul.f32 %v4376_v49, %v5387_v62  ;;  %v5642_v7 = vsel %vm3259_vm5, %v3193_v36, %v5605_v13  ;;  %v2668_v28 = vsel %vm2597_vm1, %v2543_v43, 0.0  ;;  %v2652_v30 = vrot.slane %v2651_v27, 1 }
 0x22d   : > { %v2636_v24 = vrot.slane %v2635_v42, 2  ;;  %v2011_v37 = vadd.f32 %v2010_v35, %v2009_v48  ;;  %v2669_v38 = vrot.slane %v2668_v28, 4  ;;  %v2017_v46 = vadd.f32 %v2016_v8, %v2015_v14 }
 0x22e   : > { %v2176_v1 = vpack.c.bf16 %v2141_v32, %v2140_v11  ;;  %v2541_v25 = vmul.f32 %v2310_v41, %v6074_v50  ;;  %v2544_v18 = vmul.f32 %v3939_v33, %v5269_v57  ;;  %v5647_v23 = vunpack.c.l.b16 %v3052_v16 }
 0x22f   : > { %v2637_v62 = vadd.f32 %v2636_v24, %v2635_v42  ;;  %v2012_v40 = vrot.slane %v2011_v37, 1  ;;  %v2670_v13 = vadd.f32 %v2669_v38, %v2668_v28  ;;  %v2018_v6 = vrot.slane %v2017_v46, 1 }
 0x230   : > { %3984 = vmatprep.mubr.bf16.mxu1 %v2176_v1  ;;  %v2654_v4 = vsel %vm2597_vm1, %v2541_v25, 0.0  ;;  %v2675_v15 = vsel %vm2597_vm1, %v2544_v18, 0.0  ;;  %v2542_v34 = vmul.f32 %v2313_v0, %v6075_v22  ;;  %v2653_v26 = vadd.f32 %v2652_v30, %v2651_v27 }
 0x231   : > { %v4378_v45 = vpop.eup %4377  ;;  %v2638_v47 = vrot.slane %v2637_v62, 1  ;;  %v2013_v63 = vadd.f32 %v2012_v40, %v2011_v37  ;;  %v2671_v41 = vrot.slane %v2670_v13, 2  ;;  %v2019_v44 = vadd.f32 %v2018_v6, %v2017_v46 }
 0x232   : > { %v4380_v39 = vpop.eup %4379  ;;  %v2142_v57 = vmul.f32 %v4378_v45, %v5399_v31  ;;  %v2655_v55 = vrot.slane %v2654_v4, 4  ;;  %v2676_v59 = vrot.slane %v2675_v15, 4  ;;  %v2661_v27 = vsel %vm2597_vm1, %v2542_v34, 0.0 }
 0x233   : > { %v3942_v20 = vpop.f32.mrf.mxu1  ;;  %v2143_v29 = vmul.f32 %v4380_v39, %v5419_v53  ;;  %v2639_v52 = vadd.f32 %v2638_v47, %v2637_v62  ;;  %4385 = vrcp.f32 %v2013_v63  ;;  %v2672_v56 = vadd.f32 %v2671_v41, %v2670_v13 }
 0x234   : > { %4387 = vrcp.f32 %v2019_v44  ;;  %v2656_v19 = vadd.f32 %v2655_v55, %v2654_v4  ;;  %v2677_v61 = vadd.f32 %v2676_v59, %v2675_v15  ;;  %v2662_v36 = vrot.slane %v2661_v27, 4 }
 0x235   : > { %v2326_v48 = vpop.f32.mrf.mxu1  ;;  %v2177_v14 = vpack.c.bf16 %v2143_v29, %v2142_v57  ;;  %v3051_v33 = vpack.c.bf16 %v2639_v52, %v2639_v52  ;;  %v2673_v11 = vrot.slane %v2672_v56, 1  ;;  %v2547_v49 = vmul.f32 %v3942_v20, %v5609_v2 }
 0x236   : > { %v2657_v31 = vrot.slane %v2656_v19, 2  ;;  %v2678_v43 = vrot.slane %v2677_v61, 2  ;;  %v2545_v16 = vmul.f32 %v2326_v48, %v5430_v3  ;;  %v4382_v42 = vpop.eup %4381  ;;  %v3053_v35 = vpack.c.bf16 %v2653_v26, %v2653_v26 }
 0x237   : > { %v3943_v53 = vpop.f32.mrf.mxu1  ;;  %3985 = vmatmul.mubr.bf16.gmra.mxu1 %v2177_v14  ;;  %v2674_v32 = vadd.f32 %v2673_v11, %v2672_v56  ;;  %v2663_v8 = vadd.f32 %v2662_v36, %v2661_v27  ;;  %v2144_v24 = vmul.f32 %v4382_v42, %v5454_v51  ;;  %v2696_v0 = vsel %vm2597_vm1, %v2547_v49, 0.0 }
 0x238   : > { %v2548_v28 = vmul.f32 %v3943_v53, %v5618_v60  ;;  %v4384_v30 = vpop.eup %4383  ;;  %v2658_v37 = vadd.f32 %v2657_v31, %v2656_v19  ;;  %v2679_v38 = vadd.f32 %v2678_v43, %v2677_v61  ;;  %v3194_v2 = vunpack.c.l.b16 %v3051_v33  ;;  %v4124_v33 = vld [vmem:[%s6003_s4 + $0x10] sm:$0xff]  }
 0x239   : > { %v2145_v1 = vmul.f32 %v4384_v30, %v5464_v10  ;;  %v2664_v46 = vrot.slane %v2663_v8, 2  ;;  %v2697_v3 = vrot.slane %v2696_v0, 4  ;;  %v2682_v18 = vsel %vm2597_vm1, %v2545_v16, 0.0  ;;  %v2329_v40 = vpop.f32.mrf.mxu1  ;;  %3994 = vmatprep.subr.bf16.mxu1 %v4124_v33  ;;  %v6076_v30 = vld [vmem:[#allocation7_spill] sm:$0xff] }
 0x23a   : > { %v2659_v50 = vrot.slane %v2658_v37, 1  ;;  %v2680_v25 = vrot.slane %v2679_v38, 1  ;;  %v2703_v62 = vsel %vm2597_vm1, %v2548_v28, 0.0  ;;  %v3056_v13 = vpack.c.bf16 %v2674_v32, %v2674_v32  ;;  %3995 = vmatpush3.bf16.msra.mxu1 %v4124_v33 }
 0x23b   : > { %v2178_v60 = vpack.c.bf16 %v2145_v1, %v2144_v24  ;;  %v2665_v6 = vadd.f32 %v2664_v46, %v2663_v8  ;;  %v2698_v51 = vadd.f32 %v2697_v3, %v2696_v0  ;;  %v2683_v22 = vrot.slane %v2682_v18, 4  ;;  %v6077_v1 = vld [vmem:[#allocation10_spill] sm:$0xff] }
 0x23c   : > { %v2660_v4 = vadd.f32 %v2659_v50, %v2658_v37  ;;  %v2681_v15 = vadd.f32 %v2680_v25, %v2679_v38  ;;  %v2704_v34 = vrot.slane %v2703_v62, 4  ;;  %v2546_v26 = vmul.f32 %v2329_v40, %v5444_v9 }
 0x23d   : > { %3988 = vmatprep.mubr.bf16.mxu1 %v2178_v60  ;;  %v2666_v10 = vrot.slane %v2665_v6, 1  ;;  %v2699_v45 = vrot.slane %v2698_v51, 2  ;;  %v3196_v47 = vunpack.c.l.b16 %v3053_v35  ;;  %v2684_v41 = vadd.f32 %v2683_v22, %v2682_v18  ;;  %v4125_v60 = vld [vmem:[%s6003_s4 + $0x8] sm:$0xff]  }
 0x23e   : > { %v3054_v63 = vpack.c.bf16 %v2660_v4, %v2660_v4  ;;  %v2705_v39 = vadd.f32 %v2704_v34, %v2703_v62  ;;  %v3057_v57 = vpack.c.bf16 %v2681_v15, %v2681_v15  ;;  %v2689_v55 = vsel %vm2597_vm1, %v2546_v26, 0.0  ;;  %3996 = vmatprep.subr.bf16.mxu1 %v4125_v60 }
 0x23f   : > { %v2667_v44 = vadd.f32 %v2666_v10, %v2665_v6  ;;  %v3262_v59 = vsel %vm3261_vm6, %v3194_v2, %v5642_v7  ;;  %v3199_v29 = vunpack.c.l.b16 %v3056_v13  ;;  %v2700_v52 = vadd.f32 %v2699_v45, %v2698_v51  ;;  %v4126_v13 = vld [vmem:[%s6003_s4] sm:$0xff]   ;;  %v6078_v6 = vld [vmem:[#allocation8_spill] sm:$0xff]  ;;  %3997 = vmatpush3.bf16.msra.mxu1 %v4125_v60 }
 0x240   : > { %v4386_v20 = vpop.eup %4385  ;;  %v2685_v56 = vrot.slane %v2684_v41, 2  ;;  %v2706_v19 = vrot.slane %v2705_v39, 2  ;;  %v3197_v27 = vunpack.c.l.b16 %v3054_v63  ;;  %v2690_v14 = vrot.slane %v2689_v55, 4  ;;  %3998 = vmatprep.subr.bf16.mxu1 %v4126_v13 }
 0x241   : > { %v4388_v61 = vpop.eup %4387  ;;  %v2146_v9 = vmul.f32 %v4386_v20, %v5582_v54  ;;  %v3055_v48 = vpack.c.bf16 %v2667_v44, %v2667_v44  ;;  %v3200_v7 = vunpack.c.l.b16 %v3057_v57  ;;  %v3264_v16 = vsel %vm3263_vm7, %v5647_v23, %v3262_v59 }
 0x242   : > { %v2147_v11 = vmul.f32 %v4388_v61, %v5585_v12  ;;  %v2686_v36 = vadd.f32 %v2685_v56, %v2684_v41  ;;  %v2707_v31 = vadd.f32 %v2706_v19, %v2705_v39  ;;  %v2691_v49 = vadd.f32 %v2690_v14, %v2689_v55 }
 0x243   : > { %v3198_v43 = vunpack.c.l.b16 %v3055_v48  ;;  %v2701_v53 = vrot.slane %v2700_v52, 1  ;;  %v824_v24 = vadd.f32 %v6076_v30, %v4622_v21  ;;  %v3266_v0 = vsel %vm3265_vm8, %v3196_v47, %v3264_v16  ;;  %3999 = vmatpush3.bf16.msra.mxu1 %v4126_v13 }
 0x244   : > { %v2179_v54 = vpack.c.bf16 %v2147_v11, %v2146_v9  ;;  %v2687_v42 = vrot.slane %v2686_v36, 1  ;;  %v3946_v35 = vpop.f32.mrf.mxu1  ;;  %v2708_v8 = vrot.slane %v2707_v31, 1  ;;  %v2692_v12 = vrot.slane %v2691_v49, 2 }
 0x245   : > { %v3267_v32 = vsel %vm3253_vm2, %v3198_v43, %v3197_v27  ;;  %v2551_v28 = vmul.f32 %v3946_v35, %v5624_v5  ;;  %v838_v2 = vadd.f32 %v6077_v1, %v4622_v21  ;;  %v2702_v25 = vadd.f32 %v2701_v53, %v2700_v52 }
 0x246   : > { %3989 = vmatmul.mubr.bf16.gmra.mxu1 %v2179_v54  ;;  %v3268_v37 = vsel %vm3255_vm3, %v3199_v29, %v3267_v32  ;;  %v2688_v23 = vadd.f32 %v2687_v42, %v2686_v36  ;;  %v2342_v38 = vpop.f32.mrf.mxu1  ;;  %v2693_v3 = vadd.f32 %v2692_v12, %v2691_v49  ;;  %v828_v51 = vadd.f32 %v6078_v6, %v4622_v21 }
 0x247   : > { %v3269_v46 = vsel %vm3257_vm4, %v3200_v7, %v3268_v37  ;;  %v2724_v50 = vsel %vm2597_vm1, %v2551_v28, 0.0  ;;  %v2549_v62 = vmul.f32 %v2342_v38, %v824_v24  ;;  %v2709_v4 = vadd.f32 %v2708_v8, %v2707_v31 }
 0x248   : > { %v3058_v5 = vpack.c.bf16 %v2688_v23, %v2688_v23  ;;  %v2725_v18 = vrot.slane %v2724_v50, 4  ;;  %v3947_v40 = vpop.f32.mrf.mxu1  ;;  %v2694_v15 = vrot.slane %v2693_v3, 1  ;;  %v3060_v57 = vpack.c.bf16 %v2702_v25, %v2702_v25 }
 0x249   : > { %v2552_v22 = vmul.f32 %v3947_v40, %v838_v2  ;;  %v2710_v45 = vsel %vm2597_vm1, %v2549_v62, 0.0  ;;  %v3061_v20 = vpack.c.bf16 %v2709_v4, %v2709_v4 }
 0x24a   : > { %v3201_v34 = vunpack.c.l.b16 %v3058_v5  ;;  %v2726_v10 = vadd.f32 %v2725_v18, %v2724_v50  ;;  %v2345_v26 = vpop.f32.mrf.mxu1  ;;  %v2695_v47 = vadd.f32 %v2694_v15, %v2693_v3  ;;  %v2711_v63 = vrot.slane %v2710_v45, 4  ;;  %v6080_v18 = vld [vmem:[#allocation11_spill] sm:$0xff] }
 0x24b   : > { %v2731_v41 = vsel %vm2597_vm1, %v2552_v22, 0.0  ;;  %v2550_v39 = vmul.f32 %v2345_v26, %v828_v51  ;;  %v3203_v14 = vunpack.c.l.b16 %v3060_v57  ;;  %v3204_v36 = vunpack.c.l.b16 %v3061_v20  ;;  %v6081_v51 = vld [vmem:[#allocation14_spill] sm:$0xff] }
 0x24c   : > { %v3270_v44 = vsel %vm3259_vm5, %v3201_v34, %v3269_v46  ;;  %v2727_v55 = vrot.slane %v2726_v10, 2  ;;  %v2732_v59 = vrot.slane %v2731_v41, 4  ;;  %v3059_v29 = vpack.c.bf16 %v2695_v47, %v2695_v47  ;;  %v6079_v46 = vld [vmem:[#allocation13_spill] sm:$0xff]  ;;  %v6082_v47 = vld [vmem:[#allocation12_spill] sm:$0xff] }
 0x24d   : > { %v2712_v52 = vadd.f32 %v2711_v63, %v2710_v45  ;;  %v2717_v56 = vsel %vm2597_vm1, %v2550_v39, 0.0  ;;  %v854_v3 = vadd.f32 %v6079_v46, %v4622_v21  ;;  %v858_v4 = vadd.f32 %v6081_v51, %v4622_v21 }
 0x24e   : > { %v2728_v19 = vadd.f32 %v2727_v55, %v2726_v10  ;;  %v2733_v61 = vadd.f32 %v2732_v59, %v2731_v41  ;;  %v2718_v9 = vrot.slane %v2717_v56, 4  ;;  %v3202_v27 = vunpack.c.l.b16 %v3059_v29 }
 0x24f   : > { %v2713_v48 = vrot.slane %v2712_v52, 2  ;;  %v848_v63 = vadd.f32 %v6082_v47, %v4622_v21 }
 0x250   : > { %v2734_v33 = vrot.slane %v2733_v61, 2  ;;  %v2719_v11 = vadd.f32 %v2718_v9, %v2717_v56  ;;  %v2729_v31 = vrot.slane %v2728_v19, 1  ;;  %v3271_v43 = vsel %vm3261_vm6, %v3202_v27, %v3270_v44 }
 0x251   : > { %v2714_v7 = vadd.f32 %v2713_v48, %v2712_v52  ;;  %v3272_v54 = vsel %vm3263_vm7, %v3203_v14, %v3271_v43 }
 0x252   : > { %v2735_v49 = vadd.f32 %v2734_v33, %v2733_v61  ;;  %v2720_v16 = vrot.slane %v2719_v11, 2  ;;  %v3273_v42 = vsel %vm3265_vm8, %v3204_v36, %v3272_v54  ;;  %v2730_v12 = vadd.f32 %v2729_v31, %v2728_v19 }
 0x253   : > { %v2715_v53 = vrot.slane %v2714_v7, 1  ;;  %v3316_v8 = vpack.c.b16 %v3273_v42, %v3266_v0  ;;  %v844_v0 = vadd.f32 %v6080_v18, %v4622_v21  ;;  %v6084_v18 = vld [vmem:[#allocation15_spill] sm:$0xff] }
 0x254   : > { %v2736_v35 = vrot.slane %v2735_v49, 1  ;;  %v2721_v32 = vadd.f32 %v2720_v16, %v2719_v11  ;;  %v3064_v38 = vpack.c.bf16 %v2730_v12, %v2730_v12 }
 0x255   : > { %v2716_v28 = vadd.f32 %v2715_v53, %v2714_v7  ;;  %4000 = vmatprep.mubr.msk.bf16.mxu1 %vm2597_vm1, %v3316_v8 }
 0x256   : > { %v2737_v30 = vadd.f32 %v2736_v35, %v2735_v49  ;;  %v2722_v24 = vrot.slane %v2721_v32, 1  ;;  %v3207_v62 = vunpack.c.l.b16 %v3064_v38 }
 0x257   : > { %v3062_v37 = vpack.c.bf16 %v2716_v28, %v2716_v28 }
 0x258   : > { %v2723_v23 = vadd.f32 %v2722_v24, %v2721_v32  ;;  %v3065_v1 = vpack.c.bf16 %v2737_v30, %v2737_v30 }
 0x259   : > { %v3205_v50 = vunpack.c.l.b16 %v3062_v37 }
 0x25a   : > { %v3063_v2 = vpack.c.bf16 %v2723_v23, %v2723_v23  ;;  %v3208_v60 = vunpack.c.l.b16 %v3065_v1 }
 0x25c   : > { %v3206_v25 = vunpack.c.l.b16 %v3063_v2  ;;  %v3950_v5 = vpop.f32.mrf.mxu1 }
 0x25d   : > { %v2555_v40 = vmul.f32 %v3950_v5, %v854_v3 }
 0x25e   : > { %v3274_v13 = vsel %vm3253_vm2, %v3206_v25, %v3205_v50  ;;  %v2358_v6 = vpop.f32.mrf.mxu1  ;;  %v6083_v50 = vld [vmem:[#allocation17_spill] sm:$0xff] }
 0x25f   : > { %v3275_v15 = vsel %vm3255_vm3, %v3207_v62, %v3274_v13  ;;  %v2752_v22 = vsel %vm2597_vm1, %v2555_v40, 0.0  ;;  %v2553_v34 = vmul.f32 %v2358_v6, %v844_v0  ;;  %v874_v25 = vadd.f32 %v6083_v50, %v4622_v21 }
 0x260   : > { %v2753_v10 = vrot.slane %v2752_v22, 4  ;;  %v3276_v45 = vsel %vm3257_vm4, %v3208_v60, %v3275_v15  ;;  %v3951_v26 = vpop.f32.mrf.mxu1  ;;  %v864_v0 = vadd.f32 %v6084_v18, %v4622_v21  ;;  %v6085_v60 = vld [vmem:[#allocation18_spill] sm:$0xff] }
 0x261   : > { %v2738_v41 = vsel %vm2597_vm1, %v2553_v34, 0.0  ;;  %v2556_v39 = vmul.f32 %v3951_v26, %v858_v4  ;;  %v878_v13 = vadd.f32 %v6085_v60, %v4622_v21 }
 0x262   : > { %v2754_v57 = vadd.f32 %v2753_v10, %v2752_v22  ;;  %v2739_v44 = vrot.slane %v2738_v41, 4  ;;  %v2361_v55 = vpop.f32.mrf.mxu1  ;;  %v6086_v22 = vld [vmem:[#allocation16_spill] sm:$0xff] }
 0x263   : > { %v2759_v59 = vsel %vm2597_vm1, %v2556_v39, 0.0  ;;  %v2554_v20 = vmul.f32 %v2361_v55, %v848_v63  ;;  %v868_v34 = vadd.f32 %v6086_v22, %v4622_v21 }
 0x264   : > { %v2755_v29 = vrot.slane %v2754_v57, 2  ;;  %v2740_v52 = vadd.f32 %v2739_v44, %v2738_v41  ;;  %v2760_v56 = vrot.slane %v2759_v59, 4 }
 0x265   : > { %v2745_v19 = vsel %vm2597_vm1, %v2554_v20, 0.0 }
 0x266   : > { %v2756_v61 = vadd.f32 %v2755_v29, %v2754_v57  ;;  %v2741_v9 = vrot.slane %v2740_v52, 2  ;;  %v2761_v27 = vadd.f32 %v2760_v56, %v2759_v59  ;;  %v2746_v48 = vrot.slane %v2745_v19, 4 }
 0x268   : > { %v2742_v14 = vadd.f32 %v2741_v9, %v2740_v52  ;;  %v2762_v33 = vrot.slane %v2761_v27, 2  ;;  %v2747_v11 = vadd.f32 %v2746_v48, %v2745_v19  ;;  %v2757_v36 = vrot.slane %v2756_v61, 1 }
 0x26a   : > { %v2743_v31 = vrot.slane %v2742_v14, 1  ;;  %v2763_v7 = vadd.f32 %v2762_v33, %v2761_v27  ;;  %v2748_v43 = vrot.slane %v2747_v11, 2  ;;  %v2758_v53 = vadd.f32 %v2757_v36, %v2756_v61 }
 0x26c   : > { %v2744_v49 = vadd.f32 %v2743_v31, %v2742_v14  ;;  %v2764_v16 = vrot.slane %v2763_v7, 1  ;;  %v2749_v54 = vadd.f32 %v2748_v43, %v2747_v11  ;;  %v3068_v28 = vpack.c.bf16 %v2758_v53, %v2758_v53 }
 0x26e   : > { %v3066_v42 = vpack.c.bf16 %v2744_v49, %v2744_v49  ;;  %v2765_v35 = vadd.f32 %v2764_v16, %v2763_v7  ;;  %v2750_v32 = vrot.slane %v2749_v54, 1  ;;  %v3211_v38 = vunpack.c.l.b16 %v3068_v28 }
 0x270   : > { %v3209_v8 = vunpack.c.l.b16 %v3066_v42  ;;  %v2751_v12 = vadd.f32 %v2750_v32, %v2749_v54  ;;  %v3069_v24 = vpack.c.bf16 %v2765_v35, %v2765_v35 }
 0x272   : > { %v3277_v30 = vsel %vm3259_vm5, %v3209_v8, %v3276_v45  ;;  %v3067_v37 = vpack.c.bf16 %v2751_v12, %v2751_v12  ;;  %v3212_v1 = vunpack.c.l.b16 %v3069_v24 }
 0x274   : > { %v3210_v23 = vunpack.c.l.b16 %v3067_v37 }
 0x276   : > { %v3278_v2 = vsel %vm3261_vm6, %v3210_v23, %v3277_v30  ;;  %v6087_v23 = vld [vmem:[#allocation21_spill] sm:$0xff] }
 0x277   : > { %v3279_v46 = vsel %vm3263_vm7, %v3211_v38, %v3278_v2  ;;  %v894_v38 = vadd.f32 %v6087_v23, %v4622_v21  ;;  %v6088_v2 = vld [vmem:[#allocation19_spill] sm:$0xff] }
 0x278   : > { %v5719_v3 = vsel %vm3265_vm8, %v3212_v1, %v3279_v46  ;;  %v884_v46 = vadd.f32 %v6088_v2, %v4622_v21 }
 0x27b   : > { %v3954_v5 = vpop.f32.mrf.mxu1 }
 0x27c   : > { %v2559_v62 = vmul.f32 %v3954_v5, %v874_v25  ;;  %v6089_v5 = vld [vmem:[#allocation23_spill] sm:$0xff] }
 0x27d   : > { %v2374_v40 = vpop.f32.mrf.mxu1  ;;  %v898_v18 = vadd.f32 %v6089_v5, %v4622_v21 }
 0x27e   : > { %v2780_v6 = vsel %vm2597_vm1, %v2559_v62, 0.0  ;;  %v2557_v51 = vmul.f32 %v2374_v40, %v864_v0 }
 0x27f   : > { %v2781_v4 = vrot.slane %v2780_v6, 4  ;;  %v3955_v15 = vpop.f32.mrf.mxu1 }
 0x280   : > { %v2766_v10 = vsel %vm2597_vm1, %v2557_v51, 0.0  ;;  %v2560_v45 = vmul.f32 %v3955_v15, %v878_v13  ;;  %v6090_v13 = vld [vmem:[#allocation20_spill] sm:$0xff] }
 0x281   : > { %v2782_v26 = vadd.f32 %v2781_v4, %v2780_v6  ;;  %v2767_v47 = vrot.slane %v2766_v10, 4  ;;  %v2377_v63 = vpop.f32.mrf.mxu1  ;;  %v888_v6 = vadd.f32 %v6090_v13, %v4622_v21 }
 0x282   : > { %v2787_v41 = vsel %vm2597_vm1, %v2560_v45, 0.0  ;;  %v2558_v39 = vmul.f32 %v2377_v63, %v868_v34 }
 0x283   : > { %v2783_v57 = vrot.slane %v2782_v26, 2  ;;  %v2768_v44 = vadd.f32 %v2767_v47, %v2766_v10  ;;  %v2788_v55 = vrot.slane %v2787_v41, 4 }
 0x284   : > { %v2773_v59 = vsel %vm2597_vm1, %v2558_v39, 0.0 }
 0x285   : > { %v2784_v20 = vadd.f32 %v2783_v57, %v2782_v26  ;;  %v2769_v29 = vrot.slane %v2768_v44, 2  ;;  %v2789_v52 = vadd.f32 %v2788_v55, %v2787_v41  ;;  %v2774_v56 = vrot.slane %v2773_v59, 4 }
 0x287   : > { %v2770_v19 = vadd.f32 %v2769_v29, %v2768_v44  ;;  %v2790_v61 = vrot.slane %v2789_v52, 2  ;;  %v2775_v9 = vadd.f32 %v2774_v56, %v2773_v59  ;;  %v2785_v27 = vrot.slane %v2784_v20, 1 }
 0x289   : > { %v2771_v48 = vrot.slane %v2770_v19, 1  ;;  %v2791_v14 = vadd.f32 %v2790_v61, %v2789_v52  ;;  %v2776_v33 = vrot.slane %v2775_v9, 2  ;;  %v2786_v7 = vadd.f32 %v2785_v27, %v2784_v20  ;;  %v4127_v52 = vld [vmem:[%s6005_s6 + $0x18] sm:$0xff]  }
 0x28a   : > { %4008 = vmatprep.subr.bf16.mxu1 %v4127_v52 }
 0x28b   : > { %v2772_v11 = vadd.f32 %v2771_v48, %v2770_v19  ;;  %v2792_v36 = vrot.slane %v2791_v14, 1  ;;  %v2777_v31 = vadd.f32 %v2776_v33, %v2775_v9  ;;  %v3072_v53 = vpack.c.bf16 %v2786_v7, %v2786_v7  ;;  %v6091_v7 = vld [vmem:[#allocation28_spill] sm:$0xff] }
 0x28d   : > { %v2793_v43 = vadd.f32 %v2792_v36, %v2791_v14  ;;  %v2778_v49 = vrot.slane %v2777_v31, 1  ;;  %v3070_v16 = vpack.c.bf16 %v2772_v11, %v2772_v11  ;;  %v3215_v12 = vunpack.c.l.b16 %v3072_v53  ;;  %v6092_v53 = vld [vmem:[#allocation25_spill] sm:$0xff] }
 0x28f   : > { %v2779_v54 = vadd.f32 %v2778_v49, %v2777_v31  ;;  %v3073_v42 = vpack.c.bf16 %v2793_v43, %v2793_v43  ;;  %v3213_v32 = vunpack.c.l.b16 %v3070_v16  ;;  %v914_v43 = vadd.f32 %v6091_v7, %v4622_v21 }
 0x291   : > { %v3071_v35 = vpack.c.bf16 %v2779_v54, %v2779_v54  ;;  %v3216_v28 = vunpack.c.l.b16 %v3073_v42  ;;  %v904_v42 = vadd.f32 %v6092_v53, %v4622_v21 }
 0x293   : > { %v3214_v8 = vunpack.c.l.b16 %v3071_v35 }
 0x295   : > { %v3281_v30 = vsel %vm3253_vm2, %v3214_v8, %v3213_v32 }
 0x296   : > { %v3282_v24 = vsel %vm3255_vm3, %v3215_v12, %v3281_v30 }
 0x297   : > { %v3283_v37 = vsel %vm3257_vm4, %v3216_v28, %v3282_v24  ;;  %v6093_v24 = vld [vmem:[#allocation30_spill] sm:$0xff] }
 0x298   : > { %v918_v23 = vadd.f32 %v6093_v24, %v4622_v21 }
 0x299   : > { %v3958_v1 = vpop.f32.mrf.mxu1 }
 0x29a   : > { %v2563_v50 = vmul.f32 %v3958_v1, %v894_v38 }
 0x29b   : > { %v2390_v25 = vpop.f32.mrf.mxu1 }
 0x29c   : > { %v2808_v0 = vsel %vm2597_vm1, %v2563_v50, 0.0  ;;  %v2561_v62 = vmul.f32 %v2390_v25, %v884_v46  ;;  %v6094_v25 = vld [vmem:[#allocation26_spill] sm:$0xff] }
 0x29d   : > { %v2809_v40 = vrot.slane %v2808_v0, 4  ;;  %v3959_v60 = vpop.f32.mrf.mxu1  ;;  %v908_v5 = vadd.f32 %v6094_v25, %v4622_v21 }
 0x29e   : > { %v2794_v51 = vsel %vm2597_vm1, %v2561_v62, 0.0  ;;  %v2564_v4 = vmul.f32 %v3959_v60, %v898_v18 }
 0x29f   : > { %v2810_v15 = vadd.f32 %v2809_v40, %v2808_v0  ;;  %v2795_v22 = vrot.slane %v2794_v51, 4  ;;  %v2393_v34 = vpop.f32.mrf.mxu1 }
 0x2a0   : > { %v2815_v10 = vsel %vm2597_vm1, %v2564_v4, 0.0  ;;  %v2562_v45 = vmul.f32 %v2393_v34, %v888_v6 }
 0x2a1   : > { %v2811_v26 = vrot.slane %v2810_v15, 2  ;;  %v2796_v47 = vadd.f32 %v2795_v22, %v2794_v51  ;;  %v2816_v63 = vrot.slane %v2815_v10, 4 }
 0x2a2   : > { %v2801_v41 = vsel %vm2597_vm1, %v2562_v45, 0.0 }
 0x2a3   : > { %v2812_v39 = vadd.f32 %v2811_v26, %v2810_v15  ;;  %v2797_v57 = vrot.slane %v2796_v47, 2  ;;  %v2817_v44 = vadd.f32 %v2816_v63, %v2815_v10  ;;  %v2802_v55 = vrot.slane %v2801_v41, 4 }
 0x2a5   : > { %v2798_v59 = vadd.f32 %v2797_v57, %v2796_v47  ;;  %v2818_v20 = vrot.slane %v2817_v44, 2  ;;  %v2803_v29 = vadd.f32 %v2802_v55, %v2801_v41  ;;  %v2813_v56 = vrot.slane %v2812_v39, 1 }
 0x2a7   : > { %v2799_v19 = vrot.slane %v2798_v59, 1  ;;  %v2819_v61 = vadd.f32 %v2818_v20, %v2817_v44  ;;  %v2804_v9 = vrot.slane %v2803_v29, 2  ;;  %v2814_v33 = vadd.f32 %v2813_v56, %v2812_v39 }
 0x2a9   : > { %v2800_v27 = vadd.f32 %v2799_v19, %v2798_v59  ;;  %v2820_v48 = vrot.slane %v2819_v61, 1  ;;  %v2805_v14 = vadd.f32 %v2804_v9, %v2803_v29  ;;  %v3076_v35 = vpack.c.bf16 %v2814_v33, %v2814_v33 }
 0x2ab   : > { %v3074_v11 = vpack.c.bf16 %v2800_v27, %v2800_v27  ;;  %v2821_v36 = vadd.f32 %v2820_v48, %v2819_v61  ;;  %v2806_v31 = vrot.slane %v2805_v14, 1  ;;  %v3219_v18 = vunpack.c.l.b16 %v3076_v35  ;;  %v6095_v48 = vld [vmem:[#allocation34_spill] sm:$0xff] }
 0x2ad   : > { %v3217_v49 = vunpack.c.l.b16 %v3074_v11  ;;  %v2807_v16 = vadd.f32 %v2806_v31, %v2805_v14  ;;  %v3962_v54 = vpop.f32.mrf.mxu1  ;;  %v3077_v12 = vpack.c.bf16 %v2821_v36, %v2821_v36  ;;  %v6096_v11 = vld [vmem:[#allocation31_spill] sm:$0xff]  ;;  %v6097_v31 = vld [vmem:[#allocation33_spill] sm:$0xff] }
 0x2ae   : > { %v2567_v32 = vmul.f32 %v3962_v54, %v914_v43  ;;  %v924_v36 = vadd.f32 %v6096_v11, %v4622_v21  ;;  %v928_v7 = vadd.f32 %v6097_v31, %v4622_v21  ;;  %v6099_v54 = vld [vmem:[#allocation37_spill] sm:$0xff] }
 0x2af   : > { %v3284_v8 = vsel %vm3259_vm5, %v3217_v49, %v3283_v37  ;;  %v3075_v28 = vpack.c.bf16 %v2807_v16, %v2807_v16  ;;  %v2406_v30 = vpop.f32.mrf.mxu1  ;;  %v3220_v37 = vunpack.c.l.b16 %v3077_v12  ;;  %v6098_v49 = vld [vmem:[#allocation36_spill] sm:$0xff]  ;;  %v944_v53 = vadd.f32 %v6099_v54, %v4622_v21  ;;  %v6101_v12 = vld [vmem:[#allocation41_spill] sm:$0xff] }
 0x2b0   : > { %v2836_v38 = vsel %vm2597_vm1, %v2567_v32, 0.0  ;;  %v2565_v1 = vmul.f32 %v2406_v30, %v904_v42  ;;  %v938_v16 = vadd.f32 %v6098_v49, %v4622_v21  ;;  %v6100_v42 = vld [vmem:[#allocation39_spill] sm:$0xff] }
 0x2b1   : > { %v3218_v2 = vunpack.c.l.b16 %v3075_v28  ;;  %v2837_v46 = vrot.slane %v2836_v38, 4  ;;  %v3963_v50 = vpop.f32.mrf.mxu1  ;;  %v948_v35 = vadd.f32 %v6100_v42, %v4622_v21  ;;  %v954_v28 = vadd.f32 %v6101_v12, %v4622_v21 }
 0x2b2   : > { %v2822_v0 = vsel %vm2597_vm1, %v2565_v1, 0.0  ;;  %v2568_v62 = vmul.f32 %v3963_v50, %v918_v23 }
 0x2b3   : > { %v3285_v40 = vsel %vm3261_vm6, %v3218_v2, %v3284_v8  ;;  %v2838_v60 = vadd.f32 %v2837_v46, %v2836_v38  ;;  %v2823_v13 = vrot.slane %v2822_v0, 4  ;;  %v2409_v6 = vpop.f32.mrf.mxu1  ;;  %v6102_v38 = vld [vmem:[#allocation44_spill] sm:$0xff] }
 0x2b4   : > { %v3286_v51 = vsel %vm3263_vm7, %v3219_v18, %v3285_v40  ;;  %v2843_v4 = vsel %vm2597_vm1, %v2568_v62, 0.0  ;;  %v2566_v15 = vmul.f32 %v2409_v6, %v908_v5  ;;  %v958_v1 = vadd.f32 %v6102_v38, %v4622_v21  ;;  %v6103_v5 = vld [vmem:[#allocation47_spill] sm:$0xff]  ;;  %v6104_v40 = vld [vmem:[#allocation49_spill] sm:$0xff] }
 0x2b5   : > { %v3287_v22 = vsel %vm3265_vm8, %v3220_v37, %v3286_v51  ;;  %v2839_v34 = vrot.slane %v2838_v60, 2  ;;  %v2824_v10 = vadd.f32 %v2823_v13, %v2822_v0  ;;  %v2844_v45 = vrot.slane %v2843_v4, 4  ;;  %v6105_v13 = vld [vmem:[#allocation51_spill] sm:$0xff] }
 0x2b6   : > { %v2829_v26 = vsel %vm2597_vm1, %v2566_v15, 0.0  ;;  %v3317_v47 = vpack.c.b16 %v3287_v22, %v5719_v3  ;;  %v934_v3 = vadd.f32 %v6095_v48, %v4622_v21  ;;  %v5788_v18 = vadd.f32 %v6103_v5, %v4622_v21  ;;  %v6108_v5 = vld [vmem:[#allocation56_spill] sm:$0xff] }
 0x2b7   : > { %v2840_v63 = vadd.f32 %v2839_v34, %v2838_v60  ;;  %v2825_v41 = vrot.slane %v2824_v10, 2  ;;  %v2845_v39 = vadd.f32 %v2844_v45, %v2843_v4  ;;  %v2830_v57 = vrot.slane %v2829_v26, 4 }
 0x2b8   : > { %4001 = vmatmul.mubr.msk.bf16.vlgmr.msra.gmra.mxu1 %vm2597_vm1, %v3317_v47  ;;  %v5793_v60 = vadd.f32 %v6104_v40, %v4622_v21  ;;  %v5797_v6 = vadd.f32 %v6105_v13, %v4622_v21 }
 0x2b9   : > { %v2826_v44 = vadd.f32 %v2825_v41, %v2824_v10  ;;  %v2846_v55 = vrot.slane %v2845_v39, 2  ;;  %v2831_v59 = vadd.f32 %v2830_v57, %v2829_v26  ;;  %4009 = vmatpush3.bf16.msra.mxu1 %v4127_v52  ;;  %v2841_v20 = vrot.slane %v2840_v63, 1 }
 0x2bb   : > { %v2827_v29 = vrot.slane %v2826_v44, 1  ;;  %v2847_v56 = vadd.f32 %v2846_v55, %v2845_v39  ;;  %v2832_v19 = vrot.slane %v2831_v59, 2  ;;  %v2842_v14 = vadd.f32 %v2841_v20, %v2840_v63 }
 0x2bd   : > { %v2828_v61 = vadd.f32 %v2827_v29, %v2826_v44  ;;  %v2848_v9 = vrot.slane %v2847_v56, 1  ;;  %v2833_v27 = vadd.f32 %v2832_v19, %v2831_v59  ;;  %v3080_v2 = vpack.c.bf16 %v2842_v14, %v2842_v14  ;;  %v6106_v14 = vld [vmem:[#allocation53_spill] sm:$0xff] }
 0x2be   : > { %v3966_v33 = vpop.f32.mrf.mxu1 }
 0x2bf   : > { %v2849_v43 = vadd.f32 %v2848_v9, %v2847_v56  ;;  %v2834_v52 = vrot.slane %v2833_v27, 1  ;;  %v2571_v32 = vmul.f32 %v3966_v33, %v934_v3  ;;  %v3078_v30 = vpack.c.bf16 %v2828_v61, %v2828_v61 }
 0x2c0   : > { %v2422_v8 = vpop.f32.mrf.mxu1  ;;  %v3223_v26 = vunpack.c.l.b16 %v3080_v2  ;;  %v978_v33 = vadd.f32 %v6106_v14, %v4622_v21 }
 0x2c1   : > { %v2835_v24 = vadd.f32 %v2834_v52, %v2833_v27  ;;  %v2569_v23 = vmul.f32 %v2422_v8, %v924_v36  ;;  %v3081_v46 = vpack.c.bf16 %v2849_v43, %v2849_v43  ;;  %v2864_v50 = vsel %vm2597_vm1, %v2571_v32, 0.0  ;;  %v6107_v43 = vld [vmem:[#allocation55_spill] sm:$0xff] }
 0x2c2   : > { %v3967_v25 = vpop.f32.mrf.mxu1  ;;  %v2865_v62 = vrot.slane %v2864_v50, 4  ;;  %v3221_v22 = vunpack.c.l.b16 %v3078_v30  ;;  %v5809_v52 = vadd.f32 %v6107_v43, %v4622_v21 }
 0x2c3   : > { %v3079_v0 = vpack.c.bf16 %v2835_v24, %v2835_v24  ;;  %v2850_v37 = vsel %vm2597_vm1, %v2569_v23, 0.0  ;;  %v2572_v4 = vmul.f32 %v3967_v25, %v938_v16  ;;  %v3224_v47 = vunpack.c.l.b16 %v3081_v46 }
 0x2c4   : > { %v2851_v51 = vrot.slane %v2850_v37, 4  ;;  %v2425_v15 = vpop.f32.mrf.mxu1  ;;  %v2866_v10 = vadd.f32 %v2865_v62, %v2864_v50 }
 0x2c5   : > { %v3222_v34 = vunpack.c.l.b16 %v3079_v0  ;;  %v2570_v45 = vmul.f32 %v2425_v15, %v928_v7  ;;  %v2871_v41 = vsel %vm2597_vm1, %v2572_v4, 0.0  ;;  %v5815_v0 = vadd.f32 %v6108_v5, %v4622_v21 }
 0x2c6   : > { %v2852_v63 = vadd.f32 %v2851_v51, %v2850_v37  ;;  %v2867_v44 = vrot.slane %v2866_v10, 2  ;;  %v2872_v55 = vrot.slane %v2871_v41, 4 }
 0x2c7   : > { %v3970_v39 = vpop.f32.mrf.mxu1  ;;  %v3288_v57 = vsel %vm3253_vm2, %v3222_v34, %v3221_v22  ;;  %v2857_v59 = vsel %vm2597_vm1, %v2570_v45, 0.0 }
 0x2c8   : > { %v3289_v20 = vsel %vm3255_vm3, %v3223_v26, %v3288_v57  ;;  %v2853_v29 = vrot.slane %v2852_v63, 2  ;;  %v2858_v56 = vrot.slane %v2857_v59, 4  ;;  %v2575_v19 = vmul.f32 %v3970_v39, %v954_v28  ;;  %v6110_v57 = vld [vmem:[#allocation58_spill] sm:$0xff] }
 0x2c9   : > { %v2438_v61 = vpop.f32.mrf.mxu1  ;;  %v2868_v9 = vadd.f32 %v2867_v44, %v2866_v10  ;;  %v3290_v27 = vsel %vm3257_vm4, %v3224_v47, %v3289_v20  ;;  %v2873_v48 = vadd.f32 %v2872_v55, %v2871_v41  ;;  %v998_v44 = vadd.f32 %v6110_v57, %v4622_v21 }
 0x2ca   : > { %v2573_v3 = vmul.f32 %v2438_v61, %v944_v53  ;;  %v2854_v11 = vadd.f32 %v2853_v29, %v2852_v63  ;;  %v2859_v36 = vadd.f32 %v2858_v56, %v2857_v59  ;;  %v2892_v31 = vsel %vm2597_vm1, %v2575_v19, 0.0 }
 0x2cb   : > { %v3971_v7 = vpop.f32.mrf.mxu1  ;;  %v2874_v49 = vrot.slane %v2873_v48, 2  ;;  %v2893_v16 = vrot.slane %v2892_v31, 4  ;;  %v2869_v28 = vrot.slane %v2868_v9, 1 }
 0x2cc   : > { %v2878_v54 = vsel %vm2597_vm1, %v2573_v3, 0.0  ;;  %v2855_v42 = vrot.slane %v2854_v11, 1  ;;  %v2860_v32 = vrot.slane %v2859_v36, 2  ;;  %v2576_v53 = vmul.f32 %v3971_v7, %v958_v1 }
 0x2cd   : > { %v2879_v8 = vrot.slane %v2878_v54, 4  ;;  %v2441_v12 = vpop.f32.mrf.mxu1  ;;  %v2875_v30 = vadd.f32 %v2874_v49, %v2873_v48  ;;  %v2894_v24 = vadd.f32 %v2893_v16, %v2892_v31  ;;  %v5820_v34 = vadd.f32 %v2869_v28, %v2868_v9 }
 0x2ce   : > { %v2574_v23 = vmul.f32 %v2441_v12, %v948_v35  ;;  %v2856_v38 = vadd.f32 %v2855_v42, %v2854_v11  ;;  %v2861_v2 = vadd.f32 %v2860_v32, %v2859_v36  ;;  %v2899_v50 = vsel %vm2597_vm1, %v2576_v53, 0.0  ;;  %v6109_v35 = vld [vmem:[#allocation57_spill] sm:$0xff] }
 0x2cf   : > { %v2880_v46 = vadd.f32 %v2879_v8, %v2878_v54  ;;  %v3974_v25 = vpop.f32.mrf.mxu1  ;;  %v2876_v62 = vrot.slane %v2875_v30, 1  ;;  %v2895_v37 = vrot.slane %v2894_v24, 2  ;;  %v2900_v40 = vrot.slane %v2899_v50, 4 }
 0x2d0   : > { %v3082_v13 = vpack.c.bf16 %v2856_v38, %v2856_v38  ;;  %v2862_v1 = vrot.slane %v2861_v2, 1  ;;  %v2885_v4 = vsel %vm2597_vm1, %v2574_v23, 0.0  ;;  %v994_v22 = vadd.f32 %v6109_v35, %v4622_v21 }
 0x2d1   : > { %v2881_v51 = vrot.slane %v2880_v46, 2  ;;  %v2454_v15 = vpop.f32.mrf.mxu1  ;;  %v2896_v10 = vadd.f32 %v2895_v37, %v2894_v24  ;;  %v2901_v45 = vadd.f32 %v2900_v40, %v2899_v50  ;;  %v2886_v41 = vrot.slane %v2885_v4, 4 }
 0x2d2   : > { %v3225_v26 = vunpack.c.l.b16 %v3082_v13  ;;  %v2863_v47 = vadd.f32 %v2862_v1, %v2861_v2  ;;  %v2579_v20 = vmul.f32 %v3974_v25, %v5797_v6  ;;  %v5828_v56 = vadd.f32 %v2876_v62, %v2875_v30 }
 0x2d3   : > { %v2882_v63 = vadd.f32 %v2881_v51, %v2880_v46  ;;  %v3975_v39 = vpop.f32.mrf.mxu1  ;;  %v2897_v55 = vrot.slane %v2896_v10, 1  ;;  %v2902_v59 = vrot.slane %v2901_v45, 2  ;;  %v2887_v61 = vadd.f32 %v2886_v41, %v2885_v4 }
 0x2d4   : > { %v5826_v29 = vsel %vm3259_vm5, %v3225_v26, %v3290_v27  ;;  %v3083_v9 = vpack.c.bf16 %v2863_v47, %v2863_v47  ;;  %v2920_v14 = vsel %vm2597_vm1, %v2579_v20, 0.0  ;;  %v3084_v36 = vpack.c.bf16 %v5820_v34, %v5820_v34 }
 0x2d5   : > { %v2883_v19 = vrot.slane %v2882_v63, 1  ;;  %v2898_v48 = vadd.f32 %v2897_v55, %v2896_v10  ;;  %v2903_v3 = vadd.f32 %v2902_v59, %v2901_v45  ;;  %v2457_v11 = vpop.f32.mrf.mxu1  ;;  %v2888_v7 = vrot.slane %v2887_v61, 2 }
 0x2d6   : > { %v2921_v43 = vrot.slane %v2920_v14, 4  ;;  %v2577_v27 = vmul.f32 %v2454_v15, %v5788_v18  ;;  %v2580_v16 = vmul.f32 %v3975_v39, %v978_v33  ;;  %v3085_v54 = vpack.c.bf16 %v5828_v56, %v5828_v56 }
 0x2d7   : > { %v2884_v31 = vadd.f32 %v2883_v19, %v2882_v63  ;;  %v3088_v6 = vpack.c.bf16 %v2898_v48, %v2898_v48  ;;  %v2904_v49 = vrot.slane %v2903_v3, 1  ;;  %v2889_v42 = vadd.f32 %v2888_v7, %v2887_v61 }
 0x2d8   : > { %v2922_v32 = vadd.f32 %v2921_v43, %v2920_v14  ;;  %v2578_v8 = vmul.f32 %v2457_v11, %v5793_v60  ;;  %v3226_v53 = vunpack.c.l.b16 %v3083_v9  ;;  %v2906_v28 = vsel %vm2597_vm1, %v2577_v27, 0.0 }
 0x2d9   : > { %v2905_v12 = vadd.f32 %v2904_v49, %v2903_v3  ;;  %v2927_v30 = vsel %vm2597_vm1, %v2580_v16, 0.0  ;;  %v3978_v24 = vpop.f32.mrf.mxu1  ;;  %v3086_v23 = vpack.c.bf16 %v2884_v31, %v2884_v31  ;;  %v2890_v38 = vrot.slane %v2889_v42, 1 }
 0x2da   : > { %v2923_v2 = vrot.slane %v2922_v32, 2  ;;  %v2907_v46 = vrot.slane %v2906_v28, 4  ;;  %v3231_v18 = vunpack.c.l.b16 %v3088_v6  ;;  %v2928_v33 = vrot.slane %v2927_v30, 4 }
 0x2db   : > { %v2913_v50 = vsel %vm2597_vm1, %v2578_v8, 0.0  ;;  %v2583_v25 = vmul.f32 %v3978_v24, %v994_v22  ;;  %v2470_v5 = vpop.f32.mrf.mxu1  ;;  %v2891_v62 = vadd.f32 %v2890_v38, %v2889_v42  ;;  %v3089_v13 = vpack.c.bf16 %v2905_v12, %v2905_v12 }
 0x2dc   : > { %v2924_v37 = vadd.f32 %v2923_v2, %v2922_v32  ;;  %v2908_v60 = vadd.f32 %v2907_v46, %v2906_v28  ;;  %v2914_v40 = vrot.slane %v2913_v50, 4  ;;  %v2929_v1 = vadd.f32 %v2928_v33, %v2927_v30 }
 0x2dd   : > { %v2948_v51 = vsel %vm2597_vm1, %v2583_v25, 0.0  ;;  %v2581_v4 = vmul.f32 %v2470_v5, %v5809_v52  ;;  %v3979_v15 = vpop.f32.mrf.mxu1  ;;  %v3087_v35 = vpack.c.bf16 %v2891_v62, %v2891_v62  ;;  %v3229_v41 = vunpack.c.l.b16 %v3086_v23 }
 0x2de   : > { %v2925_v34 = vrot.slane %v2924_v37, 1  ;;  %v2909_v10 = vrot.slane %v2908_v60, 2  ;;  %v2915_v45 = vadd.f32 %v2914_v40, %v2913_v50  ;;  %v2930_v26 = vrot.slane %v2929_v1, 2 }
 0x2df   : > { %v2949_v47 = vrot.slane %v2948_v51, 4  ;;  %v2934_v22 = vsel %vm2597_vm1, %v2581_v4, 0.0  ;;  %v2584_v63 = vmul.f32 %v3979_v15, %v998_v44  ;;  %v3230_v39 = vunpack.c.l.b16 %v3087_v35  ;;  %v2473_v44 = vpop.f32.mrf.mxu1 }
 0x2e0   : > { %v2910_v57 = vadd.f32 %v2909_v10, %v2908_v60  ;;  %v2916_v55 = vrot.slane %v2915_v45, 2  ;;  %v3232_v59 = vunpack.c.l.b16 %v3089_v13  ;;  %v2931_v20 = vadd.f32 %v2930_v26, %v2929_v1 }
 0x2e1   : > { %v2950_v19 = vadd.f32 %v2949_v47, %v2948_v51  ;;  %v2935_v61 = vrot.slane %v2934_v22, 4  ;;  %v3295_v52 = vsel %vm3253_vm2, %v3230_v39, %v3229_v41  ;;  %v2955_v3 = vsel %vm2597_vm1, %v2584_v63, 0.0 }
 0x2e2   : > { %v2911_v9 = vrot.slane %v2910_v57, 1  ;;  %v2917_v48 = vadd.f32 %v2916_v55, %v2915_v45  ;;  %v3296_v14 = vsel %vm3255_vm3, %v3231_v18, %v3295_v52  ;;  %v2926_v11 = vadd.f32 %v2925_v34, %v2924_v37  ;;  %v1007_v34 = vpop.f32.mrf.mxu0 }
 0x2e3   : > { %v2932_v31 = vrot.slane %v2931_v20, 1  ;;  %v2936_v7 = vadd.f32 %v2935_v61, %v2934_v22  ;;  %v3227_v43 = vunpack.c.l.b16 %v3084_v36  ;;  %v3297_v49 = vsel %vm3257_vm4, %v3232_v59, %v3296_v14 }
 0x2e4   : > { %v2912_v6 = vadd.f32 %v2911_v9, %v2910_v57  ;;  %v2918_v27 = vrot.slane %v2917_v48, 1  ;;  %v2951_v42 = vrot.slane %v2950_v19, 2  ;;  %v2956_v8 = vrot.slane %v2955_v3, 4 }
 0x2e5   : > { %v2933_v16 = vadd.f32 %v2932_v31, %v2931_v20  ;;  %v2937_v32 = vrot.slane %v2936_v7, 2  ;;  %v2582_v30 = vmul.f32 %v2473_v44, %v5815_v0  ;;  %v3292_v24 = vsel %vm3261_vm6, %v3226_v53, %v5826_v29 }
 0x2e6   : > { %v3090_v12 = vpack.c.bf16 %v2912_v6, %v2912_v6  ;;  %v2919_v28 = vadd.f32 %v2918_v27, %v2917_v48  ;;  %v3228_v23 = vunpack.c.l.b16 %v3085_v54  ;;  %v3092_v36 = vpack.c.bf16 %v2926_v11, %v2926_v11 }
 0x2e7   : > { %v2938_v38 = vadd.f32 %v2937_v32, %v2936_v7  ;;  %v2957_v2 = vadd.f32 %v2956_v8, %v2955_v3  ;;  %v2941_v33 = vsel %vm2597_vm1, %v2582_v30, 0.0  ;;  %v3293_v50 = vsel %vm3263_vm7, %v3227_v43, %v3292_v24  ;;  %v6111_v7 = vld [vmem:[#allocation35_spill] sm:$0xff] }
 0x2e8   : > { %v3233_v46 = vunpack.c.l.b16 %v3090_v12  ;;  %v3091_v18 = vpack.c.bf16 %v2919_v28, %v2919_v28  ;;  %v3093_v25 = vpack.c.bf16 %v2933_v16, %v2933_v16  ;;  %v2952_v5 = vadd.f32 %v2951_v42, %v2950_v19  ;;  %v6113_v16 = vld [vmem:[#allocation46_spill] sm:$0xff]  ;;  %v6114_v28 = vld [vmem:[#allocation40_spill] sm:$0xff] }
 0x2e9   : > { %v2958_v62 = vrot.slane %v2957_v2, 2  ;;  %v2942_v29 = vrot.slane %v2941_v33, 4  ;;  %v3294_v56 = vsel %vm3265_vm8, %v3228_v23, %v3293_v50  ;;  %v1004_v54 = vadd.f32 %v5470_v17, %v4622_v21 }
 0x2ea   : > { %v3298_v0 = vsel %vm3259_vm5, %v3233_v46, %v3297_v49  ;;  %v3234_v37 = vunpack.c.l.b16 %v3091_v18  ;;  %v3982_v53 = vpop.f32.mrf.mxu1  ;;  %v3235_v40 = vunpack.c.l.b16 %v3092_v36  ;;  %v2939_v13 = vrot.slane %v2938_v38, 1  ;;  %v6112_v49 = vld [vmem:[#allocation38_spill] sm:$0xff] }
 0x2eb   : > { %v2959_v60 = vadd.f32 %v2958_v62, %v2957_v2  ;;  %v2943_v1 = vadd.f32 %v2942_v29, %v2941_v33  ;;  %v3236_v15 = vunpack.c.l.b16 %v3093_v25  ;;  %v2953_v35 = vrot.slane %v2952_v5, 1  ;;  %v4128_v25 = vld [vmem:[%s6005_s6 + $0x10] sm:$0xff]  }
 0x2ec   : > { %v2486_v51 = vpop.f32.mrf.mxu1  ;;  %v3299_v4 = vsel %vm3261_vm6, %v3234_v37, %v3298_v0  ;;  %v2940_v41 = vadd.f32 %v2939_v13, %v2938_v38  ;;  %v1008_v59 = vadd.f32 %v1007_v34, %v4622_v21  ;;  %v1014_v44 = vadd.f32 %v6111_v7, %v4622_v21  ;;  %v6115_v38 = vld [vmem:[#allocation48_spill] sm:$0xff]  ;;  %4010 = vmatprep.subr.bf16.mxu1 %v4128_v25 }
 0x2ed   : > { %v2960_v10 = vrot.slane %v2959_v60, 1  ;;  %v2944_v45 = vrot.slane %v2943_v1, 2  ;;  %v2585_v26 = vmul.f32 %v2486_v51, %v1004_v54  ;;  %v3300_v22 = vsel %vm3263_vm7, %v3235_v40, %v3299_v4  ;;  %v6116_v40 = vld [vmem:[#allocation43_spill] sm:$0xff]  ;;  %4011 = vmatpush3.bf16.msra.mxu1 %v4128_v25 }
 0x2ee   : > { %v3983_v47 = vpop.f32.mrf.mxu1  ;;  %v3301_v63 = vsel %vm3265_vm8, %v3236_v15, %v3300_v22  ;;  %v2954_v20 = vadd.f32 %v2953_v35, %v2952_v5  ;;  %v3094_v3 = vpack.c.bf16 %v2940_v41, %v2940_v41  ;;  %v1018_v27 = vadd.f32 %v6112_v49, %v4622_v21 }
 0x2ef   : > { %v2945_v17 = vadd.f32 %v2944_v45, %v2943_v1  ;;  %v2962_v39 = vsel %vm2597_vm1, %v2585_v26, 0.0  ;;  %v3318_v55 = vpack.c.b16 %v3301_v63, %v3294_v56  ;;  %v2961_v61 = vadd.f32 %v2960_v10, %v2959_v60 }
 0x2f0   : > { %v2489_v57 = vpop.f32.mrf.mxu1  ;;  %v2963_v19 = vrot.slane %v2962_v39, 4  ;;  %v3096_v11 = vpack.c.bf16 %v2954_v20, %v2954_v20  ;;  %v1034_v42 = vadd.f32 %v6113_v16, %v4622_v21  ;;  %v1024_v30 = vadd.f32 %v6114_v28, %v4622_v21 }
 0x2f1   : > { %v2946_v52 = vrot.slane %v2945_v17, 1  ;;  %4004 = vmatprep.mubr.msk.bf16.mxu1 %vm2597_vm1, %v3318_v55  ;;  %v2586_v48 = vmul.f32 %v2489_v57, %v1008_v59  ;;  %v3097_v43 = vpack.c.bf16 %v2961_v61, %v2961_v61  ;;  %v3237_v24 = vunpack.c.l.b16 %v3094_v3 }
 0x2f2   : > { %v2964_v9 = vadd.f32 %v2963_v19, %v2962_v39  ;;  %v2587_v36 = vmul.f32 %v3982_v53, %v1014_v44  ;;  %v1038_v2 = vadd.f32 %v6115_v38, %v4622_v21  ;;  %v3239_v46 = vunpack.c.l.b16 %v3096_v11  ;;  %v4129_v39 = vld [vmem:[%s6005_s6 + $0x8] sm:$0xff]  }
 0x2f3   : > { %v2947_v14 = vadd.f32 %v2946_v52, %v2945_v17  ;;  %v2969_v8 = vsel %vm2597_vm1, %v2586_v48, 0.0  ;;  %v3240_v5 = vunpack.c.l.b16 %v3097_v43  ;;  %v2588_v0 = vmul.f32 %v3983_v47, %v1018_v27  ;;  %4012 = vmatprep.subr.bf16.mxu1 %v4129_v39  ;;  %v4130_v52 = vld [vmem:[%s6005_s6] sm:$0xff]   ;;  %v6117_v43 = vld [vmem:[#allocation54_spill] sm:$0xff] }
 0x2f4   : > { %v2965_v31 = vrot.slane %v2964_v9, 2  ;;  %v2970_v37 = vrot.slane %v2969_v8, 4  ;;  %v1028_v13 = vadd.f32 %v6116_v40, %v4622_v21  ;;  %v2976_v1 = vsel %vm2597_vm1, %v2587_v36, 0.0  ;;  %4013 = vmatpush3.bf16.msra.mxu1 %v4129_v39 }
 0x2f5   : > { %v3095_v6 = vpack.c.bf16 %v2947_v14, %v2947_v14  ;;  %v2983_v45 = vsel %vm2597_vm1, %v2588_v0, 0.0  ;;  %v2977_v57 = vrot.slane %v2976_v1, 4  ;;  %4014 = vmatprep.subr.bf16.mxu1 %v4130_v52 }
 0x2f6   : > { %v2966_v32 = vadd.f32 %v2965_v31, %v2964_v9  ;;  %v2971_v63 = vadd.f32 %v2970_v37, %v2969_v8  ;;  %v2984_v19 = vrot.slane %v2983_v45, 4 }
 0x2f7   : > { %v3986_v12 = vpop.f32.mrf.mxu1  ;;  %v3238_v23 = vunpack.c.l.b16 %v3095_v6  ;;  %v2978_v31 = vadd.f32 %v2977_v57, %v2976_v1  ;;  %v1054_v6 = vadd.f32 %v6117_v43, %v4622_v21 }
 0x2f8   : > { %v2967_v18 = vrot.slane %v2966_v32, 1  ;;  %v2591_v33 = vmul.f32 %v3986_v12, %v1034_v42  ;;  %v2972_v14 = vrot.slane %v2971_v63, 2  ;;  %v2985_v49 = vadd.f32 %v2984_v19, %v2983_v45  ;;  %4015 = vmatpush3.bf16.msra.mxu1 %v4130_v52 }
 0x2f9   : > { %v2502_v50 = vpop.f32.mrf.mxu1  ;;  %v3302_v62 = vsel %vm3253_vm2, %v3238_v23, %v3237_v24  ;;  %v2979_v24 = vrot.slane %v2978_v31, 2 }
 0x2fa   : > { %v3303_v29 = vsel %vm3255_vm3, %v3239_v46, %v3302_v62  ;;  %v2968_v56 = vadd.f32 %v2967_v18, %v2966_v32  ;;  %v3004_v53 = vsel %vm2597_vm1, %v2591_v33, 0.0  ;;  %v2589_v54 = vmul.f32 %v2502_v50, %v1024_v30  ;;  %v6118_v32 = vld [vmem:[#allocation50_spill] sm:$0xff]  ;;  %v6119_v50 = vld [vmem:[#allocation52_spill] sm:$0xff] }
 0x2fb   : > { %v3987_v60 = vpop.f32.mrf.mxu1  ;;  %v3304_v51 = vsel %vm3257_vm4, %v3240_v5, %v3303_v29  ;;  %v3005_v15 = vrot.slane %v3004_v53, 4  ;;  %v1044_v8 = vadd.f32 %v6118_v32, %v4622_v21  ;;  %v2973_v12 = vadd.f32 %v2972_v14, %v2971_v63 }
 0x2fc   : > { %v3098_v4 = vpack.c.bf16 %v2968_v56, %v2968_v56  ;;  %v2990_v35 = vsel %vm2597_vm1, %v2589_v54, 0.0  ;;  %v2592_v34 = vmul.f32 %v3987_v60, %v1038_v2  ;;  %v1058_v2 = vadd.f32 %v5534_v58, %v4622_v21 }
 0x2fd   : > { %v2505_v10 = vpop.f32.mrf.mxu1  ;;  %v2991_v26 = vrot.slane %v2990_v35, 4  ;;  %v3006_v41 = vadd.f32 %v3005_v15, %v3004_v53  ;;  %v2986_v46 = vrot.slane %v2985_v49, 2  ;;  %v1048_v25 = vadd.f32 %v6119_v50, %v4622_v21 }
 0x2fe   : > { %v2590_v47 = vmul.f32 %v2505_v10, %v1028_v13  ;;  %v3241_v22 = vunpack.c.l.b16 %v3098_v4  ;;  %v3011_v17 = vsel %vm2597_vm1, %v2592_v34, 0.0  ;;  %v2974_v29 = vrot.slane %v2973_v12, 1 }
 0x2ff   : > { %v2992_v55 = vadd.f32 %v2991_v26, %v2990_v35  ;;  %v3012_v59 = vrot.slane %v3011_v17, 4  ;;  %v3007_v11 = vrot.slane %v3006_v41, 2  ;;  %v2980_v60 = vadd.f32 %v2979_v24, %v2978_v31 }
 0x300   : > { %v5893_v20 = vsel %vm3259_vm5, %v3241_v22, %v3304_v51  ;;  %v2997_v61 = vsel %vm2597_vm1, %v2590_v47, 0.0  ;;  %v2987_v51 = vadd.f32 %v2986_v46, %v2985_v49  ;;  %v2975_v26 = vadd.f32 %v2974_v29, %v2973_v12 }
 0x301   : > { %v2993_v9 = vrot.slane %v2992_v55, 2  ;;  %v3013_v48 = vadd.f32 %v3012_v59, %v3011_v17  ;;  %v2998_v3 = vrot.slane %v2997_v61, 4  ;;  %v3008_v28 = vadd.f32 %v3007_v11, %v3006_v41 }
 0x302   : > { %v3099_v31 = vpack.c.bf16 %v2975_v26, %v2975_v26 }
 0x303   : > { %v2994_v7 = vadd.f32 %v2993_v9, %v2992_v55  ;;  %v2999_v44 = vadd.f32 %v2998_v3, %v2997_v61  ;;  %v3014_v27 = vrot.slane %v3013_v48, 2  ;;  %v3009_v56 = vrot.slane %v3008_v28, 1 }
 0x304   : > { %v2981_v55 = vrot.slane %v2980_v60, 1  ;;  %v3242_v24 = vunpack.c.l.b16 %v3099_v31 }
 0x305   : > { %v3000_v16 = vrot.slane %v2999_v44, 2  ;;  %v2995_v23 = vrot.slane %v2994_v7, 1  ;;  %v3015_v5 = vadd.f32 %v3014_v27, %v3013_v48  ;;  %v3010_v47 = vadd.f32 %v3009_v56, %v3008_v28 }
 0x306   : > { %v3990_v42 = vpop.f32.mrf.mxu1  ;;  %v2988_v48 = vrot.slane %v2987_v51, 1  ;;  %v3306_v29 = vsel %vm3261_vm6, %v3242_v24, %v5893_v20 }
 0x307   : > { %v2595_v30 = vmul.f32 %v3990_v42, %v1054_v6  ;;  %v3001_v36 = vadd.f32 %v3000_v16, %v2999_v44  ;;  %v2996_v40 = vadd.f32 %v2995_v23, %v2994_v7  ;;  %v3016_v21 = vrot.slane %v3015_v5, 1 }
 0x308   : > { %v2518_v38 = vpop.f32.mrf.mxu1  ;;  %v3104_v3 = vpack.c.bf16 %v3010_v47, %v3010_v47  ;;  %v2982_v6 = vadd.f32 %v2981_v55, %v2980_v60 }
 0x309   : > { %v3032_v18 = vsel %vm2597_vm1, %v2595_v30, 0.0  ;;  %v2593_v33 = vmul.f32 %v2518_v38, %v1044_v8  ;;  %v3002_v62 = vrot.slane %v3001_v36, 1  ;;  %v3102_v41 = vpack.c.bf16 %v2996_v40, %v2996_v40 }
 0x30a   : > { %v3033_v0 = vrot.slane %v3032_v18, 4  ;;  %v3991_v37 = vpop.f32.mrf.mxu1  ;;  %v3017_v19 = vadd.f32 %v3016_v21, %v3015_v5  ;;  %v2989_v8 = vadd.f32 %v2988_v48, %v2987_v51  ;;  %v3247_v12 = vunpack.c.l.b16 %v3104_v3 }
 0x30b   : > { %v3018_v53 = vsel %vm2597_vm1, %v2593_v33, 0.0  ;;  %v2596_v54 = vmul.f32 %v3991_v37, %v1058_v2  ;;  %v3003_v13 = vadd.f32 %v3002_v62, %v3001_v36  ;;  %v3245_v7 = vunpack.c.l.b16 %v3102_v41 }
 0x30c   : > { %v3034_v58 = vadd.f32 %v3033_v0, %v3032_v18  ;;  %v2521_v1 = vpop.f32.mrf.mxu1  ;;  %v3019_v4 = vrot.slane %v3018_v53, 4  ;;  %v3105_v27 = vpack.c.bf16 %v3017_v19, %v3017_v19  ;;  %v3100_v38 = vpack.c.bf16 %v2982_v6, %v2982_v6 }
 0x30d   : > { %v3039_v15 = vsel %vm2597_vm1, %v2596_v54, 0.0  ;;  %v2594_v35 = vmul.f32 %v2521_v1, %v1048_v25  ;;  %v3103_v34 = vpack.c.bf16 %v3003_v13, %v3003_v13  ;;  %v3101_v50 = vpack.c.bf16 %v2989_v8, %v2989_v8 }
 0x30e   : > { %v3035_v10 = vrot.slane %v3034_v58, 2  ;;  %v3040_v45 = vrot.slane %v3039_v15, 4  ;;  %v3020_v22 = vadd.f32 %v3019_v4, %v3018_v53  ;;  %v3248_v18 = vunpack.c.l.b16 %v3105_v27 }
 0x30f   : > { %v3025_v63 = vsel %vm2597_vm1, %v2594_v35, 0.0  ;;  %v3246_v61 = vunpack.c.l.b16 %v3103_v34  ;;  %v3243_v56 = vunpack.c.l.b16 %v3100_v38  ;;  %v3244_v13 = vunpack.c.l.b16 %v3101_v50 }
 0x310   : > { %v3036_v17 = vadd.f32 %v3035_v10, %v3034_v58  ;;  %v3041_v39 = vadd.f32 %v3040_v45, %v3039_v15  ;;  %v3026_v57 = vrot.slane %v3025_v63, 4  ;;  %v3021_v59 = vrot.slane %v3020_v22, 2  ;;  %v3819_v10 = vld [vmem:[%s6004_s5] ss:$0 sm:$0xff] }
 0x311   : > { %v3309_v16 = vsel %vm3253_vm2, %v3246_v61, %v3245_v7  ;;  %v3307_v40 = vsel %vm3263_vm7, %v3243_v56, %v3306_v29  ;;  %v3837_v56 = vld [vmem:[%s6008_s9] ss:$0 sm:$0xff] }
 0x312   : > { %v3042_v52 = vrot.slane %v3041_v39, 2  ;;  %v3027_v9 = vadd.f32 %v3026_v57, %v3025_v63  ;;  %v3037_v14 = vrot.slane %v3036_v17, 1  ;;  %v3022_v11 = vadd.f32 %v3021_v59, %v3020_v22  ;;  %v4132_v57 = vld [vmem:[%s6007_s8] sm:$0xff]  }
 0x313   : > { %v3310_v2 = vsel %vm3255_vm3, %v3247_v12, %v3309_v16  ;;  %v3308_v4 = vsel %vm3265_vm8, %v3244_v13, %v3307_v40 }
 0x314   : > { %v3043_v44 = vadd.f32 %v3042_v52, %v3041_v39  ;;  %v3028_v43 = vrot.slane %v3027_v9, 2  ;;  %v3023_v49 = vrot.slane %v3022_v11, 1  ;;  %v3038_v28 = vadd.f32 %v3037_v14, %v3036_v17  ;;  %v4131_v39 = vld [vmem:[%s6007_s8 + $0x8] sm:$0xff]  }
 0x315   : > { %v3311_v62 = vsel %vm3257_vm4, %v3248_v18, %v3310_v2  ;;  %4024 = vmatprep.subr.bf16.mxu1 %v4131_v39 }
 0x316   : > { %v3044_v42 = vrot.slane %v3043_v44, 1  ;;  %v3029_v32 = vadd.f32 %v3028_v43, %v3027_v9  ;;  %v3024_v30 = vadd.f32 %v3023_v49, %v3022_v11  ;;  %v3108_v25 = vpack.c.bf16 %v3038_v28, %v3038_v28 }
 0x318   : > { %v3045_v23 = vadd.f32 %v3044_v42, %v3043_v44  ;;  %v3030_v36 = vrot.slane %v3029_v32, 1  ;;  %v3106_v46 = vpack.c.bf16 %v3024_v30, %v3024_v30  ;;  %v3251_v54 = vunpack.c.l.b16 %v3108_v25  ;;  %v3828_v44 = vld [vmem:[%s6006_s7] ss:$0 sm:$0xff] }
 0x31a   : > { %v3031_v33 = vadd.f32 %v3030_v36, %v3029_v32  ;;  %v3249_v5 = vunpack.c.l.b16 %v3106_v46  ;;  %v3109_v0 = vpack.c.bf16 %v3045_v23, %v3045_v23 }
 0x31c   : > { %v3107_v37 = vpack.c.bf16 %v3031_v33, %v3031_v33  ;;  %v3312_v60 = vsel %vm3259_vm5, %v3249_v5, %v3311_v62  ;;  %v3252_v58 = vunpack.c.l.b16 %v3109_v0 }
 0x31e   : > { %v3250_v53 = vunpack.c.l.b16 %v3107_v37 }
 0x320   : > { %v3313_v1 = vsel %vm3261_vm6, %v3250_v53, %v3312_v60 }
 0x321   : > { %v3314_v51 = vsel %vm3263_vm7, %v3251_v54, %v3313_v1 }
 0x322   : > { %v3315_v15 = vsel %vm3265_vm8, %v3252_v58, %v3314_v51 }
 0x323   : > { %v3319_v35 = vpack.c.b16 %v3315_v15, %v3308_v4 }
 0x325   : > { %4005 = vmatmul.mubr.msk.bf16.gmra.mxu1 %vm2597_vm1, %v3319_v35 }
 0x378   : > { %v4002_v20 = vpop.f32.mrf.mxu1 }
 0x379   : > { %v3399_v63 = vadd.f32 %v4002_v20, %v3819_v10 }
 0x37a   : > { %v3390_v21 = vpop.f32.mrf.mxu1 }
 0x37b   : > { %v3391_v47 = vadd.f32 %v3819_v10, %v3390_v21 }
 0x37c   : > { %v4003_v34 = vpop.f32.mrf.mxu1 }
 0x37d   : > { %v3402_v45 = vadd.f32 %v4003_v34, %v3819_v10 }
 0x37e   : > { %v3393_v26 = vpop.f32.mrf.mxu1 }
 0x37f   : > { %v3394_v22 = vadd.f32 %v3819_v10, %v3393_v26  ;;  %v3422_v17 = vpack.c.bf16 %v3402_v45, %v3399_v63 }
 0x381   : > { %v3421_v41 = vpack.c.bf16 %v3394_v22, %v3391_v47 }
 0x383   : > { %4016 = vmatprep.mubr.msk.bf16.mxu1 %vm2597_vm1, %v3421_v41 }
 0x384   : > { %4017 = vmatmul.mubr.msk.bf16.vlgmr.msra.gmra.mxu1 %vm2597_vm1, %v3422_v17 }
 0x385   : > { %4025 = vmatpush3.bf16.msra.mxu1 %v4131_v39 }
 0x386   : > { %4026 = vmatprep.subr.bf16.mxu1 %v4132_v57 }
 0x389   : > { %4027 = vmatpush3.bf16.msra.mxu1 %v4132_v57 }
 0x3e5   : > { %v4006_v55 = vpop.f32.mrf.mxu1 }
 0x3e6   : > { %v3415_v3 = vadd.f32 %v4006_v55, %v3819_v10 }
 0x3e7   : > { %v3406_v59 = vpop.f32.mrf.mxu1 }
 0x3e8   : > { %v3407_v9 = vadd.f32 %v3819_v10, %v3406_v59 }
 0x3e9   : > { %v4007_v19 = vpop.f32.mrf.mxu1 }
 0x3ea   : > { %v3418_v61 = vadd.f32 %v4007_v19, %v3819_v10 }
 0x3eb   : > { %v3409_v52 = vpop.f32.mrf.mxu1 }
 0x3ec   : > { %v3410_v48 = vadd.f32 %v3819_v10, %v3409_v52  ;;  %v3424_v11 = vpack.c.bf16 %v3418_v61, %v3415_v3 }
 0x3ee   : > { %v3423_v14 = vpack.c.bf16 %v3410_v48, %v3407_v9 }
 0x3f0   : > { %4020 = vmatprep.mubr.msk.bf16.mxu1 %vm2597_vm1, %v3423_v14 }
 0x3f1   : > { %4021 = vmatmul.mubr.msk.bf16.gmra.mxu1 %vm2597_vm1, %v3424_v11 }
 0x444   : > { %v4018_v31 = vpop.f32.mrf.mxu1 }
 0x445   : > { %v3519_v27 = vadd.f32 %v4018_v31, %v3828_v44 }
 0x446   : > { %v3510_v7 = vpop.f32.mrf.mxu1 }
 0x447   : > { %v3511_v6 = vadd.f32 %v3828_v44, %v3510_v7  ;;  %v3543_v28 = vmax.f32 %v3519_v27, 0.0 }
 0x448   : > { %v4019_v43 = vpop.f32.mrf.mxu1 }
 0x449   : > { %v3522_v49 = vadd.f32 %v4019_v43, %v3828_v44  ;;  %v3541_v8 = vmax.f32 %v3511_v6, 0.0 }
 0x44a   : > { %v3513_v16 = vpop.f32.mrf.mxu1 }
 0x44b   : > { %v3514_v42 = vadd.f32 %v3828_v44, %v3513_v16  ;;  %v3544_v32 = vmax.f32 %v3522_v49, 0.0 }
 0x44d   : > { %v3542_v12 = vmax.f32 %v3514_v42, 0.0  ;;  %v3550_v24 = vpack.c.bf16 %v3544_v32, %v3543_v28 }
 0x44f   : > { %v3549_v30 = vpack.c.bf16 %v3542_v12, %v3541_v8 }
 0x451   : > { %4028 = vmatprep.mubr.msk.bf16.mxu1 %vm3576_vm9, %v3549_v30 }
 0x452   : > { %4029 = vmatmul.mubr.msk.bf16.vlgmr.msra.gmra.mxu1 %vm3576_vm9, %v3550_v24 }
 0x4b1   : > { %v4022_v23 = vpop.f32.mrf.mxu1 }
 0x4b2   : > { %v3535_v18 = vadd.f32 %v4022_v23, %v3828_v44 }
 0x4b3   : > { %v3526_v36 = vpop.f32.mrf.mxu1 }
 0x4b4   : > { %v3527_v2 = vadd.f32 %v3828_v44, %v3526_v36  ;;  %v3547_v0 = vmax.f32 %v3535_v18, 0.0 }
 0x4b5   : > { %v4023_v38 = vpop.f32.mrf.mxu1 }
 0x4b6   : > { %v3538_v46 = vadd.f32 %v4023_v38, %v3828_v44  ;;  %v3545_v5 = vmax.f32 %v3527_v2, 0.0 }
 0x4b7   : > { %v3529_v33 = vpop.f32.mrf.mxu1 }
 0x4b8   : > { %v3530_v50 = vadd.f32 %v3828_v44, %v3529_v33  ;;  %v3548_v25 = vmax.f32 %v3538_v46, 0.0 }
 0x4ba   : > { %v3546_v62 = vmax.f32 %v3530_v50, 0.0  ;;  %v3552_v29 = vpack.c.bf16 %v3548_v25, %v3547_v0 }
 0x4bc   : > { %v3551_v37 = vpack.c.bf16 %v3546_v62, %v3545_v5 }
 0x4be   : > { %4032 = vmatprep.mubr.msk.bf16.mxu1 %vm3576_vm9, %v3551_v37 }
 0x4bf   : > { %4033 = vmatmul.mubr.msk.bf16.gmra.mxu1 %vm3576_vm9, %v3552_v29 }
 0x512   : > { %v4030_v53 = vpop.f32.mrf.mxu1 }
 0x513   : > { %v3632_v54 = vadd.f32 %v4030_v53, %v3837_v56 }
 0x514   : > { %v3623_v60 = vpop.f32.mrf.mxu1 }
 0x515   : > { %3656 = vst [vmem:[%s353_s26 + $0x10] sm:$0xff] %v3632_v54  ;;  %v3624_v40 = vadd.f32 %v3837_v56, %v3623_v60 }
 0x516   : > { %v4031_v13 = vpop.f32.mrf.mxu1 }
 0x517   : > { %3654 = vst [vmem:[%s353_s26] sm:$0xff] %v3624_v40  ;;  %v3635_v58 = vadd.f32 %v4031_v13, %v3837_v56 }
 0x518   : > { %v3626_v1 = vpop.f32.mrf.mxu1 }
 0x519   : > { %3657 = vst [vmem:[%s353_s26 + $0x18] sm:$0xff] %v3635_v58  ;;  %v3627_v51 = vadd.f32 %v3837_v56, %v3626_v1 }
 0x51b   : > { %3655 = vst [vmem:[%s353_s26 + $0x8] sm:$0xff] %v3627_v51 }
 0x57f   : > { %v4034_v4 = vpop.f32.mrf.mxu1 }
 0x580   : > { %v3648_v15 = vadd.f32 %v4034_v4, %v3837_v56 }
 0x581   : > { %v3639_v35 = vpop.f32.mrf.mxu1 }
 0x582   : > { %3660 = vst [vmem:[%s353_s26 + $0x30] sm:$0xff] %v3648_v15  ;;  %v3640_v20 = vadd.f32 %v3837_v56, %v3639_v35 }
 0x583   : > { %v4035_v21 = vpop.f32.mrf.mxu1 }
 0x584   : > { %3658 = vst [vmem:[%s353_s26 + $0x20] sm:$0xff] %v3640_v20  ;;  %v3651_v34 = vadd.f32 %v4035_v21, %v3837_v56 }
 0x585   : > { %v3642_v10 = vpop.f32.mrf.mxu1 }
 0x586   : > { %3661 = vst [vmem:[%s353_s26 + $0x38] sm:$0xff] %v3651_v34  ;;  %v3643_v45 = vadd.f32 %v3837_v56, %v3642_v10 }
 0x588   : > { %3659 = vst [vmem:[%s353_s26 + $0x28] sm:$0xff] %v3643_v45 }
 0x589   : > { %4402 = shalt.err (!%p4399_p3)
}
 0x58a   : > { %s4403_s12 = scalar_lea.hbm %s5953_s18, 1024  ;;  %s4407_s29 = scalar_lea.hbm %s6009_s10, 2048 }
 0x58b   : > { %p4404_p4 = scmp.ne.s32.totalorder %s5953_s18, %s4403_s12  ;;  %p4408_p9 = scmp.lt.s32.totalorder %s5953_s18, %s6009_s10 }
 0x58c   : > { %p4409_p10 = scmp.lt.s32.totalorder %s4407_s29, %s4403_s12 }
 0x58d   : > { %p4405_p7 = pnand %p4404_p4, %p4548_p5 }
 0x58e   : > { %p4410_p11 = por %p4409_p10, %p4408_p9 }
 0x58f   : > { %p4406_p8 = pneg %p4405_p7 }
 0x591   : > { %p4411_p12 = pnand %p4410_p11, %p4406_p8 }
 0x593   : > { %4414 = shalt.err (!%p4411_p12)
}
 0x594   : > { %s4453_s11 = smov 128   ;;  %s4454_s21 = smov 8  }
 0x595   : > { %4038 = dma.vmem_to_hbm [thread:$0]  (%p4548_p5), %s5955_s28, 1024, %s5953_s18, %s5959_s17, %s4453_s11, %s4453_s11, %s4454_s21  }
 0x596 PF: > { %p4044_p13 = scmp.ge.s32.totalorder %s4449_s16, 2  ;;  %s3691_s25 = sand.u32 1, %s4437_s13  }
 0x597   : > { %s3692_s12 = scalar_lea.sflag [#allocation3], %s3691_s25 }
 0x598   : > { %p4041_p0 = pnand %p4044_p13, %p4552_p6 }
 0x59a   : > { %p4042_p1 = pneg %p4041_p0 }
 0x59c   : > { %4432 = dma.done.wait (%p4042_p1), %s3692_s12, 1024  }
 0x59d   : > { %4434 = vsyncadd (%p4042_p1), %s3692_s12, 4294966272  ;;  %p20_p2 = scmp.ge.s32.totalorder %s4535_s19, 4   ;;  %s6120_s13 = smov %s4441_s14 }
 0x59e   : > { %s6121_s14 = smov %s4445_s15  ;;  %s6122_s15 = smov %s4546_s22 }
 0x59f   : > { %s6123_s16 = smov %s4535_s19  ;;  %22 = sbr.rel (!%p20_p2) target bundleno = 3 (0x3), region = 95 }
 0x5a4   :  { %3697 = vsyncpa [#allocation3], 1 }
 0x5a5   :  { %3699 = vsyncpa [#allocation3 + $0x1], 1 }

</bundles_post_ra>
